<compile_context>
chip_gen: v7x
topology: tpu7x:2x2x1
jax: 0.10.0
libtpu: 0.0.40
codegen_flags: <defaults>
</compile_context>

<pallas_src>
import functools

import jax
import jax.numpy as jnp
from jax.experimental import pallas as pl
from jax.experimental.pallas import tpu as pltpu


def _vq_kernel(z_ref, e_ref, et_ref, esq_ref, zq_ref, tok_ref, hist_ref, err_ref):
    j = pl.program_id(1)

    @pl.when(j == 0)
    def _():
        hist_ref[...] = jnp.zeros_like(hist_ref)
        err_ref[...] = jnp.zeros_like(err_ref)

    z = z_ref[0].astype(jnp.float32)        # (D, T)   NCHW-native tile
    e = e_ref[...].astype(jnp.float32)      # (K, D)
    e_t = et_ref[...].astype(jnp.float32)   # (D, K)
    e_sq = esq_ref[...]                     # (K, 1)   hoisted ||e||^2

    d_dim, t = z.shape
    k = e.shape[0]

    # d[k, t] = ||z_t||^2 + ||e_k||^2 - 2 * e_k . z_t     -> (K, T)
    z_sq = jnp.sum(z * z, axis=0, keepdims=True)                       # (1, T)
    cross = jnp.dot(e, z, preferred_element_type=jnp.float32)          # (K, T) MXU
    d = z_sq + e_sq - 2.0 * cross

    # argmin over the codebook (sublane) axis -- first-min-index, matching torch.
    min_d = jnp.min(d, axis=0, keepdims=True)                          # (1, T)
    kidx = jax.lax.broadcasted_iota(jnp.int32, (k, t), 0)              # (K, T)
    tok = jnp.min(jnp.where(d == min_d, kidx, k), axis=0)              # (T,) int32
    tok_ref[...] = tok.reshape(1, 1, t).astype(jnp.int32)

    # Codebook gather via one-hot matmul; result is already (D, T) == NCHW layout.
    onehot = (kidx == tok[None, :]).astype(jnp.float32)                # (K, T)
    zq = jnp.dot(e_t, onehot, preferred_element_type=jnp.float32)      # (D, T) MXU
    zq_ref[...] = zq[None].astype(zq_ref.dtype)

    # Histogram (bincount) accumulation across the hw grid axis, per batch element.
    hist_ref[...] += jnp.sum(onehot, axis=1, keepdims=True).reshape(1, k, 1)

    # Total squared quantization error: the per-pixel error IS min_d (clamped for
    # cancellation), so no (zq - z)^2 reduce is needed.
    err_ref[...] += jnp.sum(jnp.maximum(min_d, 0.0)).reshape(1, 1, 1)


def _pick_tile_hw(hw, max_tile=1024):
    """Largest hw tile <= max_tile that divides hw and is lane-friendly."""
    if hw <= max_tile:
        return hw
    for cand in range(max_tile, 127, -128):
        if hw % cand == 0:
            return cand
    # TODO(synk): ragged last hw tile (row mask) instead of falling back to a
    # single full-hw tile for awkward spatial sizes.
    return hw


@functools.partial(jax.jit, static_argnames=("codebook_size", "codebook_dim",
                                              "beta", "alpha", "tile_hw"))
def vanilla_quantizer_forward(z_nchw, embedding, *, codebook_size, codebook_dim,
                              beta, alpha, tile_hw=None):
    """z_nchw: (B, C, H, W) with C == codebook_dim.  embedding: (K, D)."""
    b, c, h, w = z_nchw.shape
    assert c == codebook_dim
    hw = h * w
    n = b * hw
    if tile_hw is None:
        tile_hw = _pick_tile_hw(hw)
    assert hw % tile_hw == 0

    # NCHW -> (B, D, HW): a free reshape, no transpose.
    z3 = z_nchw.reshape(b, codebook_dim, hw)

    # Hoisted codebook constants (computed once, outside the grid loop).
    e_f32 = embedding.astype(jnp.float32)
    e_t = e_f32.T                                               # (D, K)
    e_sq = jnp.sum(e_f32 * e_f32, axis=1, keepdims=True)        # (K, 1)

    grid = (b, hw // tile_hw)
    zq3, tok3, hist_b, err_b = pl.pallas_call(
        _vq_kernel,
        out_shape=(
            jax.ShapeDtypeStruct((b, codebook_dim, hw), jnp.float32),   # z_q (NCHW-flat)
            jax.ShapeDtypeStruct((b, 1, hw), jnp.int32),                # tokens
            jax.ShapeDtypeStruct((b, codebook_size, 1), jnp.float32),   # per-batch histogram
            jax.ShapeDtypeStruct((b, 1, 1), jnp.float32),               # per-batch sq. error
        ),
        grid_spec=pltpu.PrefetchScalarGridSpec(
            num_scalar_prefetch=0,
            grid=grid,
            in_specs=[
                pl.BlockSpec((1, codebook_dim, tile_hw), lambda bi, j: (bi, 0, j)),
                pl.BlockSpec((codebook_size, codebook_dim), lambda bi, j: (0, 0)),
                pl.BlockSpec((codebook_dim, codebook_size), lambda bi, j: (0, 0)),
                pl.BlockSpec((codebook_size, 1), lambda bi, j: (0, 0)),
            ],
            out_specs=[
                pl.BlockSpec((1, codebook_dim, tile_hw), lambda bi, j: (bi, 0, j)),
                pl.BlockSpec((1, 1, tile_hw), lambda bi, j: (bi, 0, j)),
                pl.BlockSpec((1, codebook_size, 1), lambda bi, j: (bi, 0, 0)),
                pl.BlockSpec((1, 1, 1), lambda bi, j: (bi, 0, 0)),
            ],
        ),
        compiler_params=pltpu.CompilerParams(
            dimension_semantics=("parallel", "arbitrary"),   # batch parallel (v7x 2 TCs)
            vmem_limit_bytes=64 * 1024 * 1024),
    )(z3, e_f32, e_t, e_sq)

    # Scalar / tiny post-processing (matches the PyTorch forward).
    err_sum = jnp.sum(err_b)
    hist = jnp.sum(hist_b[:, :, 0], axis=0)                     # (K,)

    mse = err_sum / (n * codebook_dim)
    loss = beta * mse + alpha * mse          # forward value of beta*||sg(zq)-z||^2 + alpha*||zq-sg(z)||^2
    quant_error = err_sum / n                # mean over (B,H,W) of per-pixel sum over C

    codebook_usage_counts = jnp.sum((hist > 0).astype(jnp.float32))
    codebook_utilization = codebook_usage_counts / codebook_size
    avg_probs = hist / jnp.sum(hist)
    codebook_perplexity = jnp.exp(-jnp.sum(avg_probs * jnp.log(avg_probs + 1e-10)))

    # straight-through: forward value of z + (zq - z).detach() is just zq.
    zq_nchw = zq3.reshape(b, codebook_dim, h, w)
    return zq_nchw, loss, quant_error, codebook_utilization, codebook_perplexity


def _reference_forward(z_nchw, embedding, beta, alpha):
    """Pure-JAX reference mirroring the PyTorch forward (for a sanity check)."""
    b, c, h, w = z_nchw.shape
    z = jnp.transpose(z_nchw, (0, 2, 3, 1))
    zf = z.reshape(-1, c)
    d = (jnp.sum(zf**2, axis=1, keepdims=True) + jnp.sum(embedding**2, axis=1)
         - 2.0 * zf @ embedding.T)
    tok = jnp.argmin(d, axis=1)
    zq = embedding[tok].reshape(z.shape)
    loss = beta * jnp.mean((zq - z) ** 2) + alpha * jnp.mean((zq - z) ** 2)
    quant_error = jnp.mean(jnp.sum((zq - z) ** 2, axis=3))
    hist = jnp.bincount(tok, minlength=embedding.shape[0]).astype(jnp.float32)
    util = jnp.sum((hist > 0).astype(jnp.float32)) / embedding.shape[0]
    avg = hist / jnp.sum(hist)
    perp = jnp.exp(-jnp.sum(avg * jnp.log(avg + 1e-10)))
    return jnp.transpose(zq, (0, 3, 1, 2)), loss, quant_error, util, perp


if __name__ == "__main__":
    # args of the module (small, synthetic)
    codebook_size = 256
    codebook_dim = 16
    beta = 0.25
    alpha = 1.0

    # input z: (B, C, H, W) with C == codebook_dim
    B, H, W = 2, 16, 16
    key = jax.random.PRNGKey(0)
    k_z, k_e = jax.random.split(key)
    z = jax.random.normal(k_z, (B, codebook_dim, H, W), dtype=jnp.float32)

    # nn.Embedding weight init: uniform(-1/codebook_size, 1/codebook_size)
    embedding = jax.random.uniform(
        k_e, (codebook_size, codebook_dim), dtype=jnp.float32,
        minval=-1.0 / codebook_size, maxval=1.0 / codebook_size)

    out = vanilla_quantizer_forward(
        z, embedding,
        codebook_size=codebook_size, codebook_dim=codebook_dim,
        beta=beta, alpha=alpha)
    zq, loss, quant_error, util, perp = jax.block_until_ready(out)

    # sanity check against a pure-JAX reference
    zq_r, loss_r, qe_r, util_r, perp_r = _reference_forward(z, embedding, beta, alpha)
    assert jnp.allclose(zq, zq_r, atol=1e-5), "z_q mismatch"
    assert jnp.allclose(loss, loss_r, rtol=1e-5, atol=1e-5), "loss mismatch"
    assert jnp.allclose(quant_error, qe_r, rtol=1e-5, atol=1e-4), "quant_error mismatch"
    assert jnp.allclose(util, util_r, atol=1e-6), "utilization mismatch"
    assert jnp.allclose(perp, perp_r, atol=1e-4), "perplexity mismatch"

    print("KERNEL_OK")
</pallas_src>

<mosaic_0001>
module attributes {stable_mosaic.version = 11 : i64} {
  func.func @_vq_kernel(%arg0: i32, %arg1: i32, %arg2: memref<1x16x256xf32, #tpu.memory_space<vmem>>, %arg3: memref<256x16xf32, #tpu.memory_space<vmem>>, %arg4: memref<16x256xf32, #tpu.memory_space<vmem>>, %arg5: memref<256x1xf32, #tpu.memory_space<vmem>>, %arg6: memref<1x16x256xf32, #tpu.memory_space<vmem>>, %arg7: memref<1x1x256xi32, #tpu.memory_space<vmem>>, %arg8: memref<1x256x1xf32, #tpu.memory_space<vmem>>, %arg9: memref<1x1x1xf32, #tpu.memory_space<vmem>>) attributes {dimension_semantics = [#tpu.dimension_semantics<parallel>, #tpu.dimension_semantics<arbitrary>], iteration_bounds = array<i64: 2, 1>, scalar_prefetch = 0 : i64, scratch_operands = 0 : i64, tpu.core_type = #tpu.core_type<tc>, window_params = [{transform_indices = @transform_0, window_bounds = array<i64: 1, 16, 256>}, {pipeline_mode = #tpu.pipeline_mode<synchronous>, transform_indices = @transform_1, window_bounds = array<i64: 256, 16>}, {pipeline_mode = #tpu.pipeline_mode<synchronous>, transform_indices = @transform_2, window_bounds = array<i64: 16, 256>}, {pipeline_mode = #tpu.pipeline_mode<synchronous>, transform_indices = @transform_3, window_bounds = array<i64: 256, 1>}, {transform_indices = @transform_4, window_bounds = array<i64: 1, 16, 256>}, {transform_indices = @transform_5, window_bounds = array<i64: 1, 1, 256>}, {transform_indices = @transform_6, window_bounds = array<i64: 1, 256, 1>}, {transform_indices = @transform_7, window_bounds = array<i64: 1, 1, 1>}]} {
    %c0_i32 = arith.constant 0 : i32
    %0 = arith.cmpi eq, %arg1, %c0_i32 : i32
    %1 = arith.extui %0 : i1 to i32
    %c0_i32_0 = arith.constant 0 : i32
    %2 = arith.cmpi ne, %1, %c0_i32_0 : i32
    scf.if %2 {
      %cst_35 = arith.constant 0.000000e+00 : f32
      %52 = vector.broadcast %cst_35 : f32 to vector<1x256x1xf32>
      %c0_36 = arith.constant 0 : index
      %c0_37 = arith.constant 0 : index
      %c0_38 = arith.constant 0 : index
      %53 = vector.load %arg8[%c0_36, %c0_37, %c0_38] : memref<1x256x1xf32, #tpu.memory_space<vmem>>, vector<1x256x1xf32>
      tpu.vector_store %arg8[%c0_36, %c0_37, %c0_38], %52 {strides = array<i32>} : memref<1x256x1xf32, #tpu.memory_space<vmem>>, vector<1x256x1xf32>,
      %cst_39 = arith.constant 0.000000e+00 : f32
      %54 = vector.broadcast %cst_39 : f32 to vector<1x1x1xf32>
      %c0_40 = arith.constant 0 : index
      %c0_41 = arith.constant 0 : index
      %c0_42 = arith.constant 0 : index
      %55 = vector.load %arg9[%c0_40, %c0_41, %c0_42] : memref<1x1x1xf32, #tpu.memory_space<vmem>>, vector<1x1x1xf32>
      tpu.vector_store %arg9[%c0_40, %c0_41, %c0_42], %54 {strides = array<i32>} : memref<1x1x1xf32, #tpu.memory_space<vmem>>, vector<1x1x1xf32>,
    } else {
    }
    %c0 = arith.constant 0 : index
    %c0_1 = arith.constant 0 : index
    %c0_2 = arith.constant 0 : index
    %3 = vector.load %arg2[%c0, %c0_1, %c0_2] : memref<1x16x256xf32, #tpu.memory_space<vmem>>, vector<1x16x256xf32>
    %4 = vector.shape_cast %3 : vector<1x16x256xf32> to vector<16x256xf32>
    %c0_3 = arith.constant 0 : index
    %c0_4 = arith.constant 0 : index
    %5 = vector.load %arg3[%c0_3, %c0_4] : memref<256x16xf32, #tpu.memory_space<vmem>>, vector<256x16xf32>
    %c0_5 = arith.constant 0 : index
    %c0_6 = arith.constant 0 : index
    %6 = vector.load %arg4[%c0_5, %c0_6] : memref<16x256xf32, #tpu.memory_space<vmem>>, vector<16x256xf32>
    %c0_7 = arith.constant 0 : index
    %c0_8 = arith.constant 0 : index
    %7 = vector.load %arg5[%c0_7, %c0_8] : memref<256x1xf32, #tpu.memory_space<vmem>>, vector<256x1xf32>
    %8 = arith.mulf %4, %4 : vector<16x256xf32>
    %cst = arith.constant dense<0.000000e+00> : vector<256xf32>
    %9 = vector.multi_reduction <add>, %8, %cst [0] : vector<16x256xf32> to vector<256xf32>
    %10 = vector.shape_cast %9 : vector<256xf32> to vector<1x256xf32>
    %cst_9 = arith.constant dense<0.000000e+00> : vector<256x256xf32>
    %11 = tpu.matmul %5, %4, %cst_9 {dimension_numbers = #tpu.dot_dimension_numbers<[1], [0], [0], [1], [0, 0, 1, 1], [], []>} : vector<256x16xf32>, vector<16x256xf32>, vector<256x256xf32> -> vector<256x256xf32>
    %12 = vector.broadcast %10 : vector<1x256xf32> to vector<256x256xf32>
    %13 = vector.broadcast %7 : vector<256x1xf32> to vector<256x256xf32>
    %14 = arith.addf %12, %13 : vector<256x256xf32>
    %cst_10 = arith.constant 2.000000e+00 : f32
    %15 = vector.broadcast %cst_10 : f32 to vector<256x256xf32>
    %16 = arith.mulf %15, %11 : vector<256x256xf32>
    %17 = arith.subf %14, %16 : vector<256x256xf32>
    %cst_11 = arith.constant dense<0x7F800000> : vector<256xf32>
    %18 = vector.multi_reduction <minimumf>, %17, %cst_11 [0] : vector<256x256xf32> to vector<256xf32>
    %19 = vector.shape_cast %18 : vector<256xf32> to vector<1x256xf32>
    %20 = tpu.iota {dimensions = array<i32: 0>} : vector<256x256xi32>
    %21 = vector.broadcast %19 : vector<1x256xf32> to vector<256x256xf32>
    %22 = arith.cmpf oeq, %17, %21 : vector<256x256xf32>
    %c256_i32 = arith.constant 256 : i32
    %23 = vector.broadcast %c256_i32 : i32 to vector<256x256xi32>
    %24 = arith.select %22, %20, %23 : vector<256x256xi1>, vector<256x256xi32>
    %cst_12 = arith.constant dense<2147483647> : vector<256xi32>
    %25 = vector.multi_reduction <minsi>, %24, %cst_12 [0] : vector<256x256xi32> to vector<256xi32>
    %26 = vector.shape_cast %25 : vector<256xi32> to vector<1x1x256xi32>
    %c0_13 = arith.constant 0 : index
    %c0_14 = arith.constant 0 : index
    %c0_15 = arith.constant 0 : index
    %27 = vector.load %arg7[%c0_13, %c0_14, %c0_15] : memref<1x1x256xi32, #tpu.memory_space<vmem>>, vector<1x1x256xi32>
    tpu.vector_store %arg7[%c0_13, %c0_14, %c0_15], %26 {strides = array<i32>} : memref<1x1x256xi32, #tpu.memory_space<vmem>>, vector<1x1x256xi32>,
    %28 = vector.shape_cast %25 : vector<256xi32> to vector<1x256xi32>
    %29 = vector.broadcast %28 : vector<1x256xi32> to vector<256x256xi32>
    %30 = arith.cmpi eq, %20, %29 : vector<256x256xi32>
    %31 = arith.extui %30 : vector<256x256xi1> to vector<256x256xi32>
    %32 = arith.sitofp %31 : vector<256x256xi32> to vector<256x256xf32>
    %cst_16 = arith.constant dense<0.000000e+00> : vector<16x256xf32>
    %33 = tpu.matmul %6, %32, %cst_16 {dimension_numbers = #tpu.dot_dimension_numbers<[1], [0], [0], [1], [0, 0, 1, 1], [], []>} : vector<16x256xf32>, vector<256x256xf32>, vector<16x256xf32> -> vector<16x256xf32>
    %34 = vector.shape_cast %33 : vector<16x256xf32> to vector<1x16x256xf32>
    %c0_17 = arith.constant 0 : index
    %c0_18 = arith.constant 0 : index
    %c0_19 = arith.constant 0 : index
    %35 = vector.load %arg6[%c0_17, %c0_18, %c0_19] : memref<1x16x256xf32, #tpu.memory_space<vmem>>, vector<1x16x256xf32>
    tpu.vector_store %arg6[%c0_17, %c0_18, %c0_19], %34 {strides = array<i32>} : memref<1x16x256xf32, #tpu.memory_space<vmem>>, vector<1x16x256xf32>,
    %c0_20 = arith.constant 0 : index
    %c0_21 = arith.constant 0 : index
    %c0_22 = arith.constant 0 : index
    %36 = vector.load %arg8[%c0_20, %c0_21, %c0_22] : memref<1x256x1xf32, #tpu.memory_space<vmem>>, vector<1x256x1xf32>
    %cst_23 = arith.constant dense<0.000000e+00> : vector<256xf32>
    %37 = vector.multi_reduction <add>, %32, %cst_23 [1] : vector<256x256xf32> to vector<256xf32>
    %38 = vector.shape_cast %37 : vector<256xf32> to vector<256x1xf32>
    %39 = vector.shape_cast %38 : vector<256x1xf32> to vector<1x256x1xf32>
    %40 = arith.addf %36, %39 : vector<1x256x1xf32>
    %c0_24 = arith.constant 0 : index
    %c0_25 = arith.constant 0 : index
    %c0_26 = arith.constant 0 : index
    %41 = vector.load %arg8[%c0_24, %c0_25, %c0_26] : memref<1x256x1xf32, #tpu.memory_space<vmem>>, vector<1x256x1xf32>
    tpu.vector_store %arg8[%c0_24, %c0_25, %c0_26], %40 {strides = array<i32>} : memref<1x256x1xf32, #tpu.memory_space<vmem>>, vector<1x256x1xf32>,
    %c0_27 = arith.constant 0 : index
    %c0_28 = arith.constant 0 : index
    %c0_29 = arith.constant 0 : index
    %42 = vector.load %arg9[%c0_27, %c0_28, %c0_29] : memref<1x1x1xf32, #tpu.memory_space<vmem>>, vector<1x1x1xf32>
    %cst_30 = arith.constant 0.000000e+00 : f32
    %43 = vector.broadcast %cst_30 : f32 to vector<1x256xf32>
    %44 = arith.maximumf %19, %43 : vector<1x256xf32>
    %45 = vector.shape_cast %44 : vector<1x256xf32> to vector<1x1x256xf32>
    %cst_31 = arith.constant dense<0.000000e+00> : vector<1xf32>
    %46 = vector.multi_reduction <add>, %45, %cst_31 [1, 2] : vector<1x1x256xf32> to vector<1xf32>
    %47 = vector.shape_cast %46 : vector<1xf32> to vector<1x1x1xf32>
    %48 = vector.extract %47[0, 0, 0] : f32 from vector<1x1x1xf32>
    %49 = vector.broadcast %48 : f32 to vector<1x1x1xf32>
    %50 = arith.addf %42, %49 : vector<1x1x1xf32>
    %c0_32 = arith.constant 0 : index
    %c0_33 = arith.constant 0 : index
    %c0_34 = arith.constant 0 : index
    %51 = vector.load %arg9[%c0_32, %c0_33, %c0_34] : memref<1x1x1xf32, #tpu.memory_space<vmem>>, vector<1x1x1xf32>
    tpu.vector_store %arg9[%c0_32, %c0_33, %c0_34], %50 {strides = array<i32>} : memref<1x1x1xf32, #tpu.memory_space<vmem>>, vector<1x1x1xf32>,
    return
  }
  func.func @transform_0(%arg0: i32, %arg1: i32) -> (i32, i32, i32) {
    %c0_i32 = arith.constant 0 : i32
    %c0_i32_0 = arith.constant 0 : i32
    return %arg0, %c0_i32, %arg1 : i32, i32, i32
  }
  func.func @transform_1(%arg0: i32, %arg1: i32) -> (i32, i32) {
    %c0_i32 = arith.constant 0 : i32
    %c0_i32_0 = arith.constant 0 : i32
    %c0_i32_1 = arith.constant 0 : i32
    return %c0_i32, %c0_i32_0 : i32, i32
  }
  func.func @transform_2(%arg0: i32, %arg1: i32) -> (i32, i32) {
    %c0_i32 = arith.constant 0 : i32
    %c0_i32_0 = arith.constant 0 : i32
    %c0_i32_1 = arith.constant 0 : i32
    return %c0_i32, %c0_i32_0 : i32, i32
  }
  func.func @transform_3(%arg0: i32, %arg1: i32) -> (i32, i32) {
    %c0_i32 = arith.constant 0 : i32
    %c0_i32_0 = arith.constant 0 : i32
    %c0_i32_1 = arith.constant 0 : i32
    return %c0_i32, %c0_i32_0 : i32, i32
  }
  func.func @transform_4(%arg0: i32, %arg1: i32) -> (i32, i32, i32) {
    %c0_i32 = arith.constant 0 : i32
    %c0_i32_0 = arith.constant 0 : i32
    return %arg0, %c0_i32, %arg1 : i32, i32, i32
  }
  func.func @transform_5(%arg0: i32, %arg1: i32) -> (i32, i32, i32) {
    %c0_i32 = arith.constant 0 : i32
    %c0_i32_0 = arith.constant 0 : i32
    return %arg0, %c0_i32, %arg1 : i32, i32, i32
  }
  func.func @transform_6(%arg0: i32, %arg1: i32) -> (i32, i32, i32) {
    %c0_i32 = arith.constant 0 : i32
    %c0_i32_0 = arith.constant 0 : i32
    %c0_i32_1 = arith.constant 0 : i32
    return %arg0, %c0_i32, %c0_i32_0 : i32, i32, i32
  }
  func.func @transform_7(%arg0: i32, %arg1: i32) -> (i32, i32, i32) {
    %c0_i32 = arith.constant 0 : i32
    %c0_i32_0 = arith.constant 0 : i32
    %c0_i32_1 = arith.constant 0 : i32
    return %arg0, %c0_i32, %c0_i32_0 : i32, i32, i32
  }
}

</mosaic_0001>

<bundles_post_ra>
// kernel: vanilla_quantizer_forward.1
= control target key start
LH: loop header
LB: loop body
LE: loop exit
PB: predicated region body
PF: predicated region fallthrough
CT: control target
= control target key end

     0   :  { %s5349_s0 = inlined_call_operand.hbm [shape: f32[2,16,256], index: 0, kind: input, shape index: {}]   ;;  %s5350_s1 = inlined_call_operand.hbm [shape: f32[256,16], index: 1, kind: input, shape index: {}]   ;;  %s5351_s2 = inlined_call_operand.hbm [shape: f32[16,256], index: 2, kind: input, shape index: {}]   ;;  %s5352_s3 = inlined_call_operand.hbm [shape: f32[256,1], index: 3, kind: input, shape index: {}]   ;;  %s5353_s4 = inlined_call_operand.hbm [shape: f32[2,16,256], index: 4, kind: output, shape index: {0}]   ;;  %s5354_s5 = inlined_call_operand.hbm [shape: s32[2,1,256], index: 5, kind: output, shape index: {1}]   ;;  %s5355_s6 = inlined_call_operand.hbm [shape: f32[2,256,1], index: 6, kind: output, shape index: {2}]   ;;  %s5356_s7 = inlined_call_operand.hbm [shape: f32[2,1,1], index: 7, kind: output, shape index: {3}]  }
   0x1   :  { %5475 = sst [smem:[#allocation62_spill]] %s5350_s1 }
   0x2   :  { %13 = vsyncpa [#allocation3], 0 }
   0x3   :  { %15 = vsyncpa [#allocation3 + $0x1], 0 }
   0x4   :  { %16 = vsyncpa [#allocation6], 0 }
   0x5   :  { %17 = vsyncpa [#allocation9], 0 }
   0x6   :  { %18 = vsyncpa [#allocation4], 0 }
   0x7   :  { %20 = vsyncpa [#allocation4 + $0x1], 0 }
   0x8   :  { %21 = vsyncpa [#allocation12], 0 }
   0x9   :  { %23 = vsyncpa [#allocation12 + $0x1], 0 }
   0xa   :  { %24 = vsyncpa [#allocation15], 0 }
   0xb   :  { %26 = vsyncpa [#allocation15 + $0x1], 0  ;;  %s3136_s24 = smov 0   ;;  %s3138_s25 = smov 0  }
   0xc   :  { %s3140_s26 = smov 0   ;;  %s3142_s27 = smov 0  }
   0xd   :  { %s3144_s28 = smov 0   ;;  %s3146_s29 = smov 0  }
   0xe LB: > { %5476 = sst [smem:[#allocation22_spill]] %s3054_s24  ;;  %s3167_s30 = sadd.s32 4294967295, %s3074_s29   ;;  %s3074_s29 = sphi %s3146_s29, %s32_s29   ;;  %s3070_s28 = sphi %s3144_s28, %s5735_s28   ;;  %s3066_s27 = sphi %s3142_s27, %s5734_s27   ;;  %s3062_s26 = sphi %s3140_s26, %s5733_s26   ;;  %s3058_s25 = sphi %s3138_s25, %s5732_s25   ;;  %s3054_s24 = sphi %s3136_s24, %s5731_s24  }
   0xf   : > { %s5358_s8 = sadd.s32 4294967294, %s3074_s29   ;;  %p66_p0 = scmp.ne.s32.totalorder %s3058_s25, %s3054_s24 }
  0x10   : > { %p5357_p1 = scmp.eq.s32.totalorder %s3167_s30, 0  ;;  %p161_p3 = scmp.eq.s32.totalorder %s5358_s8, 1 }
  0x11   : > { %p2394_p5 = scmp.ge.s32.totalorder %s3074_s29, 1  ;;  %p248_p7 = scmp.lt.s32.totalorder %s3074_s29, 3 }
  0x12   : > { %p3178_p4 = por %p5357_p1, %p66_p0  ;;  %p3183_p6 = por %p161_p3, %p66_p0 }
  0x13   : > { %p3188_p8 = pnand %p2394_p5, %p248_p7  ;;  %s3076_s12 = smov [#allocation5]  }
  0x14   : > { %s5477_s9 = scalar_select %p3178_p4, 1, 0 }
  0x15   : > { %s5478_s10 = scalar_select %p3183_p6, 1, 0 }
  0x16   : > { %s5480_s11 = scalar_select %p3188_p8, 1, 0 }
  0x17   : > { %5479 = sst [smem:[#allocation23_spill]] %s5478_s10  ;;  %s260_s13 = sshll.u32 %s3076_s12, 4  ;;  %s3192_s13 = int_to_ptr.vmem [resolvable:$true] %s260_s13 }
  0x18   : > { %p2678_p9 = pneg %p3188_p8  ;;  %s3077_s15 = smov [#allocation7]  }
  0x19   : > { %s273_s16 = sshll.u32 %s3077_s15, 4  ;;  %s5482_s1 = sld [smem:[#allocation62_spill]]  ;;  %s3203_s16 = int_to_ptr.vmem [resolvable:$true] %s273_s16 }
  0x1a   : > { %p3199_p11 = pnand %p2678_p9, %p5357_p1 }
  0x1c   : > { %p3213_p13 = pneg %p3199_p11 }
  0x1f   : > { %s2778_s19 = scalar_lea.hbm %s5482_s1, 4096 }
  0x20   : > { %p2779_p12 = scmp.ne.s32.totalorder %s5482_s1, %s2778_s19  ;;  %p2785_p5 = scmp.lt.u32.totalorder %s2778_s19, %s5482_s1 }
  0x22   : > { %p2781_p0 = pnand %p3213_p13, %p2779_p12 }
  0x24   : > { %p2782_p3 = pneg %p2781_p0 }
  0x26   : > { %p2787_p7 = pnand %p2785_p5, %p2782_p3 }
  0x28   : > { %2790 = shalt.err (!%p2787_p7)
}
  0x29   : > { %s2791_s15 = scalar_lea.vmem %s3192_s13, 4096  ;;  %p2799_p2 = scmp.lt.s32.totalorder %s3192_s13, %s3192_s13 }
  0x2a   : > { %p2792_p9 = scmp.ne.s32.totalorder %s3192_s13, %s2791_s15  ;;  %p2800_p6 = scmp.lt.s32.totalorder %s2791_s15, %s2791_s15 }
  0x2c   : > { %p2794_p10 = pnand %p2792_p9, %p3213_p13  ;;  %p2801_p12 = por %p2800_p6, %p2799_p2 }
  0x2e   : > { %p2795_p1 = pneg %p2794_p10 }
  0x30   : > { %p2802_p0 = pnand %p2801_p12, %p2795_p1 }
  0x32   : > { %2805 = shalt.err (!%p2802_p0)
}
  0x33   : > { %s5361_s17 = smov 128   ;;  %s5362_s18 = smov 8  }
  0x34   : > { %2681 = dma.hbm_to_vmem [thread:$0]  (!%p3199_p11), %s5482_s1, 4096, %s3192_s13, [#allocation6], %s5361_s17, %s5361_s17, %s5362_s18  }
  0x35   : > { %s2806_s12 = scalar_lea.hbm %s5351_s2, 512 }
  0x36   : > { %p2807_p1 = scmp.ne.s32.totalorder %s5351_s2, %s2806_s12  ;;  %p2813_p10 = scmp.lt.u32.totalorder %s2806_s12, %s5351_s2 }
  0x38   : > { %p2809_p2 = pnand %p2807_p1, %p3213_p13 }
  0x3a   : > { %p2810_p6 = pneg %p2809_p2 }
  0x3c   : > { %p2815_p3 = pnand %p2813_p10, %p2810_p6 }
  0x3e   : > { %2818 = shalt.err (!%p2815_p3)
}
  0x3f   : > { %s2819_s13 = scalar_lea.vmem %s3203_s16, 512  ;;  %p2827_p12 = scmp.lt.s32.totalorder %s3203_s16, %s3203_s16 }
  0x40   : > { %p2820_p5 = scmp.ne.s32.totalorder %s3203_s16, %s2819_s13  ;;  %p2828_p0 = scmp.lt.s32.totalorder %s2819_s13, %s2819_s13 }
  0x42   : > { %p2822_p7 = pnand %p2820_p5, %p3213_p13  ;;  %p2829_p1 = por %p2828_p0, %p2827_p12 }
  0x44   : > { %p2823_p9 = pneg %p2822_p7 }
  0x46   : > { %p2830_p2 = pnand %p2829_p1, %p2823_p9 }
  0x48   : > { %2833 = shalt.err (!%p2830_p2)
}
  0x49   : > { %s3080_s8 = smov 256   ;;  %s3081_s24 = smov 16  }
  0x4a   : > { %2684 = dma.hbm_to_vmem [thread:$0]  (!%p3199_p11), %s5351_s2, 512, %s3203_s16, [#allocation6], %s3080_s8, %s3080_s8, %s3081_s24  }
  0x4b   : > { %s3082_s20 = smov [#allocation8]   ;;  %s2834_s15 = scalar_lea.hbm %s5352_s3, 4096 }
  0x4c   : > { %s286_s21 = sshll.u32 %s3082_s20, 4  ;;  %p2835_p6 = scmp.ne.s32.totalorder %s5352_s3, %s2834_s15  ;;  %s287_s21 = int_to_ptr.vmem [resolvable:$true] %s286_s21 }
  0x4d   : > { %p2841_p5 = scmp.lt.u32.totalorder %s2834_s15, %s5352_s3 }
  0x4e   : > { %p2837_p10 = pnand %p2835_p6, %p3213_p13 }
  0x50   : > { %p2838_p3 = pneg %p2837_p10 }
  0x52   : > { %p2843_p7 = pnand %p2841_p5, %p2838_p3 }
  0x54   : > { %2846 = shalt.err (!%p2843_p7)
}
  0x55   : > { %s2847_s16 = scalar_lea.vmem %s287_s21, 4096  ;;  %p2855_p1 = scmp.lt.s32.totalorder %s287_s21, %s287_s21 }
  0x56   : > { %p2848_p9 = scmp.ne.s32.totalorder %s287_s21, %s2847_s16  ;;  %p2856_p2 = scmp.lt.s32.totalorder %s2847_s16, %s2847_s16 }
  0x58   : > { %p2850_p12 = pnand %p2848_p9, %p3213_p13  ;;  %p2857_p4 = por %p2856_p2, %p2855_p1 }
  0x5a   : > { %p2851_p0 = pneg %p2850_p12 }
  0x5c   : > { %p2858_p8 = pnand %p2857_p4, %p2851_p0 }
  0x5e   : > { %2861 = shalt.err (!%p2858_p8)
}
  0x5f   : > { %s5484_s17 = smov 8   ;;  %s5485_s10 = smov 128  }
  0x60   : > { %2687 = dma.hbm_to_vmem [thread:$0]  (!%p3199_p11), %s5352_s3, 4096, %s287_s21, [#allocation9], %s5485_s10, %s5485_s10, %s5484_s17  }
  0x61   : > { %s44_s22 = sadd.s32 1, %s3070_s28  ;;  %s53_s14 = sadd.s32 1, %s3062_s26 }
  0x62   : > { %p46_p4 = scmp.ge.s32.totalorder %s44_s22, 2  ;;  %p60_p8 = scmp.ne.s32.totalorder %s3062_s26, %s3058_s25 }
  0x63   : > { %p61_p13 = scmp.eq.s32.totalorder %s3074_s29, 0  ;;  %p5487_p10 = scmp.eq.s32.totalorder %s3167_s30, 1 }
  0x64   : > { %s5737_s22 = smov (%p46_p4, %s44_s22), 0  ;;  %p2708_p11 = scmp.lt.s32.totalorder %s3074_s29, 2 }
  0x65   : > { %p3291_p6 = por %p61_p13, %p60_p8  ;;  %p3297_p3 = por %p5487_p10, %p60_p8 }
  0x66   : > { %s48_s23 = ssub.s32 %s3070_s28, %s5737_s22  ;;  %s300_s21 = sand.u32 1, %s3062_s26  }
  0x67   : > { %p51_p5 = scmp.eq.s32.totalorder %s48_s23, 0  ;;  %s2399_s12 = sshll.u32 %s300_s21, 5 }
  0x68   : > { %s2582_s13 = sshll.u32 %s3070_s28, 9  ;;  %s304_s1 = scalar_lea.vmem [#allocation2], %s2399_s12 }
  0x69   : > { %s3306_s15 = scalar_select %p51_p5, %s3062_s26, %s53_s14  }
  0x6a   : > { %s3312_s10 = scalar_lea.hbm %s5349_s0, %s2582_s13  ;;  %s313_s18 = sshll.u32 %s304_s1, 4  ;;  %s3314_s18 = int_to_ptr.vmem [resolvable:$true] %s313_s18 }
  0x6b   : > { %p3318_p7 = pnand %p2708_p11, %p3291_p6  ;;  %s3322_s14 = scalar_lea.sflag [#allocation3], %s300_s21 }
  0x6c   : > { %s2862_s16 = scalar_lea.hbm %s3312_s10, 512  ;;  %s2867_s19 = scalar_lea.hbm %s5349_s0, 1024 }
  0x6d   : > { %p2863_p9 = scmp.ne.s32.totalorder %s3312_s10, %s2862_s16  ;;  %p2864_p12 = pneg %p3318_p7 }
  0x6e   : > { %p2868_p2 = scmp.lt.u32.totalorder %s3312_s10, %s5349_s0  ;;  %p2869_p4 = scmp.lt.u32.totalorder %s2867_s19, %s2862_s16 }
  0x6f   : > { %p2865_p0 = pnand %p2864_p12, %p2863_p9  ;;  %p2871_p13 = scmp.lt.u32.totalorder %s2862_s16, %s3312_s10 }
  0x70   : > { %p2870_p8 = por %p2869_p4, %p2868_p2 }
  0x71   : > { %p2866_p1 = pneg %p2865_p0 }
  0x72   : > { %p2872_p6 = por %p2871_p13, %p2870_p8 }
  0x74   : > { %p2873_p10 = pnand %p2872_p6, %p2866_p1 }
  0x76   : > { %2876 = shalt.err (!%p2873_p10)
}
  0x77   : > { %s2877_s21 = scalar_lea.vmem %s3314_s18, 512  ;;  %s3083_s12 = smov [#allocation2]  }
  0x78   : > { %p2878_p11 = scmp.ne.s32.totalorder %s3314_s18, %s2877_s21  ;;  %s2882_s13 = sshll.u32 %s3083_s12, 4  ;;  %s2883_s13 = int_to_ptr.vmem [resolvable:$false] %s2882_s13 }
  0x79   : > { %s2884_s17 = scalar_lea.vmem %s2883_s13, 1024  ;;  %p2885_p0 = scmp.lt.s32.totalorder %s3314_s18, %s2883_s13 }
  0x7a   : > { %p2880_p5 = pnand %p2878_p11, %p2864_p12  ;;  %p2886_p2 = scmp.lt.s32.totalorder %s2884_s17, %s2877_s21 }
  0x7c   : > { %p2881_p9 = pneg %p2880_p5  ;;  %p2887_p4 = por %p2886_p2, %p2885_p0 }
  0x7e   : > { %p2888_p8 = pnand %p2887_p4, %p2881_p9 }
  0x80   : > { %2891 = shalt.err (!%p2888_p8)
}
  0x81   : > { %2691 = dma.hbm_to_vmem [thread:$0]  (!%p3318_p7), %s3312_s10, 512, %s3314_s18, %s3322_s14, %s3080_s8, %s3080_s8, %s3081_s24  }
  0x82   : > { %p5490_p12 = scmp.ne.s32.totalorder %s5480_s11, 0 }
  0x84   : > { %325 = sbr.rel (%p5490_p12) target bundleno = 922 (0x39a), region = 36 }
  0x8b   : > { %s3356_s16 = sand.u32 1, %s3058_s25   ;;  %p5491_p1 = scmp.ne.s32.totalorder %s5477_s9, 0 }
  0x8c   : > { %s2403_s19 = sshll.u32 %s3356_s16, 5  ;;  %s328_s1 = scalar_lea.sflag [#allocation3], %s3356_s16 }
  0x8d   : > { %s331_s23 = scalar_lea.vmem [#allocation2], %s2403_s19 }
  0x8e   : > { %3029 = dma.done.wait (%p5491_p1), %s328_s1, 512  }
  0x8f   : > { %3031 = vsyncadd (%p5491_p1), %s328_s1, 4294966784  ;;  %p5492_p7 = scmp.eq.s32.totalorder %s3167_s30, 0 }
  0x91   : > { %3033 = dma.done.wait (%p5492_p7), [#allocation6], 4608   ;;  %p5493_p13 = pmov %p5492_p7 }
  0x92   : > { %p5494_p6 = pmov %p5492_p7 }
  0x93   : > { %3035 = vsyncadd (%p5493_p13), [#allocation6], 4294962688 }
  0x94   : > { %3037 = dma.done.wait (%p5494_p6), [#allocation9], 4096   ;;  %p5495_p10 = pmov %p5494_p6 }
  0x95   : > { %v5365_v0 = vmov 0.0   ;;  %v3085_v1 = vmov 0   ;;  %v431_v2 = vld [vmem:[%s331_s23 + $0x8] sm:$0xff]  ;;  %v433_v3 = vld [vmem:[%s331_s23 + $0x18] sm:$0xff]  ;;  %v430_v4 = vld [vmem:[%s331_s23] sm:$0xff]  ;;  %vm520_vm0 = vcmask 130048  }
  0x96   : > { %3039 = vsyncadd (%p5495_p10), [#allocation9], 4294963200  ;;  %681 = vmatprep.mubr.f32.mxu0 %v5365_v0  ;;  %2776 = vset.pattern.permute.xlu0 %v3085_v1  ;;  %v503_v5 = vmul.f32 %v431_v2, %v431_v2  ;;  %v505_v6 = vmul.f32 %v433_v3, %v433_v3  ;;  %v2586_v7 = vpack.c.bf16 %v433_v3, %v431_v2  ;;  %v432_v8 = vld [vmem:[%s331_s23 + $0x10] sm:$0xff]  ;;  %v434_v14 = vld [vmem:[#allocation5] sm:$0xff]  ;;  %s2409_s9 = sshll.u32 %s3356_s16, 8  ;;  %s2408_s8 = sshll.u32 %s3356_s16, 1 }
  0x97   : > { %2777 = vset.pattern.permute.xlu1 %v3085_v1  ;;  %v502_v9 = vmul.f32 %v430_v4, %v430_v4  ;;  %v504_v10 = vmul.f32 %v432_v8, %v432_v8  ;;  %v2588_v11 = vpack.c.bf16 %v432_v8, %v430_v4  ;;  %v435_v15 = vld [vmem:[#allocation5 + $0x8] sm:$0xff]  ;;  %v470_v16 = vld [vmem:[#allocation8] sm:$0xff]  ;;  %v472_v17 = vld [vmem:[#allocation8 + $0x10] sm:$0xff]  ;;  %s4422_s11 = scalar_lea.vmem [#allocation13], %s2409_s9  ;;  %s4953_s24 = scalar_lea.vmem [#allocation11], %s2408_s8 }
  0x98   : > { %v3375_v12 = vadd.f32 %v505_v6, %v503_v5  ;;  %2587 = vmatprep.subr.bf16.mxu0 %v2586_v7  ;;  %876 = vperm.xlu0 %2776, %v470_v16   ;;  %v471_v18 = vld [vmem:[#allocation8 + $0x8] sm:$0xff]  ;;  %v473_v19 = vld [vmem:[#allocation8 + $0x18] sm:$0xff]  ;;  %v436_v20 = vld [vmem:[#allocation5 + $0x10] sm:$0xff]  ;;  %s4991_s10 = scalar_lea.vmem [#allocation14], %s3356_s16  ;;  %s2114_s18 = sand.u32 1, %s3167_s30  }
  0x99   : > { %v3377_v13 = vadd.f32 %v504_v10, %v502_v9  ;;  %2589 = vmatpush1.bf16.msra.mxu0 %v2588_v11  ;;  %886 = vperm.xlu1 %2777, %v472_v17   ;;  %v474_v21 = vld [vmem:[#allocation8 + $0x20] sm:$0xff]  ;;  %v475_v22 = vld [vmem:[#allocation8 + $0x28] sm:$0xff]  ;;  %v437_v23 = vld [vmem:[#allocation5 + $0x18] sm:$0xff]  ;;  %s2584_s14 = sshll.u32 %s3066_s27, 5  ;;  %s2158_s17 = sshll.u32 %s4953_s24, 4  ;;  %s5123_s17 = int_to_ptr.vmem [resolvable:$true] %s2158_s17 }
  0x9a   : > { %v476_v24 = vld [vmem:[#allocation8 + $0x30] sm:$0xff]  ;;  %v477_v25 = vld [vmem:[#allocation8 + $0x38] sm:$0xff]  ;;  %v438_v26 = vld [vmem:[#allocation5 + $0x20] sm:$0xff]  ;;  %s5118_s13 = scalar_lea.hbm %s5354_s5, %s2584_s14  ;;  %s5126_s30 = scalar_lea.sflag [#allocation12], %s2114_s18 }
  0x9b   : > { %v478_v27 = vld [vmem:[#allocation8 + $0x40] sm:$0xff]  ;;  %v479_v28 = vld [vmem:[#allocation8 + $0x48] sm:$0xff]  ;;  %v480_v30 = vld [vmem:[#allocation8 + $0x50] sm:$0xff]  ;;  %v507_v17 = vrot.slane %v3377_v13, 4  ;;  %s2892_s1 = scalar_lea.vmem %s5123_s17, 32  ;;  %s3088_s23 = smov [#allocation11]  }
  0x9c   : > { %2410 = vmatmul.mubr.msk.f32.vlgmr.msra.gmra.mrb[0].mxu0 %vm520_vm0, %v434_v14  ;;  %881 = vperm.xlu0 %2776, %v471_v18   ;;  %v439_v29 = vld [vmem:[#allocation5 + $0x28] sm:$0xff]  ;;  %v481_v31 = vld [vmem:[#allocation8 + $0x58] sm:$0xff]  ;;  %v440_v32 = vld [vmem:[#allocation5 + $0x30] sm:$0xff]  ;;  %v514_v18 = vrot.slane %v3375_v12, 4  ;;  %p2893_p11 = scmp.ne.s32.totalorder %s5123_s17, %s2892_s1  ;;  %s2896_s9 = sshll.u32 %s3088_s23, 4  ;;  %s2897_s9 = int_to_ptr.vmem [resolvable:$false] %s2896_s9 }
  0x9d   : > { %687 = vmatprep.mubr.f32.mxu0 %v5365_v0  ;;  %891 = vperm.xlu1 %2777, %v473_v19   ;;  %v482_v33 = vld [vmem:[#allocation8 + $0x60] sm:$0xff]  ;;  %v483_v34 = vld [vmem:[#allocation8 + $0x68] sm:$0xff]  ;;  %v441_v35 = vld [vmem:[#allocation5 + $0x38] sm:$0xff]  ;;  %v508_v19 = vadd.f32 %v507_v17, %v3377_v13  ;;  %s2898_s8 = scalar_lea.vmem %s2897_s9, 64  ;;  %p2899_p0 = scmp.lt.s32.totalorder %s5123_s17, %s2897_s9 }
  0x9e   : > { %v484_v36 = vld [vmem:[#allocation8 + $0x70] sm:$0xff]  ;;  %v485_v37 = vld [vmem:[#allocation8 + $0x78] sm:$0xff]  ;;  %v442_v38 = vld [vmem:[#allocation5 + $0x40] sm:$0xff]  ;;  %p2894_p5 = pnand %p2893_p11, %p3297_p3  ;;  %p2900_p2 = scmp.lt.s32.totalorder %s2898_s8, %s2892_s1 }
  0x9f   : > { %v486_v39 = vld [vmem:[#allocation8 + $0x80] sm:$0xff]  ;;  %v487_v40 = vld [vmem:[#allocation8 + $0x88] sm:$0xff]  ;;  %v488_v42 = vld [vmem:[#allocation8 + $0x90] sm:$0xff] }
  0xa0   : > { %2411 = vmatmul.mubr.msk.f32.gmra.mrb[2].mxu0 %vm520_vm0, %v435_v15  ;;  %896 = vperm.xlu0 %2776, %v474_v21   ;;  %v443_v41 = vld [vmem:[#allocation5 + $0x48] sm:$0xff]  ;;  %v489_v43 = vld [vmem:[#allocation8 + $0x98] sm:$0xff]  ;;  %v444_v44 = vld [vmem:[#allocation5 + $0x50] sm:$0xff]  ;;  %v509_v21 = vrot.slane %v508_v19, 2  ;;  %p2895_p9 = pneg %p2894_p5  ;;  %p2901_p4 = por %p2900_p2, %p2899_p0 }
  0xa1   : > { %693 = vmatprep.mubr.f32.mxu0 %v5365_v0  ;;  %901 = vperm.xlu1 %2777, %v475_v22   ;;  %v490_v45 = vld [vmem:[#allocation8 + $0xa0] sm:$0xff]  ;;  %v491_v46 = vld [vmem:[#allocation8 + $0xa8] sm:$0xff]  ;;  %v445_v47 = vld [vmem:[#allocation5 + $0x58] sm:$0xff] }
  0xa2   : > { %v492_v48 = vld [vmem:[#allocation8 + $0xb0] sm:$0xff]  ;;  %v493_v49 = vld [vmem:[#allocation8 + $0xb8] sm:$0xff]  ;;  %v446_v50 = vld [vmem:[#allocation5 + $0x60] sm:$0xff]  ;;  %p2902_p8 = pnand %p2901_p4, %p2895_p9 }
  0xa3   : > { %v494_v51 = vld [vmem:[#allocation8 + $0xc0] sm:$0xff]  ;;  %v495_v52 = vld [vmem:[#allocation8 + $0xc8] sm:$0xff]  ;;  %v496_v54 = vld [vmem:[#allocation8 + $0xd0] sm:$0xff] }
  0xa4   : > { %2412 = vmatmul.mubr.msk.f32.gmra.mrb[4].mxu0 %vm520_vm0, %v436_v20  ;;  %906 = vperm.xlu0 %2776, %v476_v24   ;;  %v447_v53 = vld [vmem:[#allocation5 + $0x68] sm:$0xff]  ;;  %v497_v55 = vld [vmem:[#allocation8 + $0xd8] sm:$0xff]  ;;  %v448_v56 = vld [vmem:[#allocation5 + $0x70] sm:$0xff]  ;;  %v515_v20 = vadd.f32 %v514_v18, %v3375_v12 }
  0xa5   : > { %699 = vmatprep.mubr.f32.mxu0 %v5365_v0  ;;  %911 = vperm.xlu1 %2777, %v477_v25   ;;  %v498_v57 = vld [vmem:[#allocation8 + $0xe0] sm:$0xff]  ;;  %v499_v58 = vld [vmem:[#allocation8 + $0xe8] sm:$0xff]  ;;  %v449_v59 = vld [vmem:[#allocation5 + $0x78] sm:$0xff] }
  0xa6   : > { %v500_v60 = vld [vmem:[#allocation8 + $0xf0] sm:$0xff]  ;;  %v501_v61 = vld [vmem:[#allocation8 + $0xf8] sm:$0xff]  ;;  %v450_v62 = vld [vmem:[#allocation5 + $0x80] sm:$0xff]  ;;  %v516_v22 = vrot.slane %v515_v20, 2 }
  0xa7   : > { %v451_v63 = vld [vmem:[#allocation5 + $0x88] sm:$0xff]  ;;  %v452_v1 = vld [vmem:[#allocation5 + $0x90] sm:$0xff]  ;;  %v453_v2 = vld [vmem:[#allocation5 + $0x98] sm:$0xff] }
  0xa8   : > { %2413 = vmatmul.mubr.msk.f32.gmra.mrb[6].mxu0 %vm520_vm0, %v437_v23  ;;  %916 = vperm.xlu0 %2776, %v478_v27   ;;  %v454_v3 = vld [vmem:[#allocation5 + $0xa0] sm:$0xff]  ;;  %v455_v4 = vld [vmem:[#allocation5 + $0xa8] sm:$0xff]  ;;  %v456_v5 = vld [vmem:[#allocation5 + $0xb0] sm:$0xff]  ;;  %v510_v23 = vadd.f32 %v509_v21, %v508_v19  ;;  %v517_v24 = vadd.f32 %v516_v22, %v515_v20 }
  0xa9   : > { %705 = vmatprep.mubr.f32.mxu0 %v5365_v0  ;;  %921 = vperm.xlu1 %2777, %v479_v28   ;;  %v457_v6 = vld [vmem:[#allocation5 + $0xb8] sm:$0xff]  ;;  %v458_v7 = vld [vmem:[#allocation5 + $0xc0] sm:$0xff]  ;;  %v459_v8 = vld [vmem:[#allocation5 + $0xc8] sm:$0xff] }
  0xaa   : > { %v460_v9 = vld [vmem:[#allocation5 + $0xd0] sm:$0xff]  ;;  %v461_v10 = vld [vmem:[#allocation5 + $0xd8] sm:$0xff]  ;;  %v462_v11 = vld [vmem:[#allocation5 + $0xe0] sm:$0xff]  ;;  %v511_v25 = vrot.slane %v510_v23, 1 }
  0xab   : > { %v463_v14 = vld [vmem:[#allocation5 + $0xe8] sm:$0xff]  ;;  %v464_v15 = vld [vmem:[#allocation5 + $0xf0] sm:$0xff]  ;;  %v465_v16 = vld [vmem:[#allocation5 + $0xf8] sm:$0xff] }
  0xac   : > { %2414 = vmatmul.mubr.msk.f32.gmra.mrb[8].mxu0 %vm520_vm0, %v438_v26  ;;  %926 = vperm.xlu0 %2776, %v480_v30   ;;  %v518_v26 = vrot.slane %v517_v24, 1  ;;  %v3446_v28 = vadd.f32 %v511_v25, %v510_v23 }
  0xad   : > { %711 = vmatprep.mubr.f32.mxu0 %v5365_v0  ;;  %931 = vperm.xlu1 %2777, %v481_v31  }
  0xb0   : > { %2415 = vmatmul.mubr.msk.f32.gmra.mrb[10].mxu0 %vm520_vm0, %v439_v29  ;;  %936 = vperm.xlu0 %2776, %v482_v33   ;;  %v3448_v29 = vadd.f32 %v518_v26, %v517_v24 }
  0xb1   : > { %717 = vmatprep.mubr.f32.mxu0 %v5365_v0  ;;  %941 = vperm.xlu1 %2777, %v483_v34  }
  0xb4   : > { %2416 = vmatmul.mubr.msk.f32.gmra.mrb[12].mxu0 %vm520_vm0, %v440_v32  ;;  %946 = vperm.xlu0 %2776, %v484_v36  }
  0xb5   : > { %723 = vmatprep.mubr.f32.mxu0 %v5365_v0  ;;  %951 = vperm.xlu1 %2777, %v485_v37  }
  0xb8   : > { %2417 = vmatmul.mubr.msk.f32.gmra.mrb[14].mxu0 %vm520_vm0, %v441_v35  ;;  %956 = vperm.xlu0 %2776, %v486_v39  }
  0xb9   : > { %729 = vmatprep.mubr.f32.mxu0 %v5365_v0  ;;  %961 = vperm.xlu1 %2777, %v487_v40  }
  0xbc   : > { %2418 = vmatmul.mubr.msk.f32.gmra.mrb[16].mxu0 %vm520_vm0, %v442_v38  ;;  %966 = vperm.xlu0 %2776, %v488_v42  }
  0xbd   : > { %735 = vmatprep.mubr.f32.mxu0 %v5365_v0  ;;  %971 = vperm.xlu1 %2777, %v489_v43  }
  0xc0   : > { %2419 = vmatmul.mubr.msk.f32.gmra.mrb[18].mxu0 %vm520_vm0, %v443_v41  ;;  %976 = vperm.xlu0 %2776, %v490_v45  }
  0xc1   : > { %741 = vmatprep.mubr.f32.mxu0 %v5365_v0  ;;  %981 = vperm.xlu1 %2777, %v491_v46  }
  0xc4   : > { %2420 = vmatmul.mubr.msk.f32.gmra.mrb[20].mxu0 %vm520_vm0, %v444_v44  ;;  %986 = vperm.xlu0 %2776, %v492_v48  }
  0xc5   : > { %747 = vmatprep.mubr.f32.mxu0 %v5365_v0  ;;  %991 = vperm.xlu1 %2777, %v493_v49  }
  0xc8   : > { %2421 = vmatmul.mubr.msk.f32.gmra.mrb[22].mxu0 %vm520_vm0, %v445_v47  ;;  %996 = vperm.xlu0 %2776, %v494_v51  }
  0xc9   : > { %753 = vmatprep.mubr.f32.mxu0 %v5365_v0  ;;  %1001 = vperm.xlu1 %2777, %v495_v52  }
  0xcc   : > { %2422 = vmatmul.mubr.msk.f32.gmra.mrb[24].mxu0 %vm520_vm0, %v446_v50  ;;  %1006 = vperm.xlu0 %2776, %v496_v54  }
  0xcd   : > { %759 = vmatprep.mubr.f32.mxu0 %v5365_v0  ;;  %1011 = vperm.xlu1 %2777, %v497_v55  }
  0xd0   : > { %2423 = vmatmul.mubr.msk.f32.gmra.mrb[26].mxu0 %vm520_vm0, %v447_v53  ;;  %1016 = vperm.xlu0 %2776, %v498_v57  }
  0xd1   : > { %765 = vmatprep.mubr.f32.mxu0 %v5365_v0  ;;  %1021 = vperm.xlu1 %2777, %v499_v58  }
  0xd4   : > { %2424 = vmatmul.mubr.msk.f32.gmra.mrb[28].mxu0 %vm520_vm0, %v448_v56  ;;  %1026 = vperm.xlu0 %2776, %v500_v60  }
  0xd5   : > { %771 = vmatprep.mubr.f32.mxu0 %v5365_v0  ;;  %1031 = vperm.xlu1 %2777, %v501_v61  }
  0xd8   : > { %2425 = vmatmul.mubr.msk.f32.gmra.mrb[30].mxu0 %vm520_vm0, %v449_v59 }
  0xd9   : > { %777 = vmatprep.mubr.f32.mxu0 %v5365_v0 }
  0xdc   : > { %2426 = vmatmul.mubr.msk.f32.gmra.mrb[32].mxu0 %vm520_vm0, %v450_v62 }
  0xdd   : > { %783 = vmatprep.mubr.f32.mxu0 %v5365_v0 }
  0xe0   : > { %2427 = vmatmul.mubr.msk.f32.gmra.mrb[34].mxu0 %vm520_vm0, %v451_v63 }
  0xe1   : > { %789 = vmatprep.mubr.f32.mxu0 %v5365_v0 }
  0xe4   : > { %2428 = vmatmul.mubr.msk.f32.gmra.mrb[36].mxu0 %vm520_vm0, %v452_v1 }
  0xe5   : > { %795 = vmatprep.mubr.f32.mxu0 %v5365_v0 }
  0xe8   : > { %2429 = vmatmul.mubr.msk.f32.gmra.mrb[38].mxu0 %vm520_vm0, %v453_v2 }
  0xe9   : > { %801 = vmatprep.mubr.f32.mxu0 %v5365_v0 }
  0xec   : > { %2430 = vmatmul.mubr.msk.f32.gmra.mrb[40].mxu0 %vm520_vm0, %v454_v3 }
  0xed   : > { %807 = vmatprep.mubr.f32.mxu0 %v5365_v0 }
  0xf0   : > { %2431 = vmatmul.mubr.msk.f32.gmra.mrb[42].mxu0 %vm520_vm0, %v455_v4 }
  0xf1   : > { %813 = vmatprep.mubr.f32.mxu0 %v5365_v0 }
  0xf4   : > { %2432 = vmatmul.mubr.msk.f32.gmra.mrb[44].mxu0 %vm520_vm0, %v456_v5 }
  0xf5   : > { %819 = vmatprep.mubr.f32.mxu0 %v5365_v0 }
  0xf8   : > { %2433 = vmatmul.mubr.msk.f32.gmra.mrb[46].mxu0 %vm520_vm0, %v457_v6 }
  0xf9   : > { %825 = vmatprep.mubr.f32.mxu0 %v5365_v0 }
  0xfc   : > { %2434 = vmatmul.mubr.msk.f32.gmra.mrb[48].mxu0 %vm520_vm0, %v458_v7 }
  0xfd   : > { %831 = vmatprep.mubr.f32.mxu0 %v5365_v0 }
 0x100   : > { %2435 = vmatmul.mubr.msk.f32.gmra.mrb[50].mxu0 %vm520_vm0, %v459_v8 }
 0x101   : > { %837 = vmatprep.mubr.f32.mxu0 %v5365_v0 }
 0x104   : > { %2436 = vmatmul.mubr.msk.f32.gmra.mrb[52].mxu0 %vm520_vm0, %v460_v9 }
 0x105   : > { %843 = vmatprep.mubr.f32.mxu0 %v5365_v0 }
 0x108   : > { %2437 = vmatmul.mubr.msk.f32.gmra.mrb[54].mxu0 %vm520_vm0, %v461_v10 }
 0x109   : > { %849 = vmatprep.mubr.f32.mxu0 %v5365_v0 }
 0x10c   : > { %2438 = vmatmul.mubr.msk.f32.gmra.mrb[56].mxu0 %vm520_vm0, %v462_v11 }
 0x10d   : > { %855 = vmatprep.mubr.f32.mxu0 %v5365_v0 }
 0x110   : > { %2439 = vmatmul.mubr.msk.f32.gmra.mrb[58].mxu0 %vm520_vm0, %v463_v14 }
 0x111   : > { %861 = vmatprep.mubr.f32.mxu0 %v5365_v0 }
 0x114   : > { %2440 = vmatmul.mubr.msk.f32.gmra.mrb[60].mxu0 %vm520_vm0, %v464_v15 }
 0x115   : > { %867 = vmatprep.mubr.f32.mxu0 %v5365_v0 }
 0x117   : > { %v877_v27 = vpop.permute.xlu0 %876 }
 0x118   : > { %2441 = vmatmul.mubr.msk.f32.gmra.mrb[62].mxu0 %vm520_vm0, %v465_v16  ;;  %v1034_v30 = vadd.f32 %v877_v27, %v3446_v28  ;;  %v1035_v31 = vadd.f32 %v877_v27, %v3448_v29  ;;  %v887_v40 = vpop.permute.xlu1 %886 }
 0x119   : > { %v1038_v45 = vadd.f32 %v887_v40, %v3446_v28  ;;  %v1039_v46 = vadd.f32 %v887_v40, %v3448_v29 }
 0x11b   : > { %v882_v33 = vpop.permute.xlu0 %881 }
 0x11c   : > { %v1036_v36 = vadd.f32 %v882_v33, %v3446_v28  ;;  %v1037_v38 = vadd.f32 %v882_v33, %v3448_v29  ;;  %v892_v51 = vpop.permute.xlu1 %891 }
 0x11d   : > { %v1040_v54 = vadd.f32 %v892_v51, %v3446_v28  ;;  %v1041_v55 = vadd.f32 %v892_v51, %v3448_v29 }
 0x11f   : > { %v897_v62 = vpop.permute.xlu0 %896 }
 0x120   : > { %v1042_v2 = vadd.f32 %v897_v62, %v3446_v28  ;;  %v1043_v3 = vadd.f32 %v897_v62, %v3448_v29  ;;  %v902_v9 = vpop.permute.xlu1 %901 }
 0x121   : > { %v1044_v14 = vadd.f32 %v902_v9, %v3446_v28  ;;  %v1045_v16 = vadd.f32 %v902_v9, %v3448_v29 }
 0x123   : > { %v907_v22 = vpop.permute.xlu0 %906 }
 0x124   : > { %v1046_v25 = vadd.f32 %v907_v22, %v3446_v28  ;;  %v1047_v27 = vadd.f32 %v907_v22, %v3448_v29 }
 0x16f   : > { %v683_v32 = vpop.f32.mrb[0].mxu0 }
 0x170   : > { %v1098_v13 = vmul.f32 2.0, %v683_v32  ;;  %v685_v34 = vpop.f32.mrb[1].mxu0 }
 0x171   : > { %v1099_v12 = vmul.f32 2.0, %v685_v34  ;;  %v912_v34 = vpop.permute.xlu1 %911 }
 0x172   : > { %v3452_v35 = vsub.f32 %v1034_v30, %v1098_v13  ;;  %v1049_v40 = vadd.f32 %v912_v34, %v3448_v29 }
 0x173   : > { %v3455_v37 = vsub.f32 %v1035_v31, %v1099_v12  ;;  %v689_v39 = vpop.f32.mrb[2].mxu0 }
 0x174   : > { %v1100_v41 = vmul.f32 2.0, %v689_v39  ;;  %v691_v42 = vpop.f32.mrb[3].mxu0 }
 0x175   : > { %v1101_v43 = vmul.f32 2.0, %v691_v42 }
 0x176   : > { %v3458_v44 = vsub.f32 %v1036_v36, %v1100_v41 }
 0x177   : > { %v3462_v47 = vsub.f32 %v1037_v38, %v1101_v43  ;;  %v695_v48 = vpop.f32.mrb[4].mxu0  ;;  %v1048_v38 = vadd.f32 %v912_v34, %v3446_v28 }
 0x178   : > { %v1102_v49 = vmul.f32 2.0, %v695_v48  ;;  %v697_v50 = vpop.f32.mrb[5].mxu0  ;;  %v917_v48 = vpop.permute.xlu0 %916 }
 0x179   : > { %v1103_v52 = vmul.f32 2.0, %v697_v50  ;;  %v1050_v51 = vadd.f32 %v917_v48, %v3446_v28 }
 0x17a   : > { %v3464_v53 = vsub.f32 %v1038_v45, %v1102_v49 }
 0x17b   : > { %v3468_v56 = vsub.f32 %v1039_v46, %v1103_v52  ;;  %v701_v57 = vpop.f32.mrb[6].mxu0 }
 0x17c   : > { %v1226_v58 = vmin.f32 %v3452_v35, %v3464_v53  ;;  %v1104_v59 = vmul.f32 2.0, %v701_v57  ;;  %v703_v60 = vpop.f32.mrb[7].mxu0 }
 0x17d   : > { %v1263_v61 = vmin.f32 %v3455_v37, %v3468_v56  ;;  %v1105_v63 = vmul.f32 2.0, %v703_v60 }
 0x17e   : > { %v3474_v1 = vsub.f32 %v1040_v54, %v1104_v59  ;;  %v1051_v54 = vadd.f32 %v917_v48, %v3448_v29 }
 0x17f   : > { %v3478_v4 = vsub.f32 %v1041_v55, %v1105_v63  ;;  %v707_v5 = vpop.f32.mrb[8].mxu0 }
 0x180   : > { %v1227_v6 = vmin.f32 %v3458_v44, %v3474_v1  ;;  %v1106_v7 = vmul.f32 2.0, %v707_v5  ;;  %v709_v8 = vpop.f32.mrb[9].mxu0 }
 0x181   : > { %v1264_v10 = vmin.f32 %v3462_v47, %v3478_v4  ;;  %v1107_v11 = vmul.f32 2.0, %v709_v8 }
 0x182   : > { %v3485_v15 = vsub.f32 %v1042_v2, %v1106_v7 }
 0x183   : > { %v3488_v17 = vsub.f32 %v1043_v3, %v1107_v11  ;;  %v713_v18 = vpop.f32.mrb[10].mxu0  ;;  %v927_v11 = vpop.permute.xlu0 %926 }
 0x184   : > { %v1228_v19 = vmin.f32 %v1226_v58, %v3485_v15  ;;  %v1108_v20 = vmul.f32 2.0, %v713_v18  ;;  %v715_v21 = vpop.f32.mrb[11].mxu0  ;;  %v1054_v18 = vadd.f32 %v927_v11, %v3446_v28 }
 0x185   : > { %v1265_v23 = vmin.f32 %v1263_v61, %v3488_v17  ;;  %v1109_v24 = vmul.f32 2.0, %v715_v21  ;;  %v922_v61 = vpop.permute.xlu1 %921 }
 0x186   : > { %v3493_v26 = vsub.f32 %v1044_v14, %v1108_v20  ;;  %v1052_v2 = vadd.f32 %v922_v61, %v3446_v28  ;;  %v1053_v5 = vadd.f32 %v922_v61, %v3448_v29  ;;  %v1055_v20 = vadd.f32 %v927_v11, %v3448_v29 }
 0x187   : > { %v3496_v30 = vsub.f32 %v1045_v16, %v1109_v24  ;;  %v719_v31 = vpop.f32.mrb[12].mxu0 }
 0x188   : > { %v1229_v32 = vmin.f32 %v1227_v6, %v3493_v26  ;;  %v1110_v33 = vmul.f32 2.0, %v719_v31  ;;  %v721_v13 = vpop.f32.mrb[13].mxu0 }
 0x189   : > { %v1266_v12 = vmin.f32 %v1264_v10, %v3496_v30  ;;  %v1111_v36 = vmul.f32 2.0, %v721_v13 }
 0x18a   : > { %v3501_v39 = vsub.f32 %v1046_v25, %v1110_v33 }
 0x18b   : > { %v3504_v41 = vsub.f32 %v1047_v27, %v1111_v36  ;;  %v725_v42 = vpop.f32.mrb[14].mxu0  ;;  %v932_v27 = vpop.permute.xlu1 %931 }
 0x18c   : > { %v1230_v43 = vmin.f32 %v1228_v19, %v3501_v39  ;;  %v1112_v45 = vmul.f32 2.0, %v725_v42  ;;  %v727_v46 = vpop.f32.mrb[15].mxu0  ;;  %v1056_v33 = vadd.f32 %v932_v27, %v3446_v28  ;;  %v1057_v34 = vadd.f32 %v932_v27, %v3448_v29 }
 0x18d   : > { %v1267_v49 = vmin.f32 %v1265_v23, %v3504_v41  ;;  %v1113_v50 = vmul.f32 2.0, %v727_v46 }
 0x18e   : > { %v3509_v52 = vsub.f32 %v1048_v38, %v1112_v45 }
 0x18f   : > { %v3512_v55 = vsub.f32 %v1049_v40, %v1113_v50  ;;  %v731_v57 = vpop.f32.mrb[16].mxu0 }
 0x190   : > { %v1231_v58 = vmin.f32 %v1229_v32, %v3509_v52  ;;  %v1114_v59 = vmul.f32 2.0, %v731_v57  ;;  %v733_v60 = vpop.f32.mrb[17].mxu0 }
 0x191   : > { %v1268_v62 = vmin.f32 %v1266_v12, %v3512_v55  ;;  %v1115_v63 = vmul.f32 2.0, %v733_v60  ;;  %v942_v60 = vpop.permute.xlu1 %941 }
 0x192   : > { %v3517_v3 = vsub.f32 %v1050_v51, %v1114_v59 }
 0x193   : > { %v3520_v6 = vsub.f32 %v1051_v54, %v1115_v63  ;;  %v737_v7 = vpop.f32.mrb[18].mxu0  ;;  %v1060_v63 = vadd.f32 %v942_v60, %v3446_v28 }
 0x194   : > { %v1232_v8 = vmin.f32 %v1230_v43, %v3517_v3  ;;  %v1116_v9 = vmul.f32 2.0, %v737_v7  ;;  %v739_v10 = vpop.f32.mrb[19].mxu0  ;;  %v937_v43 = vpop.permute.xlu0 %936 }
 0x195   : > { %v1269_v14 = vmin.f32 %v1267_v49, %v3520_v6  ;;  %v1117_v16 = vmul.f32 2.0, %v739_v10  ;;  %v1058_v48 = vadd.f32 %v937_v43, %v3446_v28  ;;  %v1059_v50 = vadd.f32 %v937_v43, %v3448_v29 }
 0x196   : > { %v3525_v19 = vsub.f32 %v1052_v2, %v1116_v9 }
 0x197   : > { %v3528_v21 = vsub.f32 %v1053_v5, %v1117_v16  ;;  %v743_v22 = vpop.f32.mrb[20].mxu0  ;;  %v1061_v5 = vadd.f32 %v942_v60, %v3448_v29 }
 0x198   : > { %v1233_v23 = vmin.f32 %v1231_v58, %v3525_v19  ;;  %v1118_v24 = vmul.f32 2.0, %v743_v22  ;;  %v745_v25 = vpop.f32.mrb[21].mxu0 }
 0x199   : > { %5496 = vst [vmem:[#allocation24_spill] sm:$0xff] %v3528_v21  ;;  %v1270_v31 = vmin.f32 %v1268_v62, %v3528_v21  ;;  %v1119_v32 = vmul.f32 2.0, %v745_v25 }
 0x19a   : > { %v3533_v13 = vsub.f32 %v1054_v18, %v1118_v24 }
 0x19b   : > { %v3536_v12 = vsub.f32 %v1055_v20, %v1119_v32  ;;  %v749_v36 = vpop.f32.mrb[22].mxu0 }
 0x19c   : > { %v1234_v38 = vmin.f32 %v1232_v8, %v3533_v13  ;;  %v1120_v40 = vmul.f32 2.0, %v749_v36  ;;  %v751_v42 = vpop.f32.mrb[23].mxu0 }
 0x19d   : > { %5497 = vst [vmem:[#allocation25_spill] sm:$0xff] %v3536_v12  ;;  %v1271_v45 = vmin.f32 %v1269_v14, %v3536_v12  ;;  %v1121_v46 = vmul.f32 2.0, %v751_v42  ;;  %v947_v14 = vpop.permute.xlu0 %946 }
 0x19e   : > { %v3541_v49 = vsub.f32 %v1056_v33, %v1120_v40  ;;  %v1062_v20 = vadd.f32 %v947_v14, %v3446_v28  ;;  %v952_v33 = vpop.permute.xlu1 %951 }
 0x19f   : > { %v3544_v51 = vsub.f32 %v1057_v34, %v1121_v46  ;;  %v755_v54 = vpop.f32.mrb[24].mxu0  ;;  %v1065_v42 = vadd.f32 %v952_v33, %v3448_v29 }
 0x1a0   : > { %v1235_v57 = vmin.f32 %v1233_v23, %v3541_v49  ;;  %v1122_v58 = vmul.f32 2.0, %v755_v54  ;;  %v757_v59 = vpop.f32.mrb[25].mxu0  ;;  %v1063_v23 = vadd.f32 %v947_v14, %v3448_v29 }
 0x1a1   : > { %5498 = vst [vmem:[#allocation26_spill] sm:$0xff] %v3544_v51  ;;  %v1272_v61 = vmin.f32 %v1270_v31, %v3544_v51  ;;  %v1123_v62 = vmul.f32 2.0, %v757_v59  ;;  %v957_v54 = vpop.permute.xlu0 %956 }
 0x1a2   : > { %v3549_v2 = vsub.f32 %v1058_v48, %v1122_v58  ;;  %v1066_v59 = vadd.f32 %v957_v54, %v3446_v28 }
 0x1a3   : > { %v3552_v7 = vsub.f32 %v1059_v50, %v1123_v62  ;;  %v761_v8 = vpop.f32.mrb[26].mxu0 }
 0x1a4   : > { %v1236_v9 = vmin.f32 %v1234_v38, %v3549_v2  ;;  %v1124_v10 = vmul.f32 2.0, %v761_v8  ;;  %v763_v11 = vpop.f32.mrb[27].mxu0  ;;  %v1064_v38 = vadd.f32 %v952_v33, %v3446_v28 }
 0x1a5   : > { %5499 = vst [vmem:[#allocation27_spill] sm:$0xff] %v3552_v7  ;;  %v1273_v16 = vmin.f32 %v1271_v45, %v3552_v7  ;;  %v1125_v18 = vmul.f32 2.0, %v763_v11 }
 0x1a6   : > { %v3557_v22 = vsub.f32 %v1060_v63, %v1124_v10 }
 0x1a7   : > { %v3560_v24 = vsub.f32 %v1061_v5, %v1125_v18  ;;  %v767_v25 = vpop.f32.mrb[28].mxu0 }
 0x1a8   : > { %v1237_v27 = vmin.f32 %v1235_v57, %v3557_v22  ;;  %v1126_v31 = vmul.f32 2.0, %v767_v25  ;;  %v769_v32 = vpop.f32.mrb[29].mxu0 }
 0x1a9   : > { %5500 = vst [vmem:[#allocation28_spill] sm:$0xff] %v3560_v24  ;;  %v1274_v34 = vmin.f32 %v1272_v61, %v3560_v24  ;;  %v1127_v36 = vmul.f32 2.0, %v769_v32  ;;  %v1067_v61 = vadd.f32 %v957_v54, %v3448_v29 }
 0x1aa   : > { %v3565_v40 = vsub.f32 %v1062_v20, %v1126_v31 }
 0x1ab   : > { %v3568_v43 = vsub.f32 %v1063_v23, %v1127_v36  ;;  %v773_v45 = vpop.f32.mrb[30].mxu0 }
 0x1ac   : > { %v1238_v46 = vmin.f32 %v1236_v9, %v3565_v40  ;;  %v1128_v48 = vmul.f32 2.0, %v773_v45  ;;  %v775_v50 = vpop.f32.mrb[31].mxu0 }
 0x1ad   : > { %5501 = vst [vmem:[#allocation29_spill] sm:$0xff] %v3568_v43  ;;  %v1275_v57 = vmin.f32 %v1273_v16, %v3568_v43  ;;  %v1129_v58 = vmul.f32 2.0, %v775_v50  ;;  %v962_v16 = vpop.permute.xlu1 %961 }
 0x1ae   : > { %v3573_v60 = vsub.f32 %v1064_v38, %v1128_v48  ;;  %v1068_v23 = vadd.f32 %v962_v16, %v3446_v28  ;;  %v1069_v33 = vadd.f32 %v962_v16, %v3448_v29 }
 0x1af   : > { %v3576_v62 = vsub.f32 %v1065_v42, %v1129_v58  ;;  %v779_v63 = vpop.f32.mrb[32].mxu0 }
 0x1b0   : > { %v1239_v5 = vmin.f32 %v1237_v27, %v3573_v60  ;;  %v1130_v8 = vmul.f32 2.0, %v779_v63  ;;  %v781_v10 = vpop.f32.mrb[33].mxu0 }
 0x1b1   : > { %5502 = vst [vmem:[#allocation30_spill] sm:$0xff] %v3576_v62  ;;  %v1276_v9 = vmin.f32 %v1274_v34, %v3576_v62  ;;  %v1131_v11 = vmul.f32 2.0, %v781_v10  ;;  %v967_v34 = vpop.permute.xlu0 %966 }
 0x1b2   : > { %v3580_v14 = vsub.f32 %v1066_v59, %v1130_v8  ;;  %v1070_v48 = vadd.f32 %v967_v34, %v3446_v28 }
 0x1b3   : > { %v3582_v18 = vsub.f32 %v1067_v61, %v1131_v11  ;;  %v785_v20 = vpop.f32.mrb[34].mxu0 }
 0x1b4   : > { %v1240_v25 = vmin.f32 %v1238_v46, %v3580_v14  ;;  %v1132_v31 = vmul.f32 2.0, %v785_v20  ;;  %v787_v32 = vpop.f32.mrb[35].mxu0  ;;  %v1071_v46 = vadd.f32 %v967_v34, %v3448_v29 }
 0x1b5   : > { %5503 = vst [vmem:[#allocation31_spill] sm:$0xff] %v3582_v18  ;;  %v1277_v27 = vmin.f32 %v1275_v57, %v3582_v18  ;;  %v1133_v36 = vmul.f32 2.0, %v787_v32  ;;  %v972_v57 = vpop.permute.xlu1 %971 }
 0x1b6   : > { %v3588_v38 = vsub.f32 %v1068_v23, %v1132_v31  ;;  %v1072_v11 = vadd.f32 %v972_v57, %v3446_v28 }
 0x1b7   : > { %v3590_v42 = vsub.f32 %v1069_v33, %v1133_v36  ;;  %v791_v45 = vpop.f32.mrb[36].mxu0 }
 0x1b8   : > { %v1241_v50 = vmin.f32 %v1239_v5, %v3588_v38  ;;  %v1134_v54 = vmul.f32 2.0, %v791_v45  ;;  %v793_v58 = vpop.f32.mrb[37].mxu0  ;;  %v1073_v5 = vadd.f32 %v972_v57, %v3448_v29 }
 0x1b9   : > { %5504 = vst [vmem:[#allocation32_spill] sm:$0xff] %v3590_v42  ;;  %v1278_v59 = vmin.f32 %v1276_v9, %v3590_v42  ;;  %v1135_v61 = vmul.f32 2.0, %v793_v58  ;;  %v977_v9 = vpop.permute.xlu0 %976 }
 0x1ba   : > { %v3596_v63 = vsub.f32 %v1070_v48, %v1134_v54  ;;  %v1074_v45 = vadd.f32 %v977_v9, %v3446_v28 }
 0x1bb   : > { %v3598_v8 = vsub.f32 %v1071_v46, %v1135_v61  ;;  %v797_v10 = vpop.f32.mrb[38].mxu0 }
 0x1bc   : > { %v1242_v16 = vmin.f32 %v1240_v25, %v3596_v63  ;;  %v1136_v20 = vmul.f32 2.0, %v797_v10  ;;  %v799_v23 = vpop.f32.mrb[39].mxu0  ;;  %v1075_v25 = vadd.f32 %v977_v9, %v3448_v29 }
 0x1bd   : > { %5505 = vst [vmem:[#allocation33_spill] sm:$0xff] %v3598_v8  ;;  %v1279_v31 = vmin.f32 %v1277_v27, %v3598_v8  ;;  %v1137_v32 = vmul.f32 2.0, %v799_v23  ;;  %v982_v27 = vpop.permute.xlu1 %981 }
 0x1be   : > { %v3604_v33 = vsub.f32 %v1072_v11, %v1136_v20  ;;  %v1076_v20 = vadd.f32 %v982_v27, %v3446_v28 }
 0x1bf   : > { %v3606_v36 = vsub.f32 %v1073_v5, %v1137_v32  ;;  %v803_v34 = vpop.f32.mrb[40].mxu0 }
 0x1c0   : > { %v1243_v48 = vmin.f32 %v1241_v50, %v3604_v33  ;;  %v1138_v54 = vmul.f32 2.0, %v803_v34  ;;  %v805_v58 = vpop.f32.mrb[41].mxu0  ;;  %v1077_v50 = vadd.f32 %v982_v27, %v3448_v29 }
 0x1c1   : > { %5506 = vst [vmem:[#allocation34_spill] sm:$0xff] %v3606_v36  ;;  %v1280_v46 = vmin.f32 %v1278_v59, %v3606_v36  ;;  %v1139_v61 = vmul.f32 2.0, %v805_v58  ;;  %v987_v59 = vpop.permute.xlu0 %986 }
 0x1c2   : > { %v3612_v57 = vsub.f32 %v1074_v45, %v1138_v54  ;;  %v1078_v58 = vadd.f32 %v987_v59, %v3446_v28 }
 0x1c3   : > { %v3614_v10 = vsub.f32 %v1075_v25, %v1139_v61  ;;  %v809_v11 = vpop.f32.mrb[42].mxu0 }
 0x1c4   : > { %v1244_v23 = vmin.f32 %v1242_v16, %v3612_v57  ;;  %v1140_v5 = vmul.f32 2.0, %v809_v11  ;;  %v811_v32 = vpop.f32.mrb[43].mxu0  ;;  %v1079_v16 = vadd.f32 %v987_v59, %v3448_v29 }
 0x1c5   : > { %5507 = vst [vmem:[#allocation35_spill] sm:$0xff] %v3614_v10  ;;  %v1281_v34 = vmin.f32 %v1279_v31, %v3614_v10  ;;  %v1141_v9 = vmul.f32 2.0, %v811_v32  ;;  %v992_v31 = vpop.permute.xlu1 %991 }
 0x1c6   : > { %v3620_v0 = vsub.f32 %v1076_v20, %v1140_v5  ;;  %v1080_v32 = vadd.f32 %v992_v31, %v3446_v28 }
 0x1c7   : > { %v3622_v45 = vsub.f32 %v1077_v50, %v1141_v9  ;;  %v815_v54 = vpop.f32.mrb[44].mxu0 }
 0x1c8   : > { %v1245_v25 = vmin.f32 %v1243_v48, %v3620_v0  ;;  %v1142_v61 = vmul.f32 2.0, %v815_v54  ;;  %v817_v36 = vpop.f32.mrb[45].mxu0  ;;  %v1081_v48 = vadd.f32 %v992_v31, %v3448_v29 }
 0x1c9   : > { %5508 = vst [vmem:[#allocation36_spill] sm:$0xff] %v3622_v45  ;;  %v1282_v11 = vmin.f32 %v1280_v46, %v3622_v45  ;;  %v1143_v27 = vmul.f32 2.0, %v817_v36  ;;  %v997_v36 = vpop.permute.xlu0 %996 }
 0x1ca   : > { %v3628_v8 = vsub.f32 %v1078_v58, %v1142_v61  ;;  %v1082_v61 = vadd.f32 %v997_v36, %v3446_v28 }
 0x1cb   : > { %v3630_v20 = vsub.f32 %v1079_v16, %v1143_v27  ;;  %v821_v5 = vpop.f32.mrb[46].mxu0 }
 0x1cc   : > { %5509 = vst [vmem:[#allocation37_spill] sm:$0xff] %v3628_v8  ;;  %v1246_v50 = vmin.f32 %v1244_v23, %v3628_v8  ;;  %v1144_v9 = vmul.f32 2.0, %v821_v5  ;;  %v823_v10 = vpop.f32.mrb[47].mxu0  ;;  %v1083_v23 = vadd.f32 %v997_v36, %v3448_v29 }
 0x1cd   : > { %5510 = vst [vmem:[#allocation38_spill] sm:$0xff] %v3630_v20  ;;  %v1283_v54 = vmin.f32 %v1281_v34, %v3630_v20  ;;  %v1145_v59 = vmul.f32 2.0, %v823_v10  ;;  %v1002_v10 = vpop.permute.xlu1 %1001 }
 0x1ce   : > { %v3636_v42 = vsub.f32 %v1080_v32, %v1144_v9  ;;  %v1084_v9 = vadd.f32 %v1002_v10, %v3446_v28 }
 0x1cf   : > { %v3638_v46 = vsub.f32 %v1081_v48, %v1145_v59  ;;  %v827_v58 = vpop.f32.mrb[48].mxu0 }
 0x1d0   : > { %5511 = vst [vmem:[#allocation39_spill] sm:$0xff] %v3636_v42  ;;  %v1247_v16 = vmin.f32 %v1245_v25, %v3636_v42  ;;  %v1146_v27 = vmul.f32 2.0, %v827_v58  ;;  %v829_v45 = vpop.f32.mrb[49].mxu0  ;;  %v1085_v25 = vadd.f32 %v1002_v10, %v3448_v29 }
 0x1d1   : > { %5512 = vst [vmem:[#allocation40_spill] sm:$0xff] %v3638_v46  ;;  %v1284_v5 = vmin.f32 %v1282_v11, %v3638_v46  ;;  %v1147_v31 = vmul.f32 2.0, %v829_v45  ;;  %v1007_v45 = vpop.permute.xlu0 %1006 }
 0x1d2   : > { %v3644_v18 = vsub.f32 %v1082_v61, %v1146_v27  ;;  %v1086_v27 = vadd.f32 %v1007_v45, %v3446_v28 }
 0x1d3   : > { %v3646_v34 = vsub.f32 %v1083_v23, %v1147_v31  ;;  %v833_v32 = vpop.f32.mrb[50].mxu0 }
 0x1d4   : > { %5513 = vst [vmem:[#allocation41_spill] sm:$0xff] %v3644_v18  ;;  %v1248_v48 = vmin.f32 %v1246_v50, %v3644_v18  ;;  %v1148_v59 = vmul.f32 2.0, %v833_v32  ;;  %v835_v20 = vpop.f32.mrb[51].mxu0  ;;  %v1087_v50 = vadd.f32 %v1007_v45, %v3448_v29 }
 0x1d5   : > { %5514 = vst [vmem:[#allocation42_spill] sm:$0xff] %v3646_v34  ;;  %v1285_v58 = vmin.f32 %v1283_v54, %v3646_v34  ;;  %v1149_v36 = vmul.f32 2.0, %v835_v20  ;;  %v1012_v20 = vpop.permute.xlu1 %1011 }
 0x1d6   : > { %v3652_v62 = vsub.f32 %v1084_v9, %v1148_v59  ;;  %v1088_v59 = vadd.f32 %v1012_v20, %v3446_v28 }
 0x1d7   : > { %v3654_v11 = vsub.f32 %v1085_v25, %v1149_v36  ;;  %v839_v61 = vpop.f32.mrb[52].mxu0 }
 0x1d8   : > { %5515 = vst [vmem:[#allocation43_spill] sm:$0xff] %v3652_v62  ;;  %v1249_v23 = vmin.f32 %v1247_v16, %v3652_v62  ;;  %v1150_v31 = vmul.f32 2.0, %v839_v61  ;;  %v841_v46 = vpop.f32.mrb[53].mxu0  ;;  %v1089_v16 = vadd.f32 %v1012_v20, %v3448_v29 }
 0x1d9   : > { %5516 = vst [vmem:[#allocation44_spill] sm:$0xff] %v3654_v11  ;;  %v1286_v32 = vmin.f32 %v1284_v5, %v3654_v11  ;;  %v1151_v10 = vmul.f32 2.0, %v841_v46  ;;  %v1017_v46 = vpop.permute.xlu0 %1016 }
 0x1da   : > { %v3660_v43 = vsub.f32 %v1086_v27, %v1150_v31  ;;  %v1090_v31 = vadd.f32 %v1017_v46, %v3446_v28 }
 0x1db   : > { %v3662_v54 = vsub.f32 %v1087_v50, %v1151_v10  ;;  %v845_v9 = vpop.f32.mrb[54].mxu0 }
 0x1dc   : > { %5517 = vst [vmem:[#allocation45_spill] sm:$0xff] %v3660_v43  ;;  %v1250_v25 = vmin.f32 %v1248_v48, %v3660_v43  ;;  %v1152_v36 = vmul.f32 2.0, %v845_v9  ;;  %v847_v34 = vpop.f32.mrb[55].mxu0  ;;  %v1091_v48 = vadd.f32 %v1017_v46, %v3448_v29 }
 0x1dd   : > { %5518 = vst [vmem:[#allocation46_spill] sm:$0xff] %v3662_v54  ;;  %v1287_v61 = vmin.f32 %v1285_v58, %v3662_v54  ;;  %v1153_v45 = vmul.f32 2.0, %v847_v34  ;;  %v1022_v34 = vpop.permute.xlu1 %1021 }
 0x1de   : > { %v3668_v24 = vsub.f32 %v1088_v59, %v1152_v36  ;;  %v1092_v36 = vadd.f32 %v1022_v34, %v3446_v28 }
 0x1df   : > { %v3670_v5 = vsub.f32 %v1089_v16, %v1153_v45  ;;  %v851_v27 = vpop.f32.mrb[56].mxu0 }
 0x1e0   : > { %5519 = vst [vmem:[#allocation47_spill] sm:$0xff] %v3668_v24  ;;  %v1251_v50 = vmin.f32 %v1249_v23, %v3668_v24  ;;  %v1154_v10 = vmul.f32 2.0, %v851_v27  ;;  %v853_v11 = vpop.f32.mrb[57].mxu0  ;;  %v1093_v23 = vadd.f32 %v1022_v34, %v3448_v29  ;;  %v1027_v27 = vpop.permute.xlu0 %1026 }
 0x1e1   : > { %5520 = vst [vmem:[#allocation48_spill] sm:$0xff] %v3670_v5  ;;  %v1288_v9 = vmin.f32 %v1286_v32, %v3670_v5  ;;  %v1155_v20 = vmul.f32 2.0, %v853_v11 }
 0x1e2   : > { %v3676_v7 = vsub.f32 %v1090_v31, %v1154_v10  ;;  %v1094_v10 = vadd.f32 %v1027_v27, %v3446_v28 }
 0x1e3   : > { %v3678_v58 = vsub.f32 %v1091_v48, %v1155_v20  ;;  %v857_v59 = vpop.f32.mrb[58].mxu0 }
 0x1e4   : > { %5521 = vst [vmem:[#allocation49_spill] sm:$0xff] %v3676_v7  ;;  %v1252_v16 = vmin.f32 %v1250_v25, %v3676_v7  ;;  %v1156_v45 = vmul.f32 2.0, %v857_v59  ;;  %v859_v54 = vpop.f32.mrb[59].mxu0  ;;  %v1032_v25 = vpop.permute.xlu1 %1031  ;;  %v1095_v59 = vadd.f32 %v1027_v27, %v3448_v29 }
 0x1e5   : > { %5522 = vst [vmem:[#allocation50_spill] sm:$0xff] %v3678_v58  ;;  %v1289_v46 = vmin.f32 %v1287_v61, %v3678_v58  ;;  %v1157_v51 = vmul.f32 2.0, %v859_v54 }
 0x1e6   : > { %v3684_v32 = vsub.f32 %v1092_v36, %v1156_v45 }
 0x1e7   : > { %v3686_v11 = vsub.f32 %v1093_v23, %v1157_v51  ;;  %v863_v31 = vpop.f32.mrb[60].mxu0  ;;  %v1096_v51 = vadd.f32 %v1032_v25, %v3446_v28  ;;  %v5409_v28 = vlaneseq }
 0x1e8   : > { %5523 = vst [vmem:[#allocation51_spill] sm:$0xff] %v3684_v32  ;;  %v1253_v48 = vmin.f32 %v1251_v50, %v3684_v32  ;;  %v1158_v20 = vmul.f32 2.0, %v863_v31  ;;  %v865_v5 = vpop.f32.mrb[61].mxu0  ;;  %v1097_v50 = vadd.f32 %v1032_v25, %v3448_v29 }
 0x1e9   : > { %5524 = vst [vmem:[#allocation52_spill] sm:$0xff] %v3686_v11  ;;  %v1290_v34 = vmin.f32 %v1288_v9, %v3686_v11  ;;  %v1159_v12 = vmul.f32 2.0, %v865_v5  ;;  %v3707_v29 = vshrl.u32 %v5409_v28, 7 }
 0x1ea   : > { %v3692_v21 = vsub.f32 %v1094_v10, %v1158_v20 }
 0x1eb   : > { %v3694_v54 = vsub.f32 %v1095_v59, %v1159_v12  ;;  %v869_v61 = vpop.f32.mrb[62].mxu0  ;;  %v3824_v28 = vadd.s32 136, %v3707_v29 }
 0x1ec   : > { %5525 = vst [vmem:[#allocation53_spill] sm:$0xff] %v3692_v21  ;;  %v1254_v36 = vmin.f32 %v1252_v16, %v3692_v21  ;;  %v1160_v45 = vmul.f32 2.0, %v869_v61  ;;  %v871_v23 = vpop.f32.mrb[63].mxu0 }
 0x1ed   : > { %5526 = vst [vmem:[#allocation54_spill] sm:$0xff] %v3694_v54  ;;  %v1291_v31 = vmin.f32 %v1289_v46, %v3694_v54  ;;  %v1161_v58 = vmul.f32 2.0, %v871_v23  ;;  %v3719_v23 = vadd.s32 32, %v3707_v29  ;;  %5529 = vst [vmem:[#allocation57_spill] sm:$0xff] %v3824_v28 }
 0x1ee   : > { %v3700_v27 = vsub.f32 %v1096_v51, %v1160_v45 }
 0x1ef   : > { %v3702_v9 = vsub.f32 %v1097_v50, %v1161_v58  ;;  %v3710_v58 = vadd.s32 8, %v3707_v29  ;;  %v3722_v50 = vadd.s32 40, %v3707_v29 }
 0x1f0   : > { %5527 = vst [vmem:[#allocation55_spill] sm:$0xff] %v3700_v27  ;;  %v1255_v5 = vmin.f32 %v1253_v48, %v3700_v27  ;;  %v3713_v48 = vadd.s32 16, %v3707_v29  ;;  %v3833_v27 = vadd.s32 160, %v3707_v29 }
 0x1f1   : > { %5528 = vst [vmem:[#allocation56_spill] sm:$0xff] %v3702_v9  ;;  %v1292_v12 = vmin.f32 %v1290_v34, %v3702_v9  ;;  %v3716_v34 = vadd.s32 24, %v3707_v29  ;;  %v4027_v9 = vadd.s32 224, %v3707_v29 }
 0x1f2   : > { %v1256_v10 = vmin.f32 %v1254_v36, %v1255_v5  ;;  %v3731_v5 = vadd.s32 64, %v3707_v29 }
 0x1f3   : > { %v1293_v20 = vmin.f32 %v1291_v31, %v1292_v12  ;;  %v3725_v31 = vadd.s32 48, %v3707_v29  ;;  %v3734_v12 = vadd.s32 72, %v3707_v29 }
 0x1f4   : > { %v1257_v59 = vrot.slane %v1256_v10, 4 }
 0x1f5   : > { %v1294_v16 = vrot.slane %v1293_v20, 4 }
 0x1f6   : > { %v1258_v61 = vmin.f32 %v1256_v10, %v1257_v59  ;;  %v3737_v10 = vadd.s32 80, %v3707_v29  ;;  %v3742_v59 = vadd.s32 88, %v3707_v29 }
 0x1f7   : > { %v1295_v11 = vmin.f32 %v1293_v20, %v1294_v16  ;;  %v3745_v16 = vadd.s32 96, %v3707_v29 }
 0x1f8   : > { %v1259_v46 = vrot.slane %v1258_v61, 2 }
 0x1f9   : > { %v1296_v25 = vrot.slane %v1295_v11, 2 }
 0x1fa   : > { %v1260_v51 = vmin.f32 %v1258_v61, %v1259_v46  ;;  %v3748_v61 = vadd.s32 104, %v3707_v29 }
 0x1fb   : > { %v1297_v45 = vmin.f32 %v1295_v11, %v1296_v25  ;;  %v3728_v11 = vadd.s32 56, %v3707_v29  ;;  %v3815_v25 = vadd.s32 112, %v3707_v29 }
 0x1fc   : > { %v1261_v36 = vrot.slane %v1260_v51, 1 }
 0x1fd   : > { %v1298_v46 = vrot.slane %v1297_v45, 1 }
 0x1fe   : > { %v3739_v20 = vmin.f32 %v1260_v51, %v1261_v36  ;;  %v3818_v51 = vadd.s32 120, %v3707_v29  ;;  %v3821_v36 = vadd.s32 128, %v3707_v29 }
 0x1ff   : > { %v3847_v18 = vmin.f32 %v1297_v45, %v1298_v46  ;;  %v5546_v46 = vld [vmem:[#allocation25_spill] sm:$0xff] }
 0x200   : > { %vm1333_vm1 = vcmp.eq.f32.partialorder %v3452_v35, %v3739_v20  ;;  %vm1335_vm2 = vcmp.eq.f32.partialorder %v3458_v44, %v3739_v20  ;;  %vm1337_vm3 = vcmp.eq.f32.partialorder %v3464_v53, %v3739_v20  ;;  %vm1339_vm4 = vcmp.eq.f32.partialorder %v3474_v1, %v3739_v20 }
 0x201   : > { %vm1341_vm5 = vcmp.eq.f32.partialorder %v3485_v15, %v3739_v20  ;;  %vm1343_vm6 = vcmp.eq.f32.partialorder %v3493_v26, %v3739_v20  ;;  %vm1345_vm7 = vcmp.eq.f32.partialorder %v3501_v39, %v3739_v20  ;;  %vm1347_vm8 = vcmp.eq.f32.partialorder %v3509_v52, %v3739_v20 }
 0x202   : > { %vm1349_vm9 = vcmp.eq.f32.partialorder %v3517_v3, %v3739_v20  ;;  %vm1383_vm12 = vcmp.eq.f32.partialorder %v3652_v62, %v3739_v20  ;;  %vm1385_vm13 = vcmp.eq.f32.partialorder %v3660_v43, %v3739_v20  ;;  %vm1387_vm14 = vcmp.eq.f32.partialorder %v3668_v24, %v3739_v20 }
 0x203   : > { %vm1389_vm15 = vcmp.eq.f32.partialorder %v3676_v7, %v3739_v20  ;;  %vm1391_vm0 = vcmp.eq.f32.partialorder %v3684_v32, %v3739_v20  ;;  %vm1393_vm10 = vcmp.eq.f32.partialorder %v3692_v21, %v3739_v20  ;;  %v3827_v32 = vadd.s32 144, %v3707_v29 }
 0x204   : > { %v3830_v21 = vadd.s32 152, %v3707_v29  ;;  %v3836_v7 = vadd.s32 168, %v3707_v29  ;;  %v3839_v24 = vadd.s32 176, %v3707_v29  ;;  %v3842_v43 = vadd.s32 184, %v3707_v29 }
 0x205   : > { %5530 = vst [vmem:[#allocation58_spill] sm:$0xff] %v3827_v32  ;;  %v3845_v62 = vadd.s32 192, %v3707_v29  ;;  %v1397_v42 = vsel %vm1333_vm1, %v3707_v29, 256  ;;  %v1399_v8 = vsel %vm1335_vm2, %v3710_v58, 256  ;;  %v1403_v45 = vsel %vm1339_vm4, %v3716_v34, 256 }
 0x206   : > { %5531 = vst [vmem:[#allocation59_spill] sm:$0xff] %v3830_v21  ;;  %5532 = vst [vmem:[#allocation60_spill] sm:$0xff] %v3842_v43  ;;  %v1401_v43 = vsel %vm1337_vm3, %v3713_v48, 256  ;;  %v1405_v35 = vsel %vm1341_vm5, %v3719_v23, 256  ;;  %v1407_v44 = vsel %vm1343_vm6, %v3722_v50, 256  ;;  %v1409_v53 = vsel %vm1345_vm7, %v3725_v31, 256 }
 0x207   : > { %5533 = vst [vmem:[#allocation61_spill] sm:$0xff] %v3845_v62  ;;  %v1411_v1 = vsel %vm1347_vm8, %v3728_v11, 256  ;;  %v1413_v15 = vsel %vm1349_vm9, %v3731_v5, 256  ;;  %vm5534_vm1 = vcmp.eq.f32.partialorder %v3525_v19, %v3739_v20  ;;  %vm5535_vm2 = vcmp.eq.f32.partialorder %v3533_v13, %v3739_v20 }
 0x208   : > { %v1415_v26 = vsel %vm5534_vm1, %v3734_v12, 256  ;;  %v1417_v39 = vsel %vm5535_vm2, %v3737_v10, 256  ;;  %vm5536_vm3 = vcmp.eq.f32.partialorder %v3541_v49, %v3739_v20  ;;  %vm5537_vm4 = vcmp.eq.f32.partialorder %v3549_v2, %v3739_v20 }
 0x209   : > { %v1419_v52 = vsel %vm5536_vm3, %v3742_v59, 256  ;;  %v1421_v3 = vsel %vm5537_vm4, %v3745_v16, 256  ;;  %vm5538_vm5 = vcmp.eq.f32.partialorder %v3557_v22, %v3739_v20  ;;  %vm5539_vm6 = vcmp.eq.f32.partialorder %v3565_v40, %v3739_v20 }
 0x20a   : > { %v1423_v19 = vsel %vm5538_vm5, %v3748_v61, 256  ;;  %v1425_v13 = vsel %vm5539_vm6, %v3815_v25, 256  ;;  %vm5540_vm7 = vcmp.eq.f32.partialorder %v3573_v60, %v3739_v20  ;;  %vm5541_vm8 = vcmp.eq.f32.partialorder %v3580_v14, %v3739_v20 }
 0x20b   : > { %v1427_v49 = vsel %vm5540_vm7, %v3818_v51, 256  ;;  %v3917_v2 = vsel %vm5541_vm8, %v3821_v36, 256  ;;  %vm5542_vm9 = vcmp.eq.f32.partialorder %v3588_v38, %v3739_v20  ;;  %vm5543_vm1 = vcmp.eq.f32.partialorder %v3596_v63, %v3739_v20 }
 0x20c   : > { %v3923_v22 = vsel %vm5542_vm9, %v3824_v28, 256  ;;  %v3929_v40 = vsel %vm5543_vm1, %v3827_v32, 256  ;;  %vm5544_vm2 = vcmp.eq.f32.partialorder %v3604_v33, %v3739_v20  ;;  %vm1461_vm3 = vcmp.lt.s32.totalorder %v1397_v42, %v1401_v43  ;;  %v5554_v28 = vld [vmem:[#allocation33_spill] sm:$0xff] }
 0x20d   : > { %v3935_v60 = vsel %vm5544_vm2, %v3830_v21, 256  ;;  %vm1463_vm4 = vcmp.lt.s32.totalorder %v1399_v8, %v1403_v45  ;;  %v1462_v14 = vsel %vm1461_vm3, %v1397_v42, %v1401_v43  ;;  %v5545_v43 = vld [vmem:[#allocation24_spill] sm:$0xff]  ;;  %v5550_v21 = vld [vmem:[#allocation29_spill] sm:$0xff] }
 0x20e   : > { %v1464_v38 = vsel %vm1463_vm4, %v1399_v8, %v1403_v45  ;;  %vm1465_vm9 = vcmp.lt.s32.totalorder %v1462_v14, %v1405_v35  ;;  %v5547_v45 = vld [vmem:[#allocation26_spill] sm:$0xff] }
 0x20f   : > { %vm1467_vm1 = vcmp.lt.s32.totalorder %v1464_v38, %v1407_v44  ;;  %v1466_v63 = vsel %vm1465_vm9, %v1462_v14, %v1405_v35  ;;  %v5548_v35 = vld [vmem:[#allocation27_spill] sm:$0xff] }
 0x210   : > { %v1468_v33 = vsel %vm1467_vm1, %v1464_v38, %v1407_v44  ;;  %vm1469_vm7 = vcmp.lt.s32.totalorder %v1466_v63, %v1409_v53  ;;  %v5549_v44 = vld [vmem:[#allocation28_spill] sm:$0xff] }
 0x211   : > { %vm1471_vm6 = vcmp.lt.s32.totalorder %v1468_v33, %v1411_v1  ;;  %v1470_v42 = vsel %vm1469_vm7, %v1466_v63, %v1409_v53  ;;  %v5551_v53 = vld [vmem:[#allocation30_spill] sm:$0xff] }
 0x212   : > { %v1472_v8 = vsel %vm1471_vm6, %v1468_v33, %v1411_v1  ;;  %vm1473_vm3 = vcmp.lt.s32.totalorder %v1470_v42, %v1413_v15  ;;  %v5558_v63 = vld [vmem:[#allocation38_spill] sm:$0xff] }
 0x213   : > { %vm1475_vm11 = vcmp.lt.s32.totalorder %v1472_v8, %v1415_v26  ;;  %v1474_v14 = vsel %vm1473_vm3, %v1470_v42, %v1413_v15  ;;  %v5557_v42 = vld [vmem:[#allocation36_spill] sm:$0xff] }
 0x214   : > { %v1476_v38 = vsel %vm1475_vm11, %v1472_v8, %v1415_v26  ;;  %vm1477_vm9 = vcmp.lt.s32.totalorder %v1474_v14, %v1417_v39  ;;  %v5556_v26 = vld [vmem:[#allocation35_spill] sm:$0xff]  ;;  %vm1376_vm4 = vcmp.eq.f32.partialorder %v5557_v42, %v3847_v18 }
 0x215   : > { %vm1479_vm5 = vcmp.lt.s32.totalorder %v1476_v38, %v1419_v52  ;;  %v1478_v33 = vsel %vm1477_vm9, %v1474_v14, %v1417_v39  ;;  %vm1374_vm6 = vcmp.eq.f32.partialorder %v5556_v26, %v3847_v18  ;;  %v5559_v39 = vld [vmem:[#allocation40_spill] sm:$0xff] }
 0x216   : > { %v1480_v32 = vsel %vm1479_vm5, %v1476_v38, %v1419_v52  ;;  %vm1481_vm7 = vcmp.lt.s32.totalorder %v1478_v33, %v1421_v3  ;;  %v467_v38 = vld [vmem:[#allocation7 + $0x8] sm:$0xff]  ;;  %v1453_v52 = vsel %vm1389_vm15, %v4027_v9, 256  ;;  %vm5586_vm15 = vcmp.eq.f32.partialorder %v3455_v37, %v3847_v18 }
 0x217   : > { %vm1483_vm2 = vcmp.lt.s32.totalorder %v1480_v32, %v1423_v19  ;;  %v1482_v8 = vsel %vm1481_vm7, %v1478_v33, %v1421_v3  ;;  %v5562_v3 = vld [vmem:[#allocation46_spill] sm:$0xff]  ;;  %1879 = vmatprep.mubr.f32.mxu1 %v467_v38  ;;  %v4024_v38 = vadd.s32 216, %v3707_v29  ;;  %v5572_v33 = vld [vmem:[#allocation60_spill] sm:$0xff] }
 0x218   : > { %v1484_v1 = vsel %vm1483_vm2, %v1480_v32, %v1423_v19  ;;  %vm1485_vm3 = vcmp.lt.s32.totalorder %v1482_v8, %v1425_v13  ;;  %vm1386_vm2 = vcmp.eq.f32.partialorder %v5562_v3, %v3847_v18  ;;  %v5575_v19 = vld [vmem:[#allocation41_spill] sm:$0xff] }
 0x219   : > { %vm1487_vm8 = vcmp.lt.s32.totalorder %v1484_v1, %v1427_v49  ;;  %v1486_v26 = vsel %vm1485_vm3, %v1482_v8, %v1425_v13  ;;  %v4009_v8 = vadd.s32 208, %v3707_v29  ;;  %vm5576_vm7 = vcmp.eq.f32.partialorder %v5575_v19, %v3739_v20 }
 0x21a   : > { %v1488_v15 = vsel %vm1487_vm8, %v1484_v1, %v1427_v49  ;;  %vm1489_vm5 = vcmp.lt.s32.totalorder %v1486_v26, %v3917_v2  ;;  %v4006_v1 = vadd.s32 200, %v3707_v29  ;;  %v1445_v32 = vsel %vm5576_vm7, %v3845_v62, 256 }
 0x21b   : > { %vm1491_vm9 = vcmp.lt.s32.totalorder %v1488_v15, %v3923_v22  ;;  %v1490_v13 = vsel %vm1489_vm5, %v1486_v26, %v3917_v2  ;;  %5567 = vst [vmem:[#allocation25_spill] sm:$0xff] %v4009_v8  ;;  %vm5569_vm5 = vcmp.eq.f32.partialorder %v3620_v0, %v3739_v20  ;;  %v5573_v0 = vld [vmem:[#allocation39_spill] sm:$0xff]  ;;  %v1449_v19 = vsel %vm1385_vm13, %v4009_v8, 256 }
 0x21c   : > { %v1492_v49 = vsel %vm1491_vm9, %v1488_v15, %v3923_v22  ;;  %5566 = vst [vmem:[#allocation24_spill] sm:$0xff] %v4006_v1  ;;  %vm1493_vm11 = vcmp.lt.s32.totalorder %v1490_v13, %v3929_v40  ;;  %vm5568_vm9 = vcmp.eq.f32.partialorder %v3612_v57, %v3739_v20  ;;  %v1439_v22 = vsel %vm5569_vm5, %v3836_v7, 256  ;;  %v5570_v57 = vld [vmem:[#allocation37_spill] sm:$0xff] }
 0x21d   : > { %vm1495_vm1 = vcmp.lt.s32.totalorder %v1492_v49, %v3935_v60  ;;  %v1437_v2 = vsel %vm5568_vm9, %v3833_v27, 256  ;;  %v1494_v15 = vsel %vm1493_vm11, %v1490_v13, %v3929_v40  ;;  %vm5571_vm9 = vcmp.eq.f32.partialorder %v5570_v57, %v3739_v20 }
 0x21e   : > { %v1496_v26 = vsel %vm1495_vm1, %v1492_v49, %v3935_v60  ;;  %vm1497_vm3 = vcmp.lt.s32.totalorder %v1494_v15, %v1437_v2  ;;  %v1441_v54 = vsel %vm5571_vm9, %v3839_v24, 256  ;;  %vm5574_vm5 = vcmp.eq.f32.partialorder %v5573_v0, %v3739_v20 }
 0x21f   : > { %vm1499_vm8 = vcmp.lt.s32.totalorder %v1496_v26, %v1439_v22  ;;  %v1443_v40 = vsel %vm5574_vm5, %v5572_v33, 256  ;;  %v1498_v13 = vsel %vm1497_vm3, %v1494_v15, %v1437_v2  ;;  %v4038_v49 = vadd.s32 232, %v3707_v29 }
 0x220   : > { %v1500_v60 = vsel %vm1499_vm8, %v1496_v26, %v1439_v22  ;;  %vm1501_vm1 = vcmp.lt.s32.totalorder %v1498_v13, %v1441_v54  ;;  %v1447_v3 = vsel %vm1383_vm12, %v4006_v1, 256  ;;  %v4049_v2 = vadd.s32 240, %v3707_v29 }
 0x221   : > { %vm1503_vm11 = vcmp.lt.s32.totalorder %v1500_v60, %v1443_v40  ;;  %v1502_v14 = vsel %vm1501_vm1, %v1498_v13, %v1441_v54  ;;  %v4052_v22 = vadd.s32 248, %v3707_v29  ;;  %v1451_v57 = vsel %vm1387_vm14, %v4024_v38, 256 }
 0x222   : > { %v1504_v0 = vsel %vm1503_vm11, %v1500_v60, %v1443_v40  ;;  %vm1505_vm8 = vcmp.lt.s32.totalorder %v1502_v14, %v1445_v32  ;;  %vm2092_vm12 = vcmask 1040384   ;;  %v3086_v13 = vmov 1966171168  }
 0x223   : > { %5578 = vst [vmem:[#allocation26_spill] sm:$0xff] %v4052_v22  ;;  %vm1507_vm3 = vcmp.lt.s32.totalorder %v1504_v0, %v1447_v3  ;;  %v1506_v54 = vsel %vm1505_vm8, %v1502_v14, %v1445_v32  ;;  %v1605_v60 = vunpack.c.l.s4 %v3086_v13  ;;  %v1455_v8 = vsel %vm1391_vm0, %v4038_v49, 256  ;;  %v5584_v32 = vld [vmem:[#allocation55_spill] sm:$0xff] }
 0x224   : > { %v1508_v40 = vsel %vm1507_vm3, %v1504_v0, %v1447_v3  ;;  %vm1509_vm7 = vcmp.lt.s32.totalorder %v1506_v54, %v1449_v19  ;;  %v1457_v3 = vsel %vm1393_vm10, %v4049_v2, 256  ;;  %vm5585_vm13 = vcmp.eq.f32.partialorder %v5584_v32, %v3739_v20 }
 0x225   : > { %vm1511_vm9 = vcmp.lt.s32.totalorder %v1508_v40, %v1451_v57  ;;  %v1510_v62 = vsel %vm1509_vm7, %v1506_v54, %v1449_v19  ;;  %v1459_v0 = vsel %vm5585_vm13, %v4052_v22, 256  ;;  %v1398_v19 = vsel %vm5586_vm15, %v3707_v29, 256 }
 0x226   : > { %v1512_v26 = vsel %vm1511_vm9, %v1508_v40, %v1451_v57  ;;  %vm1513_vm14 = vcmp.lt.s32.totalorder %v1510_v62, %v1453_v52  ;;  %vm5587_vm0 = vcmp.eq.f32.partialorder %v3462_v47, %v3847_v18  ;;  %vm5588_vm11 = vcmp.eq.f32.partialorder %v3468_v56, %v3847_v18 }
 0x227   : > { %vm1515_vm5 = vcmp.lt.s32.totalorder %v1512_v26, %v1455_v8  ;;  %v1514_v1 = vsel %vm1513_vm14, %v1510_v62, %v1453_v52  ;;  %v1400_v57 = vsel %vm5587_vm0, %v3710_v58, 256  ;;  %v1402_v54 = vsel %vm5588_vm11, %v3713_v48, 256 }
 0x228   : > { %v1516_v13 = vsel %vm1515_vm5, %v1512_v26, %v1455_v8  ;;  %vm1517_vm10 = vcmp.lt.s32.totalorder %v1514_v1, %v1457_v3  ;;  %vm5589_vm8 = vcmp.eq.f32.partialorder %v3478_v4, %v3847_v18  ;;  %vm5590_vm3 = vcmp.eq.f32.partialorder %v3488_v17, %v3847_v18 }
 0x229   : > { %vm1519_vm1 = vcmp.lt.s32.totalorder %v1516_v13, %v1459_v0  ;;  %v1404_v62 = vsel %vm5589_vm8, %v3716_v34, 256  ;;  %v1518_v52 = vsel %vm1517_vm10, %v1514_v1, %v1457_v3  ;;  %v1406_v47 = vsel %vm5590_vm3, %v3719_v23, 256 }
 0x22a   : > { %v1520_v37 = vsel %vm1519_vm1, %v1516_v13, %v1459_v0  ;;  %v1606_v8 = vunpack.c.0.s8 %v1605_v60  ;;  %vm5591_vm9 = vcmp.eq.f32.partialorder %v3496_v30, %v3847_v18  ;;  %vm5592_vm13 = vcmp.eq.f32.partialorder %v3504_v41, %v3847_v18 }
 0x22b   : > { %vm1521_vm7 = vcmp.lt.s32.totalorder %v1518_v52, %v1520_v37  ;;  %v1408_v56 = vsel %vm5591_vm9, %v3722_v50, 256  ;;  %v1410_v4 = vsel %vm5592_vm13, %v3725_v31, 256  ;;  %vm5593_vm14 = vcmp.eq.f32.partialorder %v3512_v55, %v3847_v18 }
 0x22c   : > { %v1412_v40 = vsel %vm5593_vm14, %v3728_v11, 256  ;;  %v1522_v15 = vsel %vm1521_vm7, %v1518_v52, %v1520_v37  ;;  %vm5594_vm5 = vcmp.eq.f32.partialorder %v3520_v6, %v3847_v18  ;;  %vm1532_vm15 = vcmp.lt.s32.totalorder %v1398_v19, %v1402_v54 }
 0x22d   : > { %v1414_v17 = vsel %vm5594_vm5, %v3731_v5, 256  ;;  %vm1534_vm0 = vcmp.lt.s32.totalorder %v1400_v57, %v1404_v62  ;;  %v1523_v30 = vrot.slane %v1522_v15, 4  ;;  %v1533_v60 = vsel %vm1532_vm15, %v1398_v19, %v1402_v54 }
 0x22e   : > { %v1535_v26 = vsel %vm1534_vm0, %v1400_v57, %v1404_v62  ;;  %v2090_v14 = vmax.f32 %v3739_v20, 0.0  ;;  %vm5595_vm10 = vcmp.eq.f32.partialorder %v5545_v43, %v3847_v18  ;;  %vm1536_vm1 = vcmp.lt.s32.totalorder %v1533_v60, %v1406_v47 }
 0x22f   : > { %v1416_v41 = vsel %vm5595_vm10, %v3734_v12, 256  ;;  %vm1538_vm11 = vcmp.lt.s32.totalorder %v1535_v26, %v1408_v56  ;;  %v2091_v55 = vmax.f32 %v3847_v18, 0.0  ;;  %vm1524_vm8 = vcmp.lt.s32.totalorder %v1522_v15, %v1523_v30 }
 0x230   : > { %v1537_v3 = vsel %vm1536_vm1, %v1533_v60, %v1406_v47  ;;  %v1539_v6 = vsel %vm1538_vm11, %v1535_v26, %v1408_v56  ;;  %v2093_v32 = vsel %vm2092_vm12, %v2090_v14, 0.0  ;;  %v1525_v0 = vsel %vm1524_vm8, %v1522_v15, %v1523_v30  ;;  %v5603_v15 = vld [vmem:[#allocation31_spill] sm:$0xff]  ;;  %v5606_v30 = vld [vmem:[#allocation32_spill] sm:$0xff]  ;;  %v5608_v14 = vld [vmem:[#allocation58_spill] sm:$0xff] }
 0x231   : > { %vm1540_vm3 = vcmp.lt.s32.totalorder %v1537_v3, %v1410_v4  ;;  %vm1542_vm7 = vcmp.lt.s32.totalorder %v1539_v6, %v1412_v40  ;;  %v2094_v1 = vsel %vm2092_vm12, %v2091_v55, 0.0  ;;  %v1526_v20 = vrot.slane %v1525_v0, 2  ;;  %v5611_v55 = vld [vmem:[#allocation34_spill] sm:$0xff] }
 0x232   : > { %v1541_v13 = vsel %vm1540_vm3, %v1537_v3, %v1410_v4  ;;  %v1543_v19 = vsel %vm1542_vm7, %v1539_v6, %v1412_v40  ;;  %v2095_v57 = vadd.f32 %v2094_v1, %v2093_v32  ;;  %vm5596_vm9 = vcmp.eq.f32.partialorder %v5546_v46, %v3847_v18 }
 0x233   : > { %v1418_v43 = vsel %vm5596_vm9, %v3737_v10, 256  ;;  %vm1544_vm13 = vcmp.lt.s32.totalorder %v1541_v13, %v1414_v17  ;;  %vm1546_vm14 = vcmp.lt.s32.totalorder %v1543_v19, %v1416_v41  ;;  %v4127_v54 = vsub.s32 %v1606_v8, %v3707_v29 }
 0x234   : > { %vm1527_vm5 = vcmp.lt.s32.totalorder %v1525_v0, %v1526_v20  ;;  %vm5598_vm15 = vcmp.eq.f32.partialorder %v5547_v45, %v3847_v18  ;;  %v1545_v52 = vsel %vm1544_vm13, %v1541_v13, %v1414_v17  ;;  %v1547_v37 = vsel %vm1546_vm14, %v1543_v19, %v1416_v41  ;;  %2096 = vadd.xlane.f32.xlu0 %v2095_v57  ;;  %v5605_v17 = vld [vmem:[#allocation57_spill] sm:$0xff]  ;;  %v5610_v41 = vld [vmem:[#allocation59_spill] sm:$0xff] }
 0x235   : > { %5597 = vst [vmem:[#allocation27_spill] sm:$0xff] %v4127_v54  ;;  %v1420_v62 = vsel %vm5598_vm15, %v3742_v59, 256  ;;  %v1528_v47 = vsel %vm1527_vm5, %v1525_v0, %v1526_v20  ;;  %vm5599_vm12 = vcmp.eq.f32.partialorder %v5548_v35, %v3847_v18  ;;  %vm1548_vm0 = vcmp.lt.s32.totalorder %v1545_v52, %v1418_v43 }
 0x236   : > { %v1422_v46 = vsel %vm5599_vm12, %v3745_v16, 256  ;;  %vm1550_vm10 = vcmp.lt.s32.totalorder %v1547_v37, %v1420_v62  ;;  %v1529_v56 = vrot.slane %v1528_v47, 1  ;;  %vm5600_vm1 = vcmp.eq.f32.partialorder %v5549_v44, %v3847_v18 }
 0x237   : > { %v1424_v8 = vsel %vm5600_vm1, %v3748_v61, 256  ;;  %v1549_v4 = vsel %vm1548_vm0, %v1545_v52, %v1418_v43  ;;  %v1551_v45 = vsel %vm1550_vm10, %v1547_v37, %v1420_v62  ;;  %vm5601_vm11 = vcmp.eq.f32.partialorder %v5550_v21, %v3847_v18  ;;  %v5616_v62 = vld [vmem:[#allocation61_spill] sm:$0xff]  ;;  %v5617_v52 = vld [vmem:[#allocation42_spill] sm:$0xff]  ;;  %v5619_v37 = vld [vmem:[#allocation24_spill] sm:$0xff] }
 0x238   : > { %v1426_v40 = vsel %vm5601_vm11, %v3815_v25, 256  ;;  %vm5602_vm8 = vcmp.eq.f32.partialorder %v5551_v53, %v3847_v18  ;;  %vm1552_vm3 = vcmp.lt.s32.totalorder %v1549_v4, %v1422_v46  ;;  %vm1554_vm7 = vcmp.lt.s32.totalorder %v1551_v45, %v1424_v8 }
 0x239   : > { %v1428_v35 = vsel %vm5602_vm8, %v3818_v51, 256  ;;  %vm5604_vm9 = vcmp.eq.f32.partialorder %v5603_v15, %v3847_v18  ;;  %vm5607_vm13 = vcmp.eq.f32.partialorder %v5606_v30, %v3847_v18  ;;  %v1553_v26 = vsel %vm1552_vm3, %v1549_v4, %v1422_v46  ;;  %v5620_v46 = vld [vmem:[#allocation44_spill] sm:$0xff] }
 0x23a   : > { %v1430_v44 = vsel %vm5604_vm9, %v3821_v36, 256  ;;  %v1432_v60 = vsel %vm5607_vm13, %v5605_v17, 256  ;;  %v1555_v21 = vsel %vm1554_vm7, %v1551_v45, %v1424_v8  ;;  %vm1530_vm14 = vcmp.lt.s32.totalorder %v1528_v47, %v1529_v56  ;;  %v5624_v8 = vld [vmem:[#allocation48_spill] sm:$0xff] }
 0x23b   : > { %vm5609_vm5 = vcmp.eq.f32.partialorder %v5554_v28, %v3847_v18  ;;  %vm1556_vm15 = vcmp.lt.s32.totalorder %v1553_v26, %v1426_v40  ;;  %vm1558_vm12 = vcmp.lt.s32.totalorder %v1555_v21, %v1428_v35  ;;  %vm5612_vm0 = vcmp.eq.f32.partialorder %v5611_v55, %v3847_v18  ;;  %v5632_v55 = vld [vmem:[#allocation56_spill] sm:$0xff] }
 0x23c   : > { %v1434_v53 = vsel %vm5609_vm5, %v5608_v14, 256  ;;  %v1436_v3 = vsel %vm5612_vm0, %v5610_v41, 256  ;;  %v1438_v32 = vsel %vm1374_vm6, %v3833_v27, 256  ;;  %v1557_v0 = vsel %vm1556_vm15, %v1553_v26, %v1426_v40 }
 0x23d   : > { %v1559_v1 = vsel %vm1558_vm12, %v1555_v21, %v1428_v35  ;;  %v1440_v28 = vsel %vm1376_vm4, %v3836_v7, 256  ;;  %vm5614_vm10 = vcmp.eq.f32.partialorder %v5558_v63, %v3847_v18  ;;  %vm1560_vm1 = vcmp.lt.s32.totalorder %v1557_v0, %v1430_v44  ;;  %v5626_v35 = vld [vmem:[#allocation50_spill] sm:$0xff] }
 0x23e   : > { %v1442_v20 = vsel %vm5614_vm10, %v3839_v24, 256  ;;  %vm1562_vm11 = vcmp.lt.s32.totalorder %v1559_v1, %v1432_v60  ;;  %v4177_v13 = vsel %vm1530_vm14, %v1528_v47, %v1529_v56  ;;  %vm5615_vm6 = vcmp.eq.f32.partialorder %v5559_v39, %v3847_v18  ;;  %v5622_v47 = vld [vmem:[#allocation25_spill] sm:$0xff] }
 0x23f   : > { %v1444_v19 = vsel %vm5615_vm6, %v5572_v33, 256  ;;  %v1561_v57 = vsel %vm1560_vm1, %v1557_v0, %v1430_v44  ;;  %v1563_v43 = vsel %vm1562_vm11, %v1559_v1, %v1432_v60  ;;  %vm5618_vm4 = vcmp.eq.f32.partialorder %v5617_v52, %v3847_v18  ;;  %v5628_v44 = vld [vmem:[#allocation52_spill] sm:$0xff]  ;;  %v5630_v60 = vld [vmem:[#allocation54_spill] sm:$0xff] }
 0x240   : > { %v1446_v42 = vsel %vm5618_vm4, %v5616_v62, 256  ;;  %vm5621_vm8 = vcmp.eq.f32.partialorder %v5620_v46, %v3847_v18  ;;  %vm1564_vm3 = vcmp.lt.s32.totalorder %v1561_v57, %v1434_v53  ;;  %vm1566_vm7 = vcmp.lt.s32.totalorder %v1563_v43, %v1436_v3 }
 0x241   : > { %v1448_v63 = vsel %vm5621_vm8, %v5619_v37, 256  ;;  %v1450_v39 = vsel %vm1386_vm2, %v5622_v47, 256  ;;  %vm5625_vm9 = vcmp.eq.f32.partialorder %v5624_v8, %v3847_v18  ;;  %v1565_v45 = vsel %vm1564_vm3, %v1561_v57, %v1434_v53 }
 0x242   : > { %v1452_v4 = vsel %vm5625_vm9, %v4024_v38, 256  ;;  %v1567_v40 = vsel %vm1566_vm7, %v1563_v43, %v1436_v3  ;;  %vm5627_vm13 = vcmp.eq.f32.partialorder %v5626_v35, %v3847_v18  ;;  %vm1568_vm14 = vcmp.lt.s32.totalorder %v1565_v45, %v1438_v32 }
 0x243   : > { %v1454_v15 = vsel %vm5627_vm13, %v4027_v9, 256  ;;  %vm1570_vm5 = vcmp.lt.s32.totalorder %v1567_v40, %v1440_v28  ;;  %vm1625_vm15 = vcmp.eq.s32.totalorder %v3710_v58, %v4177_v13  ;;  %vm5629_vm2 = vcmp.eq.f32.partialorder %v5628_v44, %v3847_v18 }
 0x244   : > { %v1456_v30 = vsel %vm5629_vm2, %v4038_v49, 256  ;;  %vm5631_vm12 = vcmp.eq.f32.partialorder %v5630_v60, %v3847_v18  ;;  %v1569_v21 = vsel %vm1568_vm14, %v1565_v45, %v1438_v32  ;;  %v1571_v53 = vsel %vm1570_vm5, %v1567_v40, %v1440_v28 }
 0x245   : > { %v1458_v26 = vsel %vm5631_vm12, %v4049_v2, 256  ;;  %vm5633_vm0 = vcmp.eq.f32.partialorder %v5632_v55, %v3847_v18  ;;  %vm1572_vm10 = vcmp.lt.s32.totalorder %v1569_v21, %v1442_v20  ;;  %vm1574_vm1 = vcmp.lt.s32.totalorder %v1571_v53, %v1444_v19 }
 0x246   : > { %v1460_v3 = vsel %vm5633_vm0, %v4052_v22, 256  ;;  %vm1623_vm11 = vcmp.eq.s32.totalorder %v3707_v29, %v4177_v13  ;;  %v1573_v6 = vsel %vm1572_vm10, %v1569_v21, %v1442_v20  ;;  %v1575_v0 = vsel %vm1574_vm1, %v1571_v53, %v1444_v19 }
 0x247   : > { %v5634_v1 = vmov 0.0   ;;  %vm1627_vm6 = vcmp.eq.s32.totalorder %v3713_v48, %v4177_v13  ;;  %vm1576_vm4 = vcmp.lt.s32.totalorder %v1573_v6, %v1446_v42  ;;  %vm1578_vm8 = vcmp.lt.s32.totalorder %v1575_v0, %v1448_v63 }
 0x248   : > { %v4223_v57 = vsel %vm1625_vm15, 1.0, %v5634_v1  ;;  %vm5451_vm3 = vcmp.eq.s32.totalorder %v3716_v34, %v4177_v13  ;;  %vm5450_vm7 = vcmp.eq.s32.totalorder %v3719_v23, %v4177_v13  ;;  %v1577_v18 = vsel %vm1576_vm4, %v1573_v6, %v1446_v42 }
 0x249   : > { %v1579_v32 = vsel %vm1578_vm8, %v1575_v0, %v1448_v63  ;;  %v4235_v28 = vsel %vm1623_vm11, 1.0, %v5634_v1  ;;  %vm5440_vm9 = vcmp.eq.s32.totalorder %v3722_v50, %v4177_v13  ;;  %vm1580_vm13 = vcmp.lt.s32.totalorder %v1577_v18, %v1450_v39 }
 0x24a   : > { %vm1582_vm14 = vcmp.lt.s32.totalorder %v1579_v32, %v1452_v4  ;;  %v4243_v20 = vsel %vm1627_vm6, 1.0, %v5634_v1  ;;  %vm5435_vm5 = vcmp.eq.s32.totalorder %v3725_v31, %v4177_v13  ;;  %v1581_v19 = vsel %vm1580_vm13, %v1577_v18, %v1450_v39 }
 0x24b   : > { %v1583_v43 = vsel %vm1582_vm14, %v1579_v32, %v1452_v4  ;;  %v4251_v52 = vsel %vm5451_vm3, 1.0, %v5634_v1  ;;  %v4257_v42 = vsel %vm5450_vm7, 1.0, %v5634_v1  ;;  %vm1584_vm2 = vcmp.lt.s32.totalorder %v1581_v19, %v1454_v15 }
 0x24c   : > { %vm1586_vm12 = vcmp.lt.s32.totalorder %v1583_v43, %v1456_v30  ;;  %v4263_v46 = vsel %vm5440_vm9, 1.0, %v5634_v1  ;;  %vm5436_vm0 = vcmp.eq.s32.totalorder %v3728_v11, %v4177_v13  ;;  %v1585_v63 = vsel %vm1584_vm2, %v1581_v19, %v1454_v15 }
 0x24d   : > { %v1587_v56 = vsel %vm1586_vm12, %v1583_v43, %v1456_v30  ;;  %v4271_v39 = vsel %vm5435_vm5, 1.0, %v5634_v1  ;;  %vm5437_vm10 = vcmp.eq.s32.totalorder %v3731_v5, %v4177_v13  ;;  %vm1588_vm1 = vcmp.lt.s32.totalorder %v1585_v63, %v1458_v26 }
 0x24e   : > { %vm1590_vm4 = vcmp.lt.s32.totalorder %v1587_v56, %v1460_v3  ;;  %vm5439_vm8 = vcmp.eq.s32.totalorder %v3734_v12, %v4177_v13  ;;  %vm5438_vm13 = vcmp.eq.s32.totalorder %v3737_v10, %v4177_v13  ;;  %v1589_v8 = vsel %vm1588_vm1, %v1585_v63, %v1458_v26 }
 0x24f   : > { %v1591_v4 = vsel %vm1590_vm4, %v1587_v56, %v1460_v3  ;;  %vm1655_vm14 = vcmp.eq.s32.totalorder %v3821_v36, %v4177_v13  ;;  %vm1657_vm2 = vcmp.eq.s32.totalorder %v5605_v17, %v4177_v13  ;;  %v4287_v45 = vsel %vm5436_vm0, 1.0, %v5634_v1 }
 0x250   : > { %vm1592_vm12 = vcmp.lt.s32.totalorder %v1589_v8, %v1591_v4  ;;  %vm5441_vm5 = vcmp.eq.s32.totalorder %v3742_v59, %v4177_v13  ;;  %vm5442_vm1 = vcmp.eq.s32.totalorder %v3745_v16, %v4177_v13  ;;  %vm4299_vm4 = vmpackc.low %vm1657_vm2, %vm1655_vm14  ;;  %v5635_v40 = vmov 0 }
 0x251   : > { %v5636_v40 = vsel %vm4299_vm4, 4294967295, %v5635_v40  ;;  %v1593_v35 = vsel %vm1592_vm12, %v1589_v8, %v1591_v4  ;;  %v4307_v15 = vsel %vm5437_vm10, 1.0, %v5634_v1  ;;  %v4313_v44 = vsel %vm5439_vm8, 1.0, %v5634_v1 }
 0x252   : > { %5637 = vst [vmem:[#allocation28_spill] sm:$0xff] %v5636_v40  ;;  %vm5449_vm0 = vcmp.eq.s32.totalorder %v3748_v61, %v4177_v13  ;;  %v1594_v30 = vrot.slane %v1593_v35, 4  ;;  %v4321_v60 = vsel %vm5438_vm13, 1.0, %v5634_v1  ;;  %vm5448_vm12 = vcmp.eq.s32.totalorder %v3815_v25, %v4177_v13 }
 0x253   : > { %vm5447_vm10 = vcmp.eq.s32.totalorder %v3818_v51, %v4177_v13  ;;  %v4331_v26 = vsel %vm5441_vm5, 1.0, %v5634_v1  ;;  %v4337_v21 = vsel %vm5442_vm1, 1.0, %v5634_v1  ;;  %vm5445_vm13 = vcmp.eq.s32.totalorder %v5608_v14, %v4177_v13 }
 0x254   : > { %vm5443_vm8 = vcmp.eq.s32.totalorder %v5610_v41, %v4177_v13  ;;  %vm1595_vm9 = vcmp.lt.s32.totalorder %v1593_v35, %v1594_v30  ;;  %v4347_v53 = vsel %vm5449_vm0, 1.0, %v5634_v1  ;;  %vm5444_vm5 = vcmp.eq.s32.totalorder %v3833_v27, %v4177_v13 }
 0x255   : > { %vm5446_vm1 = vcmp.eq.s32.totalorder %v3836_v7, %v4177_v13  ;;  %v1596_v55 = vsel %vm1595_vm9, %v1593_v35, %v1594_v30  ;;  %v4358_v3 = vsel %vm5448_vm12, 1.0, %v5634_v1  ;;  %v4364_v6 = vsel %vm5447_vm10, 1.0, %v5634_v1 }
 0x256   : > { %v4370_v0 = vsel %vm1655_vm14, 1.0, %v5634_v1  ;;  %v1597_v18 = vrot.slane %v1596_v55, 2  ;;  %v4376_v32 = vsel %vm1657_vm2, 1.0, %v5634_v1  ;;  %v4382_v19 = vsel %vm5445_vm13, 1.0, %v5634_v1 }
 0x257   : > { %v4388_v43 = vsel %vm5443_vm8, 1.0, %v5634_v1  ;;  %v4394_v63 = vsel %vm5444_vm5, 1.0, %v5634_v1  ;;  %v4400_v56 = vsel %vm5446_vm1, 1.0, %v5634_v1  ;;  %vm5466_vm9 = vcmp.eq.s32.totalorder %v3839_v24, %v4177_v13 }
 0x258   : > { %vm5465_vm14 = vcmp.eq.s32.totalorder %v5572_v33, %v4177_v13  ;;  %vm1598_vm2 = vcmp.lt.s32.totalorder %v1596_v55, %v1597_v18  ;;  %vm5464_vm8 = vcmp.eq.s32.totalorder %v5616_v62, %v4177_v13  ;;  %vm5463_vm5 = vcmp.eq.s32.totalorder %v5619_v37, %v4177_v13 }
 0x259   : > { %vm5462_vm13 = vcmp.eq.s32.totalorder %v5622_v47, %v4177_v13  ;;  %v1599_v8 = vsel %vm1598_vm2, %v1596_v55, %v1597_v18  ;;  %vm5461_vm1 = vcmp.eq.s32.totalorder %v4024_v38, %v4177_v13  ;;  %vm5456_vm10 = vcmp.eq.s32.totalorder %v4027_v9, %v4177_v13 }
 0x25a   : > { %vm5454_vm12 = vcmask 7168   ;;  %v1600_v4 = vrot.slane %v1599_v8, 1  ;;  %vm5455_vm0 = vcmp.eq.s32.totalorder %v4038_v49, %v4177_v13  ;;  %vm5457_vm7 = vcmp.eq.s32.totalorder %v4049_v2, %v4177_v13 }
 0x25b   : > { %vm5458_vm3 = vcmp.eq.s32.totalorder %v4052_v22, %v4177_v13  ;;  %397 = vst.msk [vmem:[%s4422_s11 + $0x8] sm:$0xff] %vm5454_vm12, %v5634_v1  ;;  %396 = vst.msk [vmem:[%s4422_s11] sm:$0xff] %vm5454_vm12, %v5634_v1  ;;  %v4524_v35 = vsel %vm5466_vm9, 1.0, %v5634_v1  ;;  %v4530_v30 = vsel %vm5465_vm14, 1.0, %v5634_v1  ;;  %v4536_v55 = vsel %vm5464_vm8, 1.0, %v5634_v1 }
 0x25c   : > { %398 = vst.msk [vmem:[%s4422_s11 + $0x10] sm:$0xff] %vm5454_vm12, %v5634_v1  ;;  %399 = vst.msk [vmem:[%s4422_s11 + $0x18] sm:$0xff] %vm5454_vm12, %v5634_v1  ;;  %v4542_v18 = vsel %vm5463_vm5, 1.0, %v5634_v1  ;;  %vm1601_vm2 = vcmp.lt.s32.totalorder %v1599_v8, %v1600_v4  ;;  %v4548_v40 = vsel %vm5462_vm13, 1.0, %v5634_v1  ;;  %v4554_v54 = vsel %vm5461_vm1, 1.0, %v5634_v1 }
 0x25d   : > { %400 = vst.msk [vmem:[%s4422_s11 + $0x20] sm:$0xff] %vm5454_vm12, %v5634_v1  ;;  %401 = vst.msk [vmem:[%s4422_s11 + $0x28] sm:$0xff] %vm5454_vm12, %v5634_v1 }
 0x25e   : > { %402 = vst.msk [vmem:[%s4422_s11 + $0x30] sm:$0xff] %vm5454_vm12, %v5634_v1  ;;  %403 = vst.msk [vmem:[%s4422_s11 + $0x38] sm:$0xff] %vm5454_vm12, %v5634_v1 }
 0x25f   : > { %404 = vst.msk [vmem:[%s4422_s11 + $0x40] sm:$0xff] %vm5454_vm12, %v5634_v1  ;;  %405 = vst.msk [vmem:[%s4422_s11 + $0x48] sm:$0xff] %vm5454_vm12, %v5634_v1 }
 0x260   : > { %406 = vst.msk [vmem:[%s4422_s11 + $0x50] sm:$0xff] %vm5454_vm12, %v5634_v1  ;;  %407 = vst.msk [vmem:[%s4422_s11 + $0x58] sm:$0xff] %vm5454_vm12, %v5634_v1 }
 0x261   : > { %408 = vst.msk [vmem:[%s4422_s11 + $0x60] sm:$0xff] %vm5454_vm12, %v5634_v1  ;;  %409 = vst.msk [vmem:[%s4422_s11 + $0x68] sm:$0xff] %vm5454_vm12, %v5634_v1 }
 0x262   : > { %410 = vst.msk [vmem:[%s4422_s11 + $0x70] sm:$0xff] %vm5454_vm12, %v5634_v1  ;;  %411 = vst.msk [vmem:[%s4422_s11 + $0x78] sm:$0xff] %vm5454_vm12, %v5634_v1 }
 0x263   : > { %412 = vst.msk [vmem:[%s4422_s11 + $0x80] sm:$0xff] %vm5454_vm12, %v5634_v1  ;;  %413 = vst.msk [vmem:[%s4422_s11 + $0x88] sm:$0xff] %vm5454_vm12, %v5634_v1 }
 0x264   : > { %414 = vst.msk [vmem:[%s4422_s11 + $0x90] sm:$0xff] %vm5454_vm12, %v5634_v1  ;;  %415 = vst.msk [vmem:[%s4422_s11 + $0x98] sm:$0xff] %vm5454_vm12, %v5634_v1 }
 0x265   : > { %416 = vst.msk [vmem:[%s4422_s11 + $0xa0] sm:$0xff] %vm5454_vm12, %v5634_v1  ;;  %417 = vst.msk [vmem:[%s4422_s11 + $0xa8] sm:$0xff] %vm5454_vm12, %v5634_v1 }
 0x266   : > { %418 = vst.msk [vmem:[%s4422_s11 + $0xb0] sm:$0xff] %vm5454_vm12, %v5634_v1  ;;  %419 = vst.msk [vmem:[%s4422_s11 + $0xb8] sm:$0xff] %vm5454_vm12, %v5634_v1 }
 0x267   : > { %420 = vst.msk [vmem:[%s4422_s11 + $0xc0] sm:$0xff] %vm5454_vm12, %v5634_v1  ;;  %421 = vst.msk [vmem:[%s4422_s11 + $0xc8] sm:$0xff] %vm5454_vm12, %v5634_v1 }
 0x268   : > { %422 = vst.msk [vmem:[%s4422_s11 + $0xd0] sm:$0xff] %vm5454_vm12, %v5634_v1  ;;  %423 = vst.msk [vmem:[%s4422_s11 + $0xd8] sm:$0xff] %vm5454_vm12, %v5634_v1 }
 0x269   : > { %424 = vst.msk [vmem:[%s4422_s11 + $0xe0] sm:$0xff] %vm5454_vm12, %v5634_v1  ;;  %425 = vst.msk [vmem:[%s4422_s11 + $0xe8] sm:$0xff] %vm5454_vm12, %v5634_v1 }
 0x26a   : > { %426 = vst.msk [vmem:[%s4422_s11 + $0xf0] sm:$0xff] %vm5454_vm12, %v5634_v1  ;;  %427 = vst.msk [vmem:[%s4422_s11 + $0xf8] sm:$0xff] %vm5454_vm12, %v5634_v1 }
 0x26b   : > { %5638 = vst [vmem:[#allocation29_spill] sm:$0xff] %v4530_v30  ;;  %5639 = vst [vmem:[#allocation30_spill] sm:$0xff] %v4536_v55  ;;  %v4560_v55 = vsel %vm5456_vm10, 1.0, %v5634_v1  ;;  %v4568_v30 = vsel %vm5455_vm0, 1.0, %v5634_v1 }
 0x26c   : > { %5640 = vst [vmem:[#allocation33_spill] sm:$0xff] %v4542_v18  ;;  %5641 = vst [vmem:[#allocation36_spill] sm:$0xff] %v4548_v40  ;;  %v4562_v18 = vsel %vm1601_vm2, %v1599_v8, %v1600_v4  ;;  %v4574_v40 = vsel %vm5457_vm7, 1.0, %v5634_v1 }
 0x26d   : > { %5642 = vst [vmem:[#allocation38_spill] sm:$0xff] %v4554_v54  ;;  %5643 = vst [vmem:[#allocation40_spill] sm:$0xff] %v4560_v55  ;;  %v4580_v54 = vsel %vm5458_vm3, 1.0, %v5634_v1  ;;  %vm1624_vm2 = vcmp.eq.s32.totalorder %v3707_v29, %v4562_v18  ;;  %vm1626_vm12 = vcmp.eq.s32.totalorder %v3710_v58, %v4562_v18  ;;  %vm1628_vm0 = vcmp.eq.s32.totalorder %v3713_v48, %v4562_v18 }
 0x26e   : > { %5644 = vst [vmem:[#allocation37_spill] sm:$0xff] %v4568_v30  ;;  %5645 = vst [vmem:[#allocation60_spill] sm:$0xff] %v4574_v40  ;;  %vm1630_vm10 = vcmp.eq.s32.totalorder %v3716_v34, %v4562_v18  ;;  %v2445_v8 = vsel %vm1626_vm12, 1.0, %v5634_v1  ;;  %v2443_v4 = vsel %vm1624_vm2, 1.0, %v5634_v1  ;;  %vm1632_vm3 = vcmp.eq.s32.totalorder %v3719_v23, %v4562_v18 }
 0x26f   : > { %5646 = vst [vmem:[#allocation39_spill] sm:$0xff] %v4580_v54  ;;  %vm2590_vm7 = vmpackc.low %vm1626_vm12, %vm1624_vm2  ;;  %v2447_v54 = vsel %vm1628_vm0, 1.0, %v5634_v1  ;;  %v3087_v40 = vmov 1.0|1.0   ;;  %v1931_v30 = vadd.f32 %v2445_v8, %v4223_v57  ;;  %v1928_v22 = vadd.f32 %v2443_v4, %v4235_v28 }
 0x270   : > { %2591 = vmatprep.subr.msk.bf16.mxu1 %vm2590_vm7, %v3087_v40  ;;  %vm2592_vm12 = vmpackc.low %vm1625_vm15, %vm1623_vm11  ;;  %v1934_v55 = vadd.f32 %v2447_v54, %v4243_v20  ;;  %vm1634_vm2 = vcmp.eq.s32.totalorder %v3722_v50, %v4562_v18  ;;  %v2449_v29 = vsel %vm1630_vm10, 1.0, %v5634_v1  ;;  %v2451_v58 = vsel %vm1632_vm3, 1.0, %v5634_v1 }
 0x271   : > { %2593 = vmatpush1.bf16.msk.msra.mxu1 %vm2592_vm12, %v3087_v40  ;;  %vm2594_vm7 = vmpackc.low %vm1630_vm10, %vm1628_vm0  ;;  %vm1636_vm15 = vcmp.eq.s32.totalorder %v3725_v31, %v4562_v18  ;;  %vm1638_vm11 = vcmp.eq.s32.totalorder %v3728_v11, %v4562_v18  ;;  %1932 = vadd.xlane.f32.xlu0 %v1931_v30  ;;  %v1937_v54 = vadd.f32 %v2449_v29, %v4251_v52  ;;  %v2453_v28 = vsel %vm1634_vm2, 1.0, %v5634_v1 }
 0x272   : > { %2595 = vmatprep.subr.msk.bf16.mxu1 %vm2594_vm7, %v3087_v40  ;;  %v1940_v57 = vadd.f32 %v2451_v58, %v4257_v42  ;;  %v2455_v20 = vsel %vm1636_vm15, 1.0, %v5634_v1  ;;  %1929 = vadd.xlane.f32.xlu1 %v1928_v22  ;;  %v1943_v8 = vadd.f32 %v2453_v28, %v4263_v46  ;;  %vm1640_vm0 = vcmp.eq.s32.totalorder %v3731_v5, %v4562_v18 }
 0x273   : > { %v1946_v30 = vadd.f32 %v2455_v20, %v4271_v39  ;;  %vm1642_vm10 = vcmp.eq.s32.totalorder %v3734_v12, %v4562_v18  ;;  %vm5647_vm12 = vcmp.eq.s32.totalorder %v3716_v34, %v4177_v13  ;;  %v2457_v22 = vsel %vm1638_vm11, 1.0, %v5634_v1 }
 0x274   : > { %vm2596_vm7 = vmpackc.low %vm5647_vm12, %vm1627_vm6  ;;  %v2459_v52 = vsel %vm1640_vm0, 1.0, %v5634_v1  ;;  %vm1644_vm1 = vcmp.eq.s32.totalorder %v3737_v10, %v4562_v18  ;;  %vm1646_vm13 = vcmp.eq.s32.totalorder %v3742_v59, %v4562_v18  ;;  %v1949_v48 = vadd.f32 %v2457_v22, %v4287_v45 }
 0x275   : > { %2597 = vmatpush1.bf16.msk.msra.mxu1 %vm2596_vm7, %v3087_v40  ;;  %vm2598_vm6 = vmpackc.low %vm1634_vm2, %vm1632_vm3  ;;  %v4667_v34 = vadd.f32 %v2459_v52, %v4307_v15  ;;  %v2461_v42 = vsel %vm1642_vm10, 1.0, %v5634_v1  ;;  %v2463_v46 = vsel %vm1644_vm1, 1.0, %v5634_v1  ;;  %1935 = vadd.xlane.f32.xlu0 %v1934_v55  ;;  %vm1648_vm3 = vcmp.eq.s32.totalorder %v3745_v16, %v4562_v18  ;;  %v5656_v52 = vld [vmem:[#allocation33_spill] sm:$0xff] }
 0x276   : > { %2599 = vmatprep.subr.msk.bf16.mxu1 %vm2598_vm6, %v3087_v40  ;;  %v4679_v39 = vadd.f32 %v2461_v42, %v4313_v44  ;;  %v4682_v45 = vadd.f32 %v2463_v46, %v4321_v60  ;;  %v2465_v15 = vsel %vm1646_vm13, 1.0, %v5634_v1  ;;  %1938 = vadd.xlane.f32.xlu1 %v1937_v54  ;;  %vm1650_vm2 = vcmp.eq.s32.totalorder %v3748_v61, %v4562_v18  ;;  %v5657_v42 = vld [vmem:[#allocation36_spill] sm:$0xff] }
 0x277   : > { %v4693_v55 = vadd.f32 %v2465_v15, %v4331_v26  ;;  %v2467_v44 = vsel %vm1648_vm3, 1.0, %v5634_v1  ;;  %vm1652_vm12 = vcmp.eq.s32.totalorder %v3815_v25, %v4562_v18  ;;  %vm5648_vm7 = vcmp.eq.s32.totalorder %v3719_v23, %v4177_v13 }
 0x278   : > { %vm5649_vm6 = vcmp.eq.s32.totalorder %v3722_v50, %v4177_v13  ;;  %v4708_v60 = vadd.f32 %v2467_v44, %v4337_v21  ;;  %vm1654_vm8 = vcmp.eq.s32.totalorder %v3818_v51, %v4562_v18  ;;  %v2469_v26 = vsel %vm1650_vm2, 1.0, %v5634_v1 }
 0x279   : > { %vm2600_vm5 = vmpackc.low %vm5649_vm6, %vm5648_vm7  ;;  %v2471_v23 = vsel %vm1652_vm12, 1.0, %v5634_v1  ;;  %v4728_v50 = vadd.f32 %v2469_v26, %v4347_v53  ;;  %vm5468_vm6 = vcmp.eq.s32.totalorder %v3821_v36, %v4562_v18  ;;  %vm5467_vm14 = vcmp.eq.s32.totalorder %v5605_v17, %v4562_v18  ;;  %1941 = vadd.xlane.f32.xlu0 %v1940_v57 }
 0x27a   : > { %2601 = vmatpush1.bf16.msk.msra.mxu1 %vm2600_vm5, %v3087_v40  ;;  %vm2602_vm7 = vmpackc.low %vm1638_vm11, %vm1636_vm15  ;;  %v4731_v21 = vadd.f32 %v2471_v23, %v4358_v3  ;;  %v2473_v4 = vsel %vm1654_vm8, 1.0, %v5634_v1  ;;  %v2475_v53 = vsel %vm5468_vm6, 1.0, %v5634_v1  ;;  %vm1660_vm5 = vcmp.eq.s32.totalorder %v5608_v14, %v4562_v18  ;;  %1944 = vadd.xlane.f32.xlu1 %v1943_v8 }
 0x27b   : > { %2603 = vmatprep.subr.msk.bf16.mxu1 %vm2602_vm7, %v3087_v40  ;;  %vm5472_vm15 = vcmp.eq.s32.totalorder %v5610_v41, %v4562_v18  ;;  %v4751_v3 = vadd.f32 %v2473_v4, %v4364_v6  ;;  %v4754_v29 = vadd.f32 %v2475_v53, %v4370_v0  ;;  %v2477_v58 = vsel %vm5467_vm14, 1.0, %v5634_v1  ;;  %v5662_v4 = vld [vmem:[#allocation26_spill] sm:$0xff] }
 0x27c   : > { %v2479_v54 = vsel %vm1660_vm5, 1.0, %v5634_v1  ;;  %vm5650_vm11 = vcmp.eq.s32.totalorder %v3725_v31, %v4177_v13  ;;  %vm5651_vm7 = vcmp.eq.s32.totalorder %v3728_v11, %v4177_v13  ;;  %v4771_v6 = vadd.f32 %v2477_v58, %v4376_v32 }
 0x27d   : > { %vm2604_vm9 = vmpackc.low %vm5651_vm7, %vm5650_vm11  ;;  %v4774_v0 = vadd.f32 %v2479_v54, %v4382_v19  ;;  %vm5471_vm14 = vcmp.eq.s32.totalorder %v3833_v27, %v4562_v18  ;;  %vm5469_vm6 = vcmp.eq.s32.totalorder %v3836_v7, %v4562_v18  ;;  %v2481_v31 = vsel %vm5472_vm15, 1.0, %v5634_v1  ;;  %1947 = vadd.xlane.f32.xlu0 %v1946_v30  ;;  %v5664_v54 = vld [vmem:[#allocation60_spill] sm:$0xff] }
 0x27e   : > { %2605 = vmatpush1.bf16.msk.msra.mxu1 %vm2604_vm9, %v3087_v40  ;;  %vm2606_vm11 = vmpackc.low %vm1642_vm10, %vm1640_vm0  ;;  %v2483_v11 = vsel %vm5471_vm14, 1.0, %v5634_v1  ;;  %vm5470_vm9 = vcmp.eq.s32.totalorder %v3839_v24, %v4562_v18  ;;  %vm1670_vm7 = vcmp.eq.s32.totalorder %v5572_v33, %v4562_v18  ;;  %v4801_v32 = vadd.f32 %v2481_v31, %v4388_v43  ;;  %1950 = vadd.xlane.f32.xlu1 %v1949_v48 }
 0x27f   : > { %2607 = vmatprep.subr.msk.bf16.mxu1 %vm2606_vm11, %v3087_v40  ;;  %v4804_v19 = vadd.f32 %v2483_v11, %v4394_v63  ;;  %v2485_v57 = vsel %vm5469_vm6, 1.0, %v5634_v1  ;;  %v2487_v28 = vsel %vm5470_vm9, 1.0, %v5634_v1  ;;  %vm1672_vm0 = vcmp.eq.s32.totalorder %v5616_v62, %v4562_v18 }
 0x280   : > { %v4815_v20 = vadd.f32 %v2485_v57, %v4400_v56  ;;  %v4818_v43 = vadd.f32 %v2487_v28, %v4524_v35  ;;  %vm1674_vm10 = vcmp.eq.s32.totalorder %v5619_v37, %v4562_v18  ;;  %vm5652_vm11 = vcmp.eq.s32.totalorder %v3731_v5, %v4177_v13  ;;  %v5654_v5 = vld [vmem:[#allocation29_spill] sm:$0xff]  ;;  %v5655_v35 = vld [vmem:[#allocation30_spill] sm:$0xff]  ;;  %v5665_v28 = vld [vmem:[#allocation39_spill] sm:$0xff] }
 0x281   : > { %vm5653_vm6 = vcmp.eq.s32.totalorder %v3734_v12, %v4177_v13  ;;  %v2489_v63 = vsel %vm1670_vm7, 1.0, %v5634_v1  ;;  %v2491_v56 = vsel %vm1672_vm0, 1.0, %v5634_v1  ;;  %vm5474_vm14 = vcmp.eq.s32.totalorder %v5622_v47, %v4562_v18  ;;  %1953 = vadd.xlane.f32.xlu0 %v4667_v34  ;;  %v5658_v34 = vld [vmem:[#allocation38_spill] sm:$0xff] }
 0x282   : > { %vm2608_vm9 = vmpackc.low %vm5653_vm6, %vm5652_vm11  ;;  %vm5473_vm15 = vcmp.eq.s32.totalorder %v4024_v38, %v4562_v18  ;;  %v4850_v12 = vadd.f32 %v2489_v63, %v5654_v5  ;;  %v4853_v8 = vadd.f32 %v2491_v56, %v5655_v35  ;;  %v2493_v30 = vsel %vm1674_vm10, 1.0, %v5634_v1  ;;  %1956 = vadd.xlane.f32.xlu1 %v4679_v39  ;;  %v5661_v39 = vld [vmem:[#allocation40_spill] sm:$0xff]  ;;  %v5666_v56 = vld [vmem:[#allocation27_spill] sm:$0xff] }
 0x283   : > { %2609 = vmatpush1.bf16.msk.msra.mxu1 %vm2608_vm9, %v3087_v40  ;;  %vm2610_vm6 = vmpackc.low %vm1646_vm13, %vm1644_vm1  ;;  %v2495_v22 = vsel %vm5474_vm14, 1.0, %v5634_v1  ;;  %v4866_v48 = vadd.f32 %v2493_v30, %v5656_v52  ;;  %vm1680_vm13 = vcmp.eq.s32.totalorder %v4027_v9, %v4562_v18  ;;  %v2497_v15 = vsel %vm5473_vm15, 1.0, %v5634_v1 }
 0x284   : > { %2611 = vmatprep.subr.msk.bf16.mxu1 %vm2610_vm6, %v3087_v40  ;;  %v4869_v46 = vadd.f32 %v2495_v22, %v5657_v42  ;;  %vm1682_vm1 = vcmp.eq.s32.totalorder %v4038_v49, %v4562_v18  ;;  %v4881_v44 = vadd.f32 %v2497_v15, %v5658_v34  ;;  %v2499_v26 = vsel %vm1680_vm13, 1.0, %v5634_v1 }
 0x285   : > { %vm1684_vm9 = vcmp.eq.s32.totalorder %v4049_v2, %v4562_v18  ;;  %vm5659_vm11 = vcmp.eq.s32.totalorder %v3737_v10, %v4177_v13  ;;  %vm5660_vm6 = vcmp.eq.s32.totalorder %v3742_v59, %v4177_v13  ;;  %v4896_v23 = vadd.f32 %v2499_v26, %v5661_v39  ;;  %v5663_v59 = vld [vmem:[#allocation37_spill] sm:$0xff]  ;;  %1959 = vadd.xlane.f32.xlu0 %v4682_v45 }
 0x286   : > { %vm2612_vm15 = vmpackc.low %vm5660_vm6, %vm5659_vm11  ;;  %vm1686_vm14 = vcmp.eq.s32.totalorder %v5662_v4, %v4562_v18  ;;  %v2501_v53 = vsel %vm1682_vm1, 1.0, %v5634_v1  ;;  %v2503_v10 = vsel %vm1684_vm9, 1.0, %v5634_v1  ;;  %v1603_v57 = vcombine.low %v4177_v13, %v4562_v18  ;;  %1962 = vadd.xlane.f32.xlu1 %v4693_v55  ;;  %v1900_v55 = vld [vmem:[%s4422_s11 + $0x20] sm:$0xff] }
 0x287   : > { %2613 = vmatpush1.bf16.msk.msra.mxu1 %vm2612_vm15, %v3087_v40  ;;  %vm2614_vm11 = vmpackc.low %vm1650_vm2, %vm1648_vm3  ;;  %v4916_v58 = vadd.f32 %v2501_v53, %v5663_v59  ;;  %v4919_v31 = vadd.f32 %v2503_v10, %v5664_v54  ;;  %v2505_v11 = vsel %vm1686_vm14, 1.0, %v5634_v1  ;;  %vm5667_vm3 = vcmp.eq.s32.totalorder %v3745_v16, %v4177_v13 }
 0x288   : > { %2615 = vmatprep.subr.msk.bf16.mxu1 %vm2614_vm11, %v3087_v40  ;;  %v4931_v63 = vadd.f32 %v2505_v11, %v5665_v28  ;;  %v1610_v5 = vrot.slane %v1603_v57, %v5666_v56  ;;  %vm5668_vm2 = vcmp.eq.s32.totalorder %v3748_v61, %v4177_v13  ;;  %v5669_v35 = vlaneseq  ;;  %vm2618_vm11 = vmpackc.low %vm1654_vm8, %vm1652_vm12 }
 0x289   : > { %vm2616_vm15 = vmpackc.low %vm5668_vm2, %vm5667_vm3  ;;  %1965 = vadd.xlane.f32.xlu0 %v4708_v60  ;;  %vm5670_vm3 = vcmp.eq.s32.totalorder %v3815_v25, %v4177_v13  ;;  %vm5671_vm2 = vcmp.eq.s32.totalorder %v3818_v51, %v4177_v13  ;;  %vm5672_vm12 = vcmp.eq.s32.totalorder %v3821_v36, %v4562_v18  ;;  %v1901_v60 = vld [vmem:[%s4422_s11 + $0x28] sm:$0xff] }
 0x28a   : > { %vm1620_vm6 = vcmp.lt.s32.totalorder %v5669_v35, 256  ;;  %v1617_v45 = vrot.slane %v1610_v5, %v5666_v56  ;;  %1968 = vadd.xlane.f32.xlu1 %v4728_v50  ;;  %vm2620_vm8 = vmpackc.low %vm5671_vm2, %vm5670_vm3  ;;  %vm428_vm2 = vcmask 0  }
 0x28b   : > { %2617 = vmatpush1.bf16.msk.msra.mxu1 %vm2616_vm15, %v3087_v40  ;;  %vm5673_vm15 = vcmp.eq.s32.totalorder %v5605_v17, %v4562_v18  ;;  %429 = vst.msk [vmem:[%s4991_s10] sm:$0x1] %vm428_vm2, %v5634_v1 }
 0x28c   : > { %2619 = vmatprep.subr.msk.bf16.mxu1 %vm2618_vm11, %v3087_v40  ;;  %1622 = vst.msk [vmem:[%s4953_s24] sm:$0x3] %vm1620_vm6, %v1617_v45  ;;  %vm2622_vm11 = vmpackc.low %vm5673_vm15, %vm5672_vm12  ;;  %vm5675_vm6 = vcmp.eq.s32.totalorder %v5610_v41, %v4562_v18  ;;  %vm5679_vm15 = vcmp.eq.s32.totalorder %v3836_v7, %v4562_v18 }
 0x28d   : > { %1971 = vadd.xlane.f32.xlu0 %v4731_v21  ;;  %vm2626_vm3 = vmpackc.low %vm5675_vm6, %vm1660_vm5  ;;  %vm5678_vm5 = vcmp.eq.s32.totalorder %v3833_v27, %v4562_v18  ;;  %vm5680_vm6 = vcmp.eq.s32.totalorder %v3833_v27, %v4177_v13  ;;  %v468_v27 = vld [vmem:[#allocation7 + $0x10] sm:$0xff] }
 0x28e   : > { %1974 = vadd.xlane.f32.xlu1 %v4751_v3 }
 0x28f   : > { %2621 = vmatpush1.bf16.msk.msra.mxu1 %vm2620_vm8, %v3087_v40  ;;  %vm5676_vm8 = vcmp.eq.s32.totalorder %v5608_v14, %v4177_v13 }
 0x290   : > { %2623 = vmatprep.subr.msk.bf16.mxu1 %vm2622_vm11, %v3087_v40  ;;  %vm2630_vm11 = vmpackc.low %vm5679_vm15, %vm5678_vm5  ;;  %vm5683_vm5 = vcmp.eq.s32.totalorder %v3839_v24, %v4177_v13  ;;  %vm5684_vm15 = vcmp.eq.s32.totalorder %v5572_v33, %v4177_v13 }
 0x291   : > { %1977 = vadd.xlane.f32.xlu0 %v4754_v29 }
 0x292   : > { %1980 = vadd.xlane.f32.xlu1 %v4771_v6  ;;  %v1902_v6 = vld [vmem:[%s4422_s11 + $0x30] sm:$0xff] }
 0x293   : > { %2625 = vmatpush1.bf16.msk.msra.mxu1 %vm4299_vm4, %v3087_v40  ;;  %vm5677_vm4 = vcmp.eq.s32.totalorder %v5610_v41, %v4177_v13 }
 0x294   : > { %2627 = vmatprep.subr.msk.bf16.mxu1 %vm2626_vm3, %v3087_v40  ;;  %vm2628_vm12 = vmpackc.low %vm5677_vm4, %vm5676_vm8  ;;  %vm5681_vm3 = vcmp.eq.s32.totalorder %v3836_v7, %v4177_v13  ;;  %vm5682_vm4 = vcmp.eq.s32.totalorder %v3839_v24, %v4562_v18  ;;  %v466_v7 = vld [vmem:[#allocation7] sm:$0xff]  ;;  %v469_v24 = vld [vmem:[#allocation7 + $0x18] sm:$0xff] }
 0x295   : > { %1983 = vadd.xlane.f32.xlu0 %v4774_v0  ;;  %vm2632_vm8 = vmpackc.low %vm5681_vm3, %vm5680_vm6  ;;  %vm5685_vm6 = vcmp.eq.s32.totalorder %v5616_v62, %v4177_v13  ;;  %vm5686_vm3 = vcmp.eq.s32.totalorder %v5619_v37, %v4177_v13  ;;  %v1898_v62 = vld [vmem:[%s4422_s11 + $0x10] sm:$0xff]  ;;  %v1899_v37 = vld [vmem:[%s4422_s11 + $0x18] sm:$0xff] }
 0x296   : > { %1986 = vadd.xlane.f32.xlu1 %v4801_v32  ;;  %v1903_v0 = vld [vmem:[%s4422_s11 + $0x38] sm:$0xff] }
 0x297   : > { %2629 = vmatpush1.bf16.msk.msra.mxu1 %vm2628_vm12, %v3087_v40  ;;  %vm2634_vm12 = vmpackc.low %vm1670_vm7, %vm5682_vm4  ;;  %vm5687_vm4 = vcmp.eq.s32.totalorder %v5622_v47, %v4562_v18 }
 0x298   : > { %2631 = vmatprep.subr.msk.bf16.mxu1 %vm2630_vm11, %v3087_v40  ;;  %vm2636_vm11 = vmpackc.low %vm5684_vm15, %vm5683_vm5  ;;  %vm5690_vm5 = vcmp.eq.s32.totalorder %v4024_v38, %v4177_v13 }
 0x299   : > { %1989 = vadd.xlane.f32.xlu0 %v4804_v19  ;;  %vm2638_vm7 = vmpackc.low %vm1674_vm10, %vm1672_vm0  ;;  %vm5688_vm0 = vcmp.eq.s32.totalorder %v4024_v38, %v4562_v18 }
 0x29a   : > { %1992 = vadd.xlane.f32.xlu1 %v4815_v20  ;;  %vm2642_vm10 = vmpackc.low %vm5688_vm0, %vm5687_vm4 }
 0x29b   : > { %2633 = vmatpush1.bf16.msk.msra.mxu1 %vm2632_vm8, %v3087_v40  ;;  %vm2640_vm8 = vmpackc.low %vm5686_vm3, %vm5685_vm6  ;;  %vm5692_vm6 = vcmp.eq.s32.totalorder %v4038_v49, %v4177_v13  ;;  %v1897_v49 = vld [vmem:[%s4422_s11 + $0x8] sm:$0xff] }
 0x29c   : > { %2635 = vmatprep.subr.msk.bf16.mxu1 %vm2634_vm12, %v3087_v40  ;;  %vm5689_vm12 = vcmp.eq.s32.totalorder %v5622_v47, %v4177_v13 }
 0x29d   : > { %1995 = vadd.xlane.f32.xlu0 %v4818_v43  ;;  %vm2644_vm15 = vmpackc.low %vm5690_vm5, %vm5689_vm12 }
 0x29e   : > { %1998 = vadd.xlane.f32.xlu1 %v4850_v12  ;;  %v1904_v12 = vld [vmem:[%s4422_s11 + $0x40] sm:$0xff] }
 0x29f   : > { %2637 = vmatpush1.bf16.msk.msra.mxu1 %vm2636_vm11, %v3087_v40  ;;  %vm2646_vm11 = vmpackc.low %vm1682_vm1, %vm1680_vm13  ;;  %vm5693_vm1 = vcmp.eq.s32.totalorder %v4049_v2, %v4177_v13  ;;  %v1896_v2 = vld [vmem:[%s4422_s11] sm:$0xff] }
 0x2a0   : > { %2639 = vmatprep.subr.msk.bf16.mxu1 %vm2638_vm7, %v3087_v40  ;;  %vm5691_vm7 = vcmp.eq.s32.totalorder %v4027_v9, %v4177_v13  ;;  %vm2650_vm13 = vmpackc.low %vm1686_vm14, %vm1684_vm9  ;;  %vm5695_vm14 = vcmask 7168  }
 0x2a1   : > { %2001 = vadd.xlane.f32.xlu0 %v4853_v8  ;;  %vm2648_vm3 = vmpackc.low %vm5692_vm6, %vm5691_vm7 }
 0x2a2   : > { %2004 = vadd.xlane.f32.xlu1 %v4866_v48  ;;  %vm5696_vm9 = vmmov %vm5695_vm14 }
 0x2a3   : > { %2641 = vmatpush1.bf16.msk.msra.mxu1 %vm2640_vm8, %v3087_v40  ;;  %vm5694_vm8 = vcmp.eq.s32.totalorder %v5662_v4, %v4177_v13  ;;  %vm5697_vm0 = vmmov %vm5696_vm9 }
 0x2a4   : > { %2643 = vmatprep.subr.msk.bf16.mxu1 %vm2642_vm10, %v3087_v40  ;;  %vm2652_vm4 = vmpackc.low %vm5694_vm8, %vm5693_vm1 }
 0x2a5   : > { %2007 = vadd.xlane.f32.xlu0 %v4869_v46  ;;  %vm5698_vm10 = vmmov %vm5697_vm0 }
 0x2a6   : > { %2010 = vadd.xlane.f32.xlu1 %v4881_v44  ;;  %vm5699_vm12 = vmmov %vm5697_vm0 }
 0x2a7   : > { %2645 = vmatpush1.bf16.msk.msra.mxu1 %vm2644_vm15, %v3087_v40  ;;  %vm5700_vm5 = vmmov %vm5697_vm0 }
 0x2a8   : > { %2647 = vmatprep.subr.msk.bf16.mxu1 %vm2646_vm11, %v3087_v40 }
 0x2a9   : > { %2013 = vadd.xlane.f32.xlu0 %v4896_v23 }
 0x2aa   : > { %2016 = vadd.xlane.f32.xlu1 %v4916_v58 }
 0x2ab   : > { %2649 = vmatpush1.bf16.msk.msra.mxu1 %vm2648_vm3, %v3087_v40 }
 0x2ac   : > { %2651 = vmatprep.subr.msk.bf16.mxu1 %vm2650_vm13, %v3087_v40 }
 0x2ad   : > { %2019 = vadd.xlane.f32.xlu0 %v4919_v31 }
 0x2ae   : > { %2022 = vadd.xlane.f32.xlu1 %v4931_v63 }
 0x2af   : > { %2653 = vmatpush1.bf16.msk.msra.mxu1 %vm2652_vm4, %v3087_v40 }
 0x2b2   : > { %1880 = vmatmul.mubr.f32.vlgmr.msra.gmra.mrb[0].mxu1 %v466_v7 }
 0x2b3   : > { %1885 = vmatprep.mubr.f32.mxu1 %v469_v24 }
 0x2b6   : > { %1886 = vmatmul.mubr.f32.gmra.mrb[2].mxu1 %v468_v27 }
 0x2c1   : > { %v2097_v9 = vpop.xlane.xlu0 %2096 }
 0x2c2   : > { %v2098_v61 = vrot.slane %v2097_v9, 4 }
 0x2c4   : > { %v2099_v25 = vadd.f32 %v2098_v61, %v2097_v9 }
 0x2c6   : > { %v2100_v51 = vrot.slane %v2099_v25, 2 }
 0x2c8   : > { %v2101_v36 = vadd.f32 %v2100_v51, %v2099_v25 }
 0x2ca   : > { %v2102_v33 = vrot.slane %v2101_v36, 1 }
 0x2cc   : > { %v2103_v38 = vadd.f32 %v2102_v33, %v2101_v36 }
 0x2ce   : > { %2654 = vpush %v2103_v38 }
 0x2fe   : > { %v1933_v17 = vpop.xlane.xlu0 %1932 }
 0x2ff   : > { %v2025_v14 = vadd.f32 %v1933_v17, %v1897_v49  ;;  %v1930_v41 = vpop.xlane.xlu1 %1929 }
 0x300   : > { %v2024_v13 = vadd.f32 %v1930_v41, %v1896_v2 }
 0x301   : > { %2058 = vst.msk [vmem:[%s4422_s11 + $0x8] sm:$0xff] %vm5695_vm14, %v2025_v14 }
 0x302   : > { %2057 = vst.msk [vmem:[%s4422_s11] sm:$0xff] %vm5696_vm9, %v2024_v13  ;;  %v1936_v47 = vpop.xlane.xlu0 %1935 }
 0x303   : > { %v2026_v1 = vadd.f32 %v1936_v47, %v1898_v62  ;;  %v1939_v40 = vpop.xlane.xlu1 %1938 }
 0x304   : > { %v2027_v18 = vadd.f32 %v1939_v40, %v1899_v37 }
 0x305   : > { %2059 = vst.msk [vmem:[%s4422_s11 + $0x10] sm:$0xff] %vm5697_vm0, %v2026_v1 }
 0x306   : > { %2060 = vst.msk [vmem:[%s4422_s11 + $0x18] sm:$0xff] %vm5698_vm10, %v2027_v18  ;;  %v1942_v50 = vpop.xlane.xlu0 %1941 }
 0x307   : > { %v2028_v21 = vadd.f32 %v1942_v50, %v1900_v55  ;;  %v1945_v3 = vpop.xlane.xlu1 %1944 }
 0x308   : > { %v2029_v29 = vadd.f32 %v1945_v3, %v1901_v60 }
 0x309   : > { %2061 = vst.msk [vmem:[%s4422_s11 + $0x20] sm:$0xff] %vm5699_vm12, %v2028_v21 }
 0x30a   : > { %2062 = vst.msk [vmem:[%s4422_s11 + $0x28] sm:$0xff] %vm5700_vm5, %v2029_v29  ;;  %v1948_v32 = vpop.xlane.xlu0 %1947 }
 0x30b   : > { %v2030_v19 = vadd.f32 %v1948_v32, %v1902_v6  ;;  %v1951_v20 = vpop.xlane.xlu1 %1950 }
 0x30c   : > { %v2031_v43 = vadd.f32 %v1951_v20, %v1903_v0 }
 0x30d   : > { %2905 = shalt.err (!%p2902_p8)
}
 0x30e   : > { %s2906_s24 = scalar_lea.hbm %s5118_s13, 32  ;;  %s2910_s21 = scalar_lea.hbm %s5354_s5, 64 }
 0x30f   : > { %p2907_p12 = scmp.ne.s32.totalorder %s5118_s13, %s2906_s24  ;;  %p2911_p13 = scmp.lt.u32.totalorder %s5118_s13, %s5354_s5 }
 0x310   : > { %p2912_p6 = scmp.lt.u32.totalorder %s2910_s21, %s2906_s24  ;;  %p2914_p11 = scmp.lt.u32.totalorder %s2906_s24, %s5118_s13 }
 0x311   : > { %p2908_p1 = pnand %p2907_p12, %p3297_p3 }
 0x312   : > { %p2913_p10 = por %p2912_p6, %p2911_p13 }
 0x313   : > { %p2909_p7 = pneg %p2908_p1 }
 0x314   : > { %p2915_p5 = por %p2914_p11, %p2913_p10 }
 0x316   : > { %p2916_p9 = pnand %p2915_p5, %p2909_p7 }
 0x318   : > { %2919 = shalt.err (!%p2916_p9)
}
 0x319   : > { %2671 = dma.vmem_to_hbm [thread:$0]  (%p3297_p3), %s5123_s17, 32, %s5118_s13, %s5126_s30   ;;  %vm5701_vm15 = vmmov %vm5697_vm0  ;;  %v1905_v8 = vld [vmem:[%s4422_s11 + $0x48] sm:$0xff]  ;;  %v1954_v30 = vpop.xlane.xlu0 %1953  ;;  %v1957_v52 = vpop.xlane.xlu1 %1956  ;;  %v1906_v42 = vld [vmem:[%s4422_s11 + $0x50] sm:$0xff] }
 0x31a   : > { %2063 = vst.msk [vmem:[%s4422_s11 + $0x30] sm:$0xff] %vm5701_vm15, %v2030_v19  ;;  %vm5702_vm11 = vmmov %vm5697_vm0  ;;  %v2032_v22 = vadd.f32 %v1954_v30, %v1904_v12  ;;  %v2033_v48 = vadd.f32 %v1957_v52, %v1905_v8  ;;  %v1907_v46 = vld [vmem:[%s4422_s11 + $0x58] sm:$0xff]  ;;  %s2579_s13 = sshll.u32 %s3066_s27, 4  ;;  %s2187_s17 = sshll.u32 %s4991_s10, 4  ;;  %v1908_v4 = vld [vmem:[%s4422_s11 + $0x60] sm:$0xff]  ;;  %s5173_s17 = int_to_ptr.vmem [resolvable:$true] %s2187_s17 }
 0x31b   : > { %2064 = vst.msk [vmem:[%s4422_s11 + $0x38] sm:$0xff] %vm5702_vm11, %v2031_v43  ;;  %vm5703_vm7 = vmmov %vm5697_vm0  ;;  %v2089_v15 = vld [vmem:[%s4991_s10] sm:$0x1]  ;;  %s2655_s1 = spop %2654  ;;  %v1909_v10 = vld [vmem:[%s4422_s11 + $0x68] sm:$0xff]  ;;  %s5171_s24 = scalar_lea.hbm %s5356_s7, %s2579_s13 }
 0x31c   : > { %2065 = vst.msk [vmem:[%s4422_s11 + $0x40] sm:$0xff] %vm5703_vm7, %v2032_v22  ;;  %vm5704_vm6 = vmmov %vm5697_vm0  ;;  %v2105_v39 = vstv %s2655_s1  ;;  %v1910_v11 = vld [vmem:[%s4422_s11 + $0x70] sm:$0xff]  ;;  %s2125_s18 = scalar_lea.sflag [#allocation15], %s3356_s16  ;;  %s2920_s14 = scalar_lea.vmem %s5173_s17, 16 }
 0x31d   : > { %2066 = vst.msk [vmem:[%s4422_s11 + $0x48] sm:$0xff] %vm5704_vm6, %v2033_v48  ;;  %v1960_v34 = vpop.xlane.xlu0 %1959  ;;  %v1963_v26 = vpop.xlane.xlu1 %1962  ;;  %v2106_v53 = vadd.f32 %v2105_v39, %v2089_v15  ;;  %vm5705_vm3 = vmmov %vm5697_vm0  ;;  %p2921_p0 = scmp.ne.s32.totalorder %s5173_s17, %s2920_s14  ;;  %s3089_s21 = smov [#allocation14]  }
 0x31e   : > { %v2034_v44 = vadd.f32 %v1960_v34, %v1906_v42  ;;  %v2035_v23 = vadd.f32 %v1963_v26, %v1907_v46  ;;  %vm5706_vm13 = vmmov %vm5697_vm0  ;;  %s2924_s12 = sshll.u32 %s3089_s21, 4  ;;  %s2925_s12 = int_to_ptr.vmem [resolvable:$false] %s2924_s12 }
 0x31f   : > { %2108 = vst.msk [vmem:[%s4991_s10] sm:$0x1] %vm428_vm2, %v2106_v53  ;;  %p2922_p2 = pnand %p2921_p0, %p3297_p3  ;;  %s2926_s23 = scalar_lea.vmem %s2925_s12, 32 }
 0x320   : > { %2067 = vst.msk [vmem:[%s4422_s11 + $0x50] sm:$0xff] %vm5705_vm3, %v2034_v44  ;;  %p2927_p8 = scmp.lt.s32.totalorder %s5173_s17, %s2925_s12  ;;  %p2928_p12 = scmp.lt.s32.totalorder %s2926_s23, %s2920_s14 }
 0x321   : > { %2068 = vst.msk [vmem:[%s4422_s11 + $0x58] sm:$0xff] %vm5706_vm13, %v2035_v23  ;;  %v1966_v59 = vpop.xlane.xlu0 %1965  ;;  %v1969_v54 = vpop.xlane.xlu1 %1968  ;;  %p2923_p4 = pneg %p2922_p2 }
 0x322   : > { %v2036_v58 = vadd.f32 %v1966_v59, %v1908_v4  ;;  %v2037_v31 = vadd.f32 %v1969_v54, %v1909_v10  ;;  %p2929_p1 = por %p2928_p12, %p2927_p8 }
 0x324   : > { %p2930_p7 = pnand %p2929_p1, %p2923_p4 }
 0x326   : > { %2933 = shalt.err (!%p2930_p7)
}
 0x327   : > { %s2934_s10 = scalar_lea.hbm %s5171_s24, 16  ;;  %s2938_s9 = scalar_lea.hbm %s5356_s7, 32 }
 0x328   : > { %p2935_p13 = scmp.ne.s32.totalorder %s5171_s24, %s2934_s10  ;;  %p2939_p11 = scmp.lt.u32.totalorder %s5171_s24, %s5356_s7 }
 0x329   : > { %p2940_p5 = scmp.lt.u32.totalorder %s2938_s9, %s2934_s10  ;;  %p2942_p0 = scmp.lt.u32.totalorder %s2934_s10, %s5171_s24 }
 0x32a   : > { %p2936_p6 = pnand %p2935_p13, %p3297_p3 }
 0x32b   : > { %p2941_p9 = por %p2940_p5, %p2939_p11 }
 0x32c   : > { %p2937_p10 = pneg %p2936_p6 }
 0x32d   : > { %p2943_p2 = por %p2942_p0, %p2941_p9 }
 0x32f   : > { %p2944_p4 = pnand %p2943_p2, %p2937_p10 }
 0x331   : > { %2947 = shalt.err (!%p2944_p4)
}
 0x332   : > { %2673 = dma.vmem_to_hbm [thread:$0]  (%p3297_p3), %s5173_s17, 16, %s5171_s24, %s2125_s18   ;;  %vm5707_vm2 = vmmov %vm5697_vm0  ;;  %v1911_v57 = vld [vmem:[%s4422_s11 + $0x78] sm:$0xff]  ;;  %v1972_v28 = vpop.xlane.xlu0 %1971  ;;  %v1975_v56 = vpop.xlane.xlu1 %1974  ;;  %v1912_v35 = vld [vmem:[%s4422_s11 + $0x80] sm:$0xff] }
 0x333   : > { %2069 = vst.msk [vmem:[%s4422_s11 + $0x60] sm:$0xff] %vm5707_vm2, %v2036_v58  ;;  %vm5708_vm1 = vmmov %vm5697_vm0  ;;  %v2038_v63 = vadd.f32 %v1972_v28, %v1910_v11  ;;  %v2039_v5 = vadd.f32 %v1975_v56, %v1911_v57  ;;  %v1913_v45 = vld [vmem:[%s4422_s11 + $0x88] sm:$0xff]  ;;  %v1914_v9 = vld [vmem:[%s4422_s11 + $0x90] sm:$0xff]  ;;  %s2585_s17 = sshll.u32 %s3066_s27, 12  ;;  %s2171_s24 = sshll.u32 %s4422_s11, 4  ;;  %s5262_s24 = int_to_ptr.vmem [resolvable:$true] %s2171_s24 }
 0x334   : > { %2070 = vst.msk [vmem:[%s4422_s11 + $0x68] sm:$0xff] %vm5708_vm1, %v2037_v31  ;;  %vm5709_vm8 = vmmov %vm5697_vm0  ;;  %v1915_v61 = vld [vmem:[%s4422_s11 + $0x98] sm:$0xff]  ;;  %v1916_v38 = vld [vmem:[%s4422_s11 + $0xa0] sm:$0xff]  ;;  %s5260_s12 = scalar_lea.hbm %s5355_s6, %s2585_s17  ;;  %s2948_s23 = scalar_lea.vmem %s5262_s24, 4096 }
 0x335   : > { %2071 = vst.msk [vmem:[%s4422_s11 + $0x70] sm:$0xff] %vm5709_vm8, %v2038_v63  ;;  %vm5710_vm4 = vmmov %vm5697_vm0  ;;  %v1917_v49 = vld [vmem:[%s4422_s11 + $0xa8] sm:$0xff]  ;;  %v1918_v13 = vld [vmem:[%s4422_s11 + $0xb0] sm:$0xff]  ;;  %p2949_p8 = scmp.ne.s32.totalorder %s5262_s24, %s2948_s23  ;;  %s3090_s10 = smov [#allocation13]  }
 0x336   : > { %2072 = vst.msk [vmem:[%s4422_s11 + $0x78] sm:$0xff] %vm5710_vm4, %v2039_v5  ;;  %v1978_v16 = vpop.xlane.xlu0 %1977  ;;  %v1981_v24 = vpop.xlane.xlu1 %1980  ;;  %vm5711_vm14 = vmmov %vm5697_vm0  ;;  %v1919_v62 = vld [vmem:[%s4422_s11 + $0xb8] sm:$0xff]  ;;  %v1920_v18 = vld [vmem:[%s4422_s11 + $0xc0] sm:$0xff]  ;;  %s2952_s13 = sshll.u32 %s3090_s10, 4  ;;  %s2953_s13 = int_to_ptr.vmem [resolvable:$false] %s2952_s13 }
 0x337   : > { %v2040_v7 = vadd.f32 %v1978_v16, %v1912_v35  ;;  %v2041_v27 = vadd.f32 %v1981_v24, %v1913_v45  ;;  %vm5712_vm9 = vmmov %vm5697_vm0  ;;  %v1921_v55 = vld [vmem:[%s4422_s11 + $0xc8] sm:$0xff]  ;;  %v1922_v29 = vld [vmem:[%s4422_s11 + $0xd0] sm:$0xff]  ;;  %p2950_p12 = pnand %p2949_p8, %p3297_p3  ;;  %s2954_s1 = scalar_lea.vmem %s2953_s13, 8192 }
 0x338   : > { %vm5713_vm10 = vmmov %vm5697_vm0  ;;  %v1923_v6 = vld [vmem:[%s4422_s11 + $0xd8] sm:$0xff]  ;;  %v1924_v43 = vld [vmem:[%s4422_s11 + $0xe0] sm:$0xff]  ;;  %p2955_p7 = scmp.lt.s32.totalorder %s5262_s24, %s2953_s13  ;;  %p2956_p13 = scmp.lt.s32.totalorder %s2954_s1, %s2948_s23 }
 0x339   : > { %2073 = vst.msk [vmem:[%s4422_s11 + $0x80] sm:$0xff] %vm5711_vm14, %v2040_v7  ;;  %vm5714_vm12 = vmmov %vm5697_vm0  ;;  %v1925_v12 = vld [vmem:[%s4422_s11 + $0xe8] sm:$0xff]  ;;  %v1926_v48 = vld [vmem:[%s4422_s11 + $0xf0] sm:$0xff]  ;;  %p2951_p1 = pneg %p2950_p12 }
 0x33a   : > { %2074 = vst.msk [vmem:[%s4422_s11 + $0x88] sm:$0xff] %vm5712_vm9, %v2041_v27  ;;  %v1984_v25 = vpop.xlane.xlu0 %1983  ;;  %v1987_v36 = vpop.xlane.xlu1 %1986  ;;  %vm5715_vm5 = vmmov %vm5697_vm0  ;;  %v1927_v42 = vld [vmem:[%s4422_s11 + $0xf8] sm:$0xff]  ;;  %p2957_p6 = por %p2956_p13, %p2955_p7 }
 0x33b   : > { %v2042_v51 = vadd.f32 %v1984_v25, %v1914_v9  ;;  %v2043_v33 = vadd.f32 %v1987_v36, %v1915_v61  ;;  %vm5716_vm15 = vmmov %vm5697_vm0 }
 0x33c   : > { %vm5717_vm11 = vmmov %vm5697_vm0  ;;  %p2958_p10 = pnand %p2957_p6, %p2951_p1 }
 0x33d   : > { %2075 = vst.msk [vmem:[%s4422_s11 + $0x90] sm:$0xff] %vm5697_vm0, %v2042_v51  ;;  %vm5718_vm7 = vmmov %vm5697_vm0 }
 0x33e   : > { %2076 = vst.msk [vmem:[%s4422_s11 + $0x98] sm:$0xff] %vm5713_vm10, %v2043_v33  ;;  %v1990_v2 = vpop.xlane.xlu0 %1989  ;;  %v1993_v14 = vpop.xlane.xlu1 %1992  ;;  %vm5719_vm6 = vmmov %vm5697_vm0 }
 0x33f   : > { %v2044_v17 = vadd.f32 %v1990_v2, %v1916_v38  ;;  %v2045_v41 = vadd.f32 %v1993_v14, %v1917_v49  ;;  %vm5720_vm3 = vmmov %vm5697_vm0 }
 0x340   : > { %vm5721_vm13 = vmmov %vm5697_vm0 }
 0x341   : > { %2077 = vst.msk [vmem:[%s4422_s11 + $0xa0] sm:$0xff] %vm5714_vm12, %v2044_v17  ;;  %vm5722_vm2 = vmmov %vm5697_vm0 }
 0x342   : > { %2078 = vst.msk [vmem:[%s4422_s11 + $0xa8] sm:$0xff] %vm5715_vm5, %v2045_v41  ;;  %v1996_v37 = vpop.xlane.xlu0 %1995  ;;  %v1999_v1 = vpop.xlane.xlu1 %1998  ;;  %vm5723_vm1 = vmmov %vm5697_vm0 }
 0x343   : > { %v2046_v47 = vadd.f32 %v1996_v37, %v1918_v13  ;;  %v2047_v40 = vadd.f32 %v1999_v1, %v1919_v62  ;;  %vm5724_vm8 = vmmov %vm5697_vm0 }
 0x344   : > { %vm5725_vm4 = vmmov %vm5697_vm0 }
 0x345   : > { %2079 = vst.msk [vmem:[%s4422_s11 + $0xb0] sm:$0xff] %vm5716_vm15, %v2046_v47 }
 0x346   : > { %2080 = vst.msk [vmem:[%s4422_s11 + $0xb8] sm:$0xff] %vm5717_vm11, %v2047_v40  ;;  %v2002_v60 = vpop.xlane.xlu0 %2001  ;;  %v2005_v21 = vpop.xlane.xlu1 %2004 }
 0x347   : > { %v2048_v50 = vadd.f32 %v2002_v60, %v1920_v18  ;;  %v2049_v3 = vadd.f32 %v2005_v21, %v1921_v55 }
 0x349   : > { %2081 = vst.msk [vmem:[%s4422_s11 + $0xc0] sm:$0xff] %vm5718_vm7, %v2048_v50 }
 0x34a   : > { %2082 = vst.msk [vmem:[%s4422_s11 + $0xc8] sm:$0xff] %vm5719_vm6, %v2049_v3  ;;  %v2008_v0 = vpop.xlane.xlu0 %2007  ;;  %v2011_v19 = vpop.xlane.xlu1 %2010 }
 0x34b   : > { %v2050_v32 = vadd.f32 %v2008_v0, %v1922_v29  ;;  %v2051_v20 = vadd.f32 %v2011_v19, %v1923_v6 }
 0x34d   : > { %2083 = vst.msk [vmem:[%s4422_s11 + $0xd0] sm:$0xff] %vm5720_vm3, %v2050_v32 }
 0x34e   : > { %2084 = vst.msk [vmem:[%s4422_s11 + $0xd8] sm:$0xff] %vm5721_vm13, %v2051_v20  ;;  %v2014_v8 = vpop.xlane.xlu0 %2013  ;;  %v2017_v22 = vpop.xlane.xlu1 %2016 }
 0x34f   : > { %v2052_v30 = vadd.f32 %v2014_v8, %v1924_v43  ;;  %v2053_v52 = vadd.f32 %v2017_v22, %v1925_v12 }
 0x351   : > { %2085 = vst.msk [vmem:[%s4422_s11 + $0xe0] sm:$0xff] %vm5722_vm2, %v2052_v30 }
 0x352   : > { %2086 = vst.msk [vmem:[%s4422_s11 + $0xe8] sm:$0xff] %vm5723_vm1, %v2053_v52  ;;  %v2020_v46 = vpop.xlane.xlu0 %2019  ;;  %v2023_v34 = vpop.xlane.xlu1 %2022 }
 0x353   : > { %v2054_v15 = vadd.f32 %v2020_v46, %v1926_v48  ;;  %v2055_v44 = vadd.f32 %v2023_v34, %v1927_v42 }
 0x355   : > { %2087 = vst.msk [vmem:[%s4422_s11 + $0xf0] sm:$0xff] %vm5724_vm8, %v2054_v15 }
 0x356   : > { %2088 = vst.msk [vmem:[%s4422_s11 + $0xf8] sm:$0xff] %vm5725_vm4, %v2055_v44 }
 0x357   : > { %2961 = shalt.err (!%p2958_p10)
}
 0x358   : > { %s2962_s11 = scalar_lea.hbm %s5260_s12, 4096  ;;  %s2966_s21 = scalar_lea.hbm %s5355_s6, 8192 }
 0x359   : > { %p2963_p11 = scmp.ne.s32.totalorder %s5260_s12, %s2962_s11  ;;  %p2967_p0 = scmp.lt.u32.totalorder %s5260_s12, %s5355_s6 }
 0x35a   : > { %p2968_p2 = scmp.lt.u32.totalorder %s2966_s21, %s2962_s11  ;;  %p2970_p8 = scmp.lt.u32.totalorder %s2962_s11, %s5260_s12 }
 0x35b   : > { %p2964_p5 = pnand %p2963_p11, %p3297_p3 }
 0x35c   : > { %p2969_p4 = por %p2968_p2, %p2967_p0 }
 0x35d   : > { %p2965_p9 = pneg %p2964_p5 }
 0x35e   : > { %p2971_p12 = por %p2970_p8, %p2969_p4 }
 0x360   : > { %p2972_p1 = pnand %p2971_p12, %p2965_p9 }
 0x362   : > { %2975 = shalt.err (!%p2972_p1)
}
 0x363   : > { %s3091_s14 = smov 128   ;;  %s3092_s23 = smov 8  }
 0x364   : > { %2672 = dma.vmem_to_hbm [thread:$0]  (%p3297_p3), %s5262_s24, 4096, %s5260_s12, %s5126_s30, %s3091_s14, %s3091_s14, %s3092_s23  }
 0x365   : > { %s367_s10 = scalar_lea.vmem [#allocation10], %s2403_s19  ;;  %s2583_s1 = sshll.u32 %s3066_s27, 9 }
 0x366   : > { %s2139_s13 = sshll.u32 %s367_s10, 4  ;;  %s5298_s8 = scalar_lea.hbm %s5353_s4, %s2583_s1  ;;  %s5293_s13 = int_to_ptr.vmem [resolvable:$true] %s2139_s13 }
 0x367   : > { %s2110_s19 = scalar_lea.sflag [#allocation4], %s3356_s16  ;;  %s2976_s30 = scalar_lea.vmem %s5293_s13, 512 }
 0x368   : > { %p2977_p7 = scmp.ne.s32.totalorder %s5293_s13, %s2976_s30  ;;  %s3093_s27 = smov [#allocation10]  }
 0x369   : > { %s2980_s24 = sshll.u32 %s3093_s27, 4  ;;  %s2981_s24 = int_to_ptr.vmem [resolvable:$false] %s2980_s24 }
 0x36a   : > { %p2978_p13 = pnand %p2977_p7, %p3297_p3  ;;  %s2982_s12 = scalar_lea.vmem %s2981_s24, 1024 }
 0x36b   : > { %p2983_p10 = scmp.lt.s32.totalorder %s5293_s13, %s2981_s24  ;;  %p2984_p11 = scmp.lt.s32.totalorder %s2982_s12, %s2976_s30 }
 0x36c   : > { %p2979_p6 = pneg %p2978_p13 }
 0x36d   : > { %p2985_p5 = por %p2984_p11, %p2983_p10 }
 0x36f   : > { %p2986_p9 = pnand %p2985_p5, %p2979_p6 }
 0x385   : > { %v1881_v26 = vpop.f32.mrb[0].mxu1 }
 0x386   : > { %1892 = vst [vmem:[%s367_s10] sm:$0xff] %v1881_v26  ;;  %v1883_v39 = vpop.f32.mrb[1].mxu1 }
 0x387   : > { %1893 = vst [vmem:[%s367_s10 + $0x8] sm:$0xff] %v1883_v39 }
 0x389   : > { %v1887_v23 = vpop.f32.mrb[2].mxu1 }
 0x38a   : > { %1894 = vst [vmem:[%s367_s10 + $0x10] sm:$0xff] %v1887_v23  ;;  %v1889_v4 = vpop.f32.mrb[3].mxu1 }
 0x38b   : > { %1895 = vst [vmem:[%s367_s10 + $0x18] sm:$0xff] %v1889_v4 }
 0x38c   : > { %2989 = shalt.err (!%p2986_p9)
}
 0x38d   : > { %s2990_s21 = scalar_lea.hbm %s5298_s8, 512  ;;  %s2994_s14 = scalar_lea.hbm %s5353_s4, 1024 }
 0x38e   : > { %p2991_p0 = scmp.ne.s32.totalorder %s5298_s8, %s2990_s21  ;;  %p2995_p8 = scmp.lt.u32.totalorder %s5298_s8, %s5353_s4 }
 0x38f   : > { %p2996_p12 = scmp.lt.u32.totalorder %s2994_s14, %s2990_s21  ;;  %p2998_p7 = scmp.lt.u32.totalorder %s2990_s21, %s5298_s8 }
 0x390   : > { %p2992_p2 = pnand %p2991_p0, %p3297_p3 }
 0x391   : > { %p2997_p1 = por %p2996_p12, %p2995_p8 }
 0x392   : > { %p2993_p4 = pneg %p2992_p2 }
 0x393   : > { %p2999_p13 = por %p2998_p7, %p2997_p1 }
 0x395   : > { %p3000_p6 = pnand %p2999_p13, %p2993_p4 }
 0x397   : > { %3003 = shalt.err (!%p3000_p6)
}
 0x398   : > { %s3094_s1 = smov 256   ;;  %s3095_s11 = smov 16  }
 0x399   : > { %2670 = dma.vmem_to_hbm [thread:$0]  (%p3297_p3), %s5293_s13, 512, %s5298_s8, %s2110_s19, %s3094_s1, %s3094_s1, %s3095_s11  }
 0x39a PF: > { %s5726_s9 = sld [smem:[#allocation22_spill]]  ;;  %s5727_s30 = sld [smem:[#allocation23_spill]] }
 0x39b   : > { %p5729_p11 = scmp.ge.s32.totalorder %s3074_s29, 2 }
 0x3a0   : > { %s2199_s27 = sand.u32 1, %s5726_s9   ;;  %p5728_p10 = scmp.ne.s32.totalorder %s5727_s30, 0 }
 0x3a1   : > { %s2200_s24 = scalar_lea.sflag [#allocation4], %s2199_s27 }
 0x3a2   : > { %p2693_p5 = pnand %p5729_p11, %p5728_p10 }
 0x3a4   : > { %3041 = dma.done.wait (!%p2693_p5), %s2200_s24, 512  }
 0x3a5   : > { %3043 = vsyncadd (!%p2693_p5), %s2200_s24, 4294966784  ;;  %s5730_s12 = sadd.s32 4294967294, %s3074_s29  }
 0x3a6   : > { %s2208_s21 = sand.u32 1, %s5730_s12  }
 0x3a7   : > { %s2209_s17 = scalar_lea.sflag [#allocation12], %s2208_s21 }
 0x3a8   : > { %3045 = dma.done.wait (!%p2693_p5), %s2209_s17, 4128  }
 0x3a9   : > { %3047 = vsyncadd (!%p2693_p5), %s2209_s17, 4294963168  ;;  %s2227_s20 = scalar_lea.sflag [#allocation15], %s2199_s27 }
 0x3aa   : > { %3049 = dma.done.wait (!%p2693_p5), %s2227_s20, 16  }
 0x3ab   : > { %3051 = vsyncadd (!%p2693_p5), %s2227_s20, 4294967280  ;;  %s32_s29 = sadd.s32 1, %s3074_s29   ;;  %s5731_s24 = smov %s3058_s25 }
 0x3ac   : > { %p29_p3 = scmp.ge.s32.totalorder %s32_s29, 4   ;;  %s5732_s25 = smov %s3062_s26 }
 0x3ad   : > { %s5733_s26 = smov %s3306_s15  ;;  %s5734_s27 = smov %s3070_s28 }
 0x3ae   : > { %s5735_s28 = smov %s5737_s22  ;;  %31 = sbr.rel (!%p29_p3) target bundleno = 14 (0xe), region = 146 }
 0x3b5   :  { %2231 = vsyncpa [#allocation3], 1 }
 0x3b6   :  { %2233 = vsyncpa [#allocation3 + $0x1], 1 }
 0x3b7   :  { %2234 = vsyncpa [#allocation6], 1 }
 0x3b8   :  { %2235 = vsyncpa [#allocation9], 1 }
 0x3b9   :  { %2236 = vsyncpa [#allocation4], 1 }
 0x3ba   :  { %2238 = vsyncpa [#allocation4 + $0x1], 1 }
 0x3bb   :  { %2239 = vsyncpa [#allocation12], 1 }
 0x3bc   :  { %2241 = vsyncpa [#allocation12 + $0x1], 1 }
 0x3bd   :  { %2242 = vsyncpa [#allocation15], 1 }
 0x3be   :  { %2244 = vsyncpa [#allocation15 + $0x1], 1 }

</bundles_post_ra>
